<compile_context>
chip_gen: v7x
topology: tpu7x:2x2x1
jax: 0.10.0
libtpu: 0.0.40
codegen_flags: <defaults>
</compile_context>

<pallas_src>
import jax
import jax.numpy as jnp
from jax.experimental import pallas as pl
from jax.experimental.pallas import tpu as pltpu

# ---------------- synthetic SMOKE config (small) ----------------
N, IN_CH, H, W = 2, 16, 16, 16          # real SMOKE: in_channels=64, H/W ~ 96x320
HEAD_CONV = 32                          # real: 256
NUM_GROUPS = 8                          # real: 32
NUM_CLASSES = 3                         # (Car, Cyclist, Pedestrian)
REG_HEADS = 8                           # regression_channels = (1, 2, 3, 2)
DIM_LO, DIM_HI = 3, 6                   # "dim" slice inside the regression block
ORI_LO, ORI_HI = 6, 8                   # "ori" slice inside the regression block
GN_EPS = 1e-5
HM_CLAMP = 1e-4

HW = H * W
HC2 = 2 * HEAD_CONV                     # fused [class | reg] hidden channels
NG2 = 2 * NUM_GROUPS                    # fused group count
CPG = HEAD_CONV // NUM_GROUPS           # channels per group
NCR = NUM_CLASSES + REG_HEADS           # fused output channels of the conv1x1

# spatial tiling (positions of the flattened H*W axis per grid step)
TILE = 128
NUM_TILES = HW // TILE
assert HW % TILE == 0
PT = W + 8                              # top halo inside each window (>= W+1)
WIN = TILE + 128                        # per-tile window length (halo + slack)
PB = WIN - TILE - PT                    # bottom pad so the last window fits exactly
assert PB >= W + 1


# ---------------- Pallas kernel ----------------
def smoke_predictor_kernel(
    win_ref, w1t_ref, b1_ref, gamma_ref, beta_ref, w2t_ref, b2_ref,   # inputs
    cls_ref, reg_ref,                                                  # outputs
    h_ref, sum_ref, ssq_ref, scale_ref, bias_ref,                      # scratch
):
    phase = pl.program_id(1)
    t = pl.program_id(2)

    # -------- phase 0: fused 3x3 conv (9 shifted matmuls) + GN statistics --------
    @pl.when(phase == 0)
    def _phase0():
        @pl.when(t == 0)
        def _():
            sum_ref[...] = jnp.zeros_like(sum_ref)
            ssq_ref[...] = jnp.zeros_like(ssq_ref)

        row0 = t * TILE
        lane = jax.lax.broadcasted_iota(jnp.int32, (1, TILE), 1)
        col = (row0 + lane) % W                 # output column index j of each lane

        acc = jnp.zeros((HC2, TILE), jnp.float32)
        for dx in range(3):
            part = jnp.zeros((HC2, TILE), jnp.float32)
            for dy in range(3):
                off = (dy - 1) * W + (dx - 1) + PT          # static window offset
                xt = win_ref[0, 0, :, off:off + TILE]        # (Cin, TILE) bf16
                part = part + jnp.dot(w1t_ref[dy * 3 + dx], xt,
                                      preferred_element_type=jnp.float32)
            if dx == 0:      # tap reads column j-1 -> invalid where j == 0
                part = jnp.where(col != 0, part, 0.0)
            elif dx == 2:    # tap reads column j+1 -> invalid where j == W-1
                part = jnp.where(col != W - 1, part, 0.0)
            acc = acc + part

        # conv output without bias (bias is folded into the GN scale/bias later).
        # NOTE: at production sizes store this scratch in bf16 to halve VMEM.
        h_ref[t] = acc
        sum_ref[...] += jnp.sum(acc, axis=1, keepdims=True)
        ssq_ref[...] += jnp.sum(acc * acc, axis=1, keepdims=True)

    # -------- phase 1: GN scale/bias -> ReLU -> fused conv1x1 -> head activations --
    @pl.when(phase == 1)
    def _phase1():
        @pl.when(t == 0)
        def _():
            b1 = b1_ref[...]                         # (HC2, 1) conv bias
            s_raw = sum_ref[...]
            # fold the conv bias into the statistics analytically
            s_tot = s_raw + float(HW) * b1
            q_tot = ssq_ref[...] + 2.0 * b1 * s_raw + float(HW) * (b1 * b1)
            cnt = float(HW * CPG)
            c_iota = jax.lax.broadcasted_iota(jnp.int32, (HC2, 1), 0)
            mean_c = jnp.zeros((HC2, 1), jnp.float32)
            inv_c = jnp.zeros((HC2, 1), jnp.float32)
            for g in range(NG2):                     # masked group reduce (no A/AT)
                m = (c_iota >= g * CPG) & (c_iota < (g + 1) * CPG)
                sg = jnp.sum(jnp.where(m, s_tot, 0.0), keepdims=True)    # (1, 1)
                qg = jnp.sum(jnp.where(m, q_tot, 0.0), keepdims=True)
                mean_g = sg / cnt
                var_g = jnp.maximum(qg / cnt - mean_g * mean_g, 0.0)     # clamp >= 0
                inv_g = jax.lax.rsqrt(var_g + GN_EPS)
                mean_c = mean_c + jnp.where(m, mean_g, 0.0)
                inv_c = inv_c + jnp.where(m, inv_g, 0.0)
            scale = inv_c * gamma_ref[...]
            scale_ref[...] = scale
            bias_ref[...] = beta_ref[...] + (b1 - mean_c) * scale

        h = h_ref[t]                                             # (HC2, TILE) f32
        hn = jnp.maximum(h * scale_ref[...] + bias_ref[...], 0.0)
        y = jnp.dot(w2t_ref[...], hn,
                    preferred_element_type=jnp.float32) + b2_ref[...]   # (NCR, TILE)

        # class heatmap: sigmoid + clamp
        cls = jnp.clip(jax.nn.sigmoid(y[0:NUM_CLASSES, :]), HM_CLAMP, 1.0 - HM_CLAMP)

        # regression: rows 3:6 -> sigmoid-0.5, rows 6:8 -> L2 normalize (rsqrt*mul)
        reg = y[NUM_CLASSES:, :]                                 # (REG_HEADS, TILE)
        rr = jax.lax.broadcasted_iota(jnp.int32, (REG_HEADS, TILE), 0)
        ss = (reg[ORI_LO:ORI_LO + 1, :] * reg[ORI_LO:ORI_LO + 1, :]
              + reg[ORI_HI - 1:ORI_HI, :] * reg[ORI_HI - 1:ORI_HI, :])
        inv_n = jax.lax.rsqrt(jnp.maximum(ss, 1e-24))
        reg_out = jnp.where((rr >= DIM_LO) & (rr < DIM_HI), jax.nn.sigmoid(reg) - 0.5,
                            jnp.where(rr >= ORI_LO, reg * inv_n, reg))

        cls_ref[0] = cls
        reg_ref[0] = reg_out


# ---------------- wrapper (glue) ----------------
def smoke_head_forward(features_nchw, params):
    """SMOKEHead.forward (inference, predictor part) -> [class_heatmap, regression] NCHW."""
    n, cin, h, w = features_nchw.shape
    hw = h * w
    num_tiles = hw // TILE

    # ---- fuse + repack weights into kernel (channel-major) layouts ----
    w1 = jnp.concatenate([params["wc1"], params["wr1"]], axis=3)        # (3,3,Cin,2HC)
    w1t = jnp.transpose(w1, (0, 1, 3, 2)).reshape(9, HC2, cin).astype(jnp.bfloat16)
    b1 = jnp.concatenate([params["bc1"], params["br1"]]).reshape(HC2, 1).astype(jnp.float32)
    gamma = jnp.concatenate([params["gc"], params["gr"]]).reshape(HC2, 1).astype(jnp.float32)
    beta = jnp.concatenate([params["bec"], params["ber"]]).reshape(HC2, 1).astype(jnp.float32)
    w2t = jnp.zeros((NCR, HC2), jnp.float32)
    w2t = w2t.at[:NUM_CLASSES, :HEAD_CONV].set(params["wc2"].T)         # block-diagonal
    w2t = w2t.at[NUM_CLASSES:, HEAD_CONV:].set(params["wr2"].T)
    b2 = jnp.concatenate([params["bc2"], params["br2"]]).reshape(NCR, 1).astype(jnp.float32)

    # ---- channel-major (NCHW-native) spatial windows with zero halo ----
    x_flat = features_nchw.reshape(n, cin, hw).astype(jnp.bfloat16)
    padded = jnp.zeros((n, cin, PT + hw + PB), jnp.bfloat16)
    padded = padded.at[:, :, PT:PT + hw].set(x_flat)
    windows = jnp.stack([padded[:, :, i * TILE:i * TILE + WIN] for i in range(num_tiles)],
                        axis=1)                                          # (N, T, Cin, WIN)

    const2 = lambda shape: pl.BlockSpec(shape, lambda ni, ph, ti: (0, 0))
    const3 = lambda shape: pl.BlockSpec(shape, lambda ni, ph, ti: (0, 0, 0))

    grid_spec = pltpu.PrefetchScalarGridSpec(
        num_scalar_prefetch=0,
        grid=(n, 2, num_tiles),                       # (sample, phase, spatial tile)
        in_specs=[
            # per-tile input window; during phase 1 stay on the last window (no DMA)
            pl.BlockSpec((1, 1, cin, WIN),
                         lambda ni, ph, ti: (ni, ph * (num_tiles - 1) + (1 - ph) * ti, 0, 0)),
            const3(w1t.shape), const2(b1.shape), const2(gamma.shape), const2(beta.shape),
            const2(w2t.shape), const2(b2.shape),
        ],
        out_specs=[
            # channel-major (lane-dense) outputs; only written during phase 1
            pl.BlockSpec((1, NUM_CLASSES, TILE), lambda ni, ph, ti: (ni, 0, ph * ti)),
            pl.BlockSpec((1, REG_HEADS, TILE), lambda ni, ph, ti: (ni, 0, ph * ti)),
        ],
        scratch_shapes=[
            pltpu.VMEM((num_tiles, HC2, TILE), jnp.float32),  # resident conv3x3 output
            pltpu.VMEM((HC2, 1), jnp.float32),                # per-channel sum
            pltpu.VMEM((HC2, 1), jnp.float32),                # per-channel sum of squares
            pltpu.VMEM((HC2, 1), jnp.float32),                # GN scale (folded)
            pltpu.VMEM((HC2, 1), jnp.float32),                # GN bias  (folded)
        ],
    )

    cls_flat, reg_flat = pl.pallas_call(
        smoke_predictor_kernel,
        out_shape=(jax.ShapeDtypeStruct((n, NUM_CLASSES, hw), jnp.float32),
                   jax.ShapeDtypeStruct((n, REG_HEADS, hw), jnp.float32)),
        grid_spec=grid_spec,
        compiler_params=pltpu.CompilerParams(
            dimension_semantics=("parallel", "arbitrary", "arbitrary"),
            vmem_limit_bytes=64 * 1024 * 1024),
    )(windows, w1t, b1, gamma, beta, w2t, b2)

    # outputs are already channel-major (NCHW) -> just reshape, no transposes
    cls = cls_flat.reshape(n, NUM_CLASSES, h, w)
    reg = reg_flat.reshape(n, REG_HEADS, h, w)
    return [cls, reg]


# ---------------- deterministic parameter init ----------------
def init_params(key):
    ks = jax.random.split(key, 6)
    f32 = jnp.float32
    return {
        # class tower
        "wc1": jax.random.normal(ks[0], (3, 3, IN_CH, HEAD_CONV), f32) * 0.05,
        "bc1": jax.random.normal(ks[1], (HEAD_CONV,), f32) * 0.01,
        "gc": jnp.ones((HEAD_CONV,), f32),
        "bec": jnp.zeros((HEAD_CONV,), f32),
        "wc2": jax.random.normal(ks[2], (HEAD_CONV, NUM_CLASSES), f32) * 0.05,
        "bc2": jnp.full((NUM_CLASSES,), -2.19, f32),       # SMOKE: class bias fill(-2.19)
        # regression tower
        "wr1": jax.random.normal(ks[3], (3, 3, IN_CH, HEAD_CONV), f32) * 0.05,
        "br1": jax.random.normal(ks[4], (HEAD_CONV,), f32) * 0.01,
        "gr": jnp.ones((HEAD_CONV,), f32),
        "ber": jnp.zeros((HEAD_CONV,), f32),
        "wr2": jax.random.normal(ks[5], (HEAD_CONV, REG_HEADS), f32) * 0.05,
        "br2": jnp.zeros((REG_HEADS,), f32),               # _fill_fc_weights -> bias 0
    }


# ---------------- pure-JAX reference (for correctness check) ----------------
def reference_forward(x_nchw, params):
    xb = x_nchw.astype(jnp.bfloat16)   # match the kernel's bf16 conv3x3 operands

    def conv3x3(w_hwio, b):
        y = jax.lax.conv_general_dilated(
            xb, w_hwio.astype(jnp.bfloat16), (1, 1), ((1, 1), (1, 1)),
            dimension_numbers=("NCHW", "HWIO", "NCHW"),
            preferred_element_type=jnp.float32)
        return y + b.reshape(1, -1, 1, 1)

    def gnorm(v, gamma, beta):
        n_, c_, h_, w_ = v.shape
        vg = v.reshape(n_, NUM_GROUPS, c_ // NUM_GROUPS, h_, w_)
        mu = vg.mean(axis=(2, 3, 4), keepdims=True)
        var = ((vg - mu) ** 2).mean(axis=(2, 3, 4), keepdims=True)
        vn = ((vg - mu) * jax.lax.rsqrt(var + GN_EPS)).reshape(n_, c_, h_, w_)
        return vn * gamma.reshape(1, -1, 1, 1) + beta.reshape(1, -1, 1, 1)

    def tower(w1, b1, g, be, w2, b2):
        hh = jnp.maximum(gnorm(conv3x3(w1, b1), g, be), 0.0)
        return jnp.einsum("nchw,cd->ndhw", hh, w2) + b2.reshape(1, -1, 1, 1)

    y_cls = tower(params["wc1"], params["bc1"], params["gc"], params["bec"],
                  params["wc2"], params["bc2"])
    cls = jnp.clip(jax.nn.sigmoid(y_cls), HM_CLAMP, 1.0 - HM_CLAMP)

    y_reg = tower(params["wr1"], params["br1"], params["gr"], params["ber"],
                  params["wr2"], params["br2"])
    dims = jax.nn.sigmoid(y_reg[:, DIM_LO:DIM_HI]) - 0.5
    ori = y_reg[:, ORI_LO:ORI_HI]
    ori = ori / jnp.maximum(jnp.linalg.norm(ori, axis=1, keepdims=True), 1e-12)
    reg = jnp.concatenate([y_reg[:, :DIM_LO], dims, ori], axis=1)
    return [cls, reg]


if __name__ == "__main__":
    key = jax.random.PRNGKey(0)
    kx, kp = jax.random.split(key)
    features = jax.random.normal(kx, (N, IN_CH, H, W), jnp.float32)   # NCHW
    params = init_params(kp)

    cls_out, reg_out = smoke_head_forward(features, params)
    jax.block_until_ready(cls_out)
    jax.block_until_ready(reg_out)

    cls_ref, reg_ref = reference_forward(features, params)
    assert cls_out.shape == (N, NUM_CLASSES, H, W)
    assert reg_out.shape == (N, REG_HEADS, H, W)
    assert jnp.allclose(cls_out, cls_ref, atol=5e-4, rtol=2e-3)
    assert jnp.allclose(reg_out, reg_ref, atol=5e-4, rtol=2e-3)

    print("KERNEL_OK")
</pallas_src>

<mosaic_0001>
module attributes {stable_mosaic.version = 11 : i64} {
  func.func @smoke_predictor_kernel(%arg0: i32, %arg1: i32, %arg2: i32, %arg3: memref<1x1x16x256xbf16, #tpu.memory_space<vmem>>, %arg4: memref<9x64x16xbf16, #tpu.memory_space<vmem>>, %arg5: memref<64x1xf32, #tpu.memory_space<vmem>>, %arg6: memref<64x1xf32, #tpu.memory_space<vmem>>, %arg7: memref<64x1xf32, #tpu.memory_space<vmem>>, %arg8: memref<11x64xf32, #tpu.memory_space<vmem>>, %arg9: memref<11x1xf32, #tpu.memory_space<vmem>>, %arg10: memref<1x3x128xf32, #tpu.memory_space<vmem>>, %arg11: memref<1x8x128xf32, #tpu.memory_space<vmem>>, %arg12: memref<2x64x128xf32, #tpu.memory_space<vmem>>, %arg13: memref<64x1xf32, #tpu.memory_space<vmem>>, %arg14: memref<64x1xf32, #tpu.memory_space<vmem>>, %arg15: memref<64x1xf32, #tpu.memory_space<vmem>>, %arg16: memref<64x1xf32, #tpu.memory_space<vmem>>) attributes {dimension_semantics = [#tpu.dimension_semantics<parallel>, #tpu.dimension_semantics<arbitrary>, #tpu.dimension_semantics<arbitrary>], iteration_bounds = array<i64: 2, 2, 2>, scalar_prefetch = 0 : i64, scratch_operands = 5 : i64, tpu.core_type = #tpu.core_type<tc>, window_params = [{transform_indices = @transform_0, window_bounds = array<i64: 1, 1, 16, 256>}, {pipeline_mode = #tpu.pipeline_mode<synchronous>, transform_indices = @transform_1, window_bounds = array<i64: 9, 64, 16>}, {pipeline_mode = #tpu.pipeline_mode<synchronous>, transform_indices = @transform_2, window_bounds = array<i64: 64, 1>}, {pipeline_mode = #tpu.pipeline_mode<synchronous>, transform_indices = @transform_3, window_bounds = array<i64: 64, 1>}, {pipeline_mode = #tpu.pipeline_mode<synchronous>, transform_indices = @transform_4, window_bounds = array<i64: 64, 1>}, {pipeline_mode = #tpu.pipeline_mode<synchronous>, transform_indices = @transform_5, window_bounds = array<i64: 11, 64>}, {pipeline_mode = #tpu.pipeline_mode<synchronous>, transform_indices = @transform_6, window_bounds = array<i64: 11, 1>}, {transform_indices = @transform_7, window_bounds = array<i64: 1, 3, 128>}, {transform_indices = @transform_8, window_bounds = array<i64: 1, 8, 128>}]} {
    %c0_i32 = arith.constant 0 : i32
    %0 = arith.cmpi eq, %arg1, %c0_i32 : i32
    %1 = arith.extui %0 : i1 to i32
    %c0_i32_0 = arith.constant 0 : i32
    %2 = arith.cmpi ne, %1, %c0_i32_0 : i32
    scf.if %2 {
      %c0_i32_2 = arith.constant 0 : i32
      %6 = arith.cmpi eq, %arg2, %c0_i32_2 : i32
      %7 = arith.extui %6 : i1 to i32
      %c0_i32_3 = arith.constant 0 : i32
      %8 = arith.cmpi ne, %7, %c0_i32_3 : i32
      scf.if %8 {
        %cst_83 = arith.constant 0.000000e+00 : f32
        %117 = vector.broadcast %cst_83 : f32 to vector<64x1xf32>
        %c0_84 = arith.constant 0 : index
        %c0_85 = arith.constant 0 : index
        %118 = vector.load %arg13[%c0_84, %c0_85] : memref<64x1xf32, #tpu.memory_space<vmem>>, vector<64x1xf32>
        tpu.vector_store %arg13[%c0_84, %c0_85], %117 {strides = array<i32>} : memref<64x1xf32, #tpu.memory_space<vmem>>, vector<64x1xf32>,
        %cst_86 = arith.constant 0.000000e+00 : f32
        %119 = vector.broadcast %cst_86 : f32 to vector<64x1xf32>
        %c0_87 = arith.constant 0 : index
        %c0_88 = arith.constant 0 : index
        %120 = vector.load %arg14[%c0_87, %c0_88] : memref<64x1xf32, #tpu.memory_space<vmem>>, vector<64x1xf32>
        tpu.vector_store %arg14[%c0_87, %c0_88], %119 {strides = array<i32>} : memref<64x1xf32, #tpu.memory_space<vmem>>, vector<64x1xf32>,
      } else {
      }
      %c128_i32 = arith.constant 128 : i32
      %9 = arith.muli %arg2, %c128_i32 : i32
      %10 = tpu.iota {dimensions = array<i32: 1>} : vector<1x128xi32>
      %11 = vector.broadcast %9 : i32 to vector<1x128xi32>
      %12 = arith.addi %11, %10 : vector<1x128xi32>
      %c16_i32 = arith.constant 16 : i32
      %c0_i32_4 = arith.constant 0 : i32
      %13 = arith.cmpi eq, %c16_i32, %c0_i32_4 : i32
      %c1_i32_5 = arith.constant 1 : i32
      %14 = arith.select %13, %c1_i32_5, %c16_i32 : i32
      %15 = vector.broadcast %14 : i32 to vector<1x128xi32>
      %16 = arith.remsi %12, %15 : vector<1x128xi32>
      %c0_i32_6 = arith.constant 0 : i32
      %17 = vector.broadcast %c0_i32_6 : i32 to vector<1x128xi32>
      %18 = arith.cmpi ne, %16, %17 : vector<1x128xi32>
      %c0_i32_7 = arith.constant 0 : i32
      %19 = vector.broadcast %c0_i32_7 : i32 to vector<1x128xi32>
      %20 = arith.cmpi slt, %16, %19 : vector<1x128xi32>
      %c0_i32_8 = arith.constant 0 : i32
      %21 = arith.cmpi slt, %14, %c0_i32_8 : i32
      %22 = vector.broadcast %21 : i1 to vector<1x128xi1>
      %23 = vector.broadcast %22 : vector<1x128xi1> to vector<1x128xi1>
      %24 = arith.xori %20, %23 : vector<1x128xi1>
      %25 = arith.andi %24, %18 : vector<1x128xi1>
      %26 = vector.broadcast %14 : i32 to vector<1x128xi32>
      %27 = arith.addi %16, %26 : vector<1x128xi32>
      %28 = arith.select %25, %27, %16 : vector<1x128xi1>, vector<1x128xi32>
      %cst = arith.constant 0.000000e+00 : f32
      %29 = vector.broadcast %cst : f32 to vector<64x128xf32>
      %cst_9 = arith.constant 0.000000e+00 : f32
      %30 = vector.broadcast %cst_9 : f32 to vector<64x128xf32>
      %c0 = arith.constant 0 : index
      %c0_10 = arith.constant 0 : index
      %c0_11 = arith.constant 0 : index
      %c7 = arith.constant 7 : index
      %31 = vector.load %arg3[%c0, %c0_10, %c0_11, %c7] : memref<1x1x16x256xbf16, #tpu.memory_space<vmem>>, vector<1x1x16x128xbf16>
      %32 = vector.shape_cast %31 : vector<1x1x16x128xbf16> to vector<16x128xbf16>
      %c0_12 = arith.constant 0 : index
      %c0_13 = arith.constant 0 : index
      %c0_14 = arith.constant 0 : index
      %33 = vector.load %arg4[%c0_12, %c0_13, %c0_14] : memref<9x64x16xbf16, #tpu.memory_space<vmem>>, vector<1x64x16xbf16>
      %34 = vector.shape_cast %33 : vector<1x64x16xbf16> to vector<64x16xbf16>
      %cst_15 = arith.constant dense<0.000000e+00> : vector<64x128xf32>
      %35 = tpu.matmul %34, %32, %cst_15 {dimension_numbers = #tpu.dot_dimension_numbers<[1], [0], [0], [1], [0, 0, 1, 1], [], []>} : vector<64x16xbf16>, vector<16x128xbf16>, vector<64x128xf32> -> vector<64x128xf32>
      %36 = arith.addf %30, %35 : vector<64x128xf32>
      %c0_16 = arith.constant 0 : index
      %c0_17 = arith.constant 0 : index
      %c0_18 = arith.constant 0 : index
      %c23 = arith.constant 23 : index
      %37 = vector.load %arg3[%c0_16, %c0_17, %c0_18, %c23] : memref<1x1x16x256xbf16, #tpu.memory_space<vmem>>, vector<1x1x16x128xbf16>
      %38 = vector.shape_cast %37 : vector<1x1x16x128xbf16> to vector<16x128xbf16>
      %c3 = arith.constant 3 : index
      %c0_19 = arith.constant 0 : index
      %c0_20 = arith.constant 0 : index
      %39 = vector.load %arg4[%c3, %c0_19, %c0_20] : memref<9x64x16xbf16, #tpu.memory_space<vmem>>, vector<1x64x16xbf16>
      %40 = vector.shape_cast %39 : vector<1x64x16xbf16> to vector<64x16xbf16>
      %cst_21 = arith.constant dense<0.000000e+00> : vector<64x128xf32>
      %41 = tpu.matmul %40, %38, %cst_21 {dimension_numbers = #tpu.dot_dimension_numbers<[1], [0], [0], [1], [0, 0, 1, 1], [], []>} : vector<64x16xbf16>, vector<16x128xbf16>, vector<64x128xf32> -> vector<64x128xf32>
      %42 = arith.addf %36, %41 : vector<64x128xf32>
      %c0_22 = arith.constant 0 : index
      %c0_23 = arith.constant 0 : index
      %c0_24 = arith.constant 0 : index
      %c39 = arith.constant 39 : index
      %43 = vector.load %arg3[%c0_22, %c0_23, %c0_24, %c39] : memref<1x1x16x256xbf16, #tpu.memory_space<vmem>>, vector<1x1x16x128xbf16>
      %44 = vector.shape_cast %43 : vector<1x1x16x128xbf16> to vector<16x128xbf16>
      %c6 = arith.constant 6 : index
      %c0_25 = arith.constant 0 : index
      %c0_26 = arith.constant 0 : index
      %45 = vector.load %arg4[%c6, %c0_25, %c0_26] : memref<9x64x16xbf16, #tpu.memory_space<vmem>>, vector<1x64x16xbf16>
      %46 = vector.shape_cast %45 : vector<1x64x16xbf16> to vector<64x16xbf16>
      %cst_27 = arith.constant dense<0.000000e+00> : vector<64x128xf32>
      %47 = tpu.matmul %46, %44, %cst_27 {dimension_numbers = #tpu.dot_dimension_numbers<[1], [0], [0], [1], [0, 0, 1, 1], [], []>} : vector<64x16xbf16>, vector<16x128xbf16>, vector<64x128xf32> -> vector<64x128xf32>
      %48 = arith.addf %42, %47 : vector<64x128xf32>
      %c0_i32_28 = arith.constant 0 : i32
      %49 = vector.broadcast %c0_i32_28 : i32 to vector<1x128xi32>
      %50 = arith.cmpi ne, %28, %49 : vector<1x128xi32>
      %cst_29 = arith.constant 0.000000e+00 : f32
      %51 = vector.shape_cast %50 : vector<1x128xi1> to vector<1x128xi1>
      %52 = vector.broadcast %51 : vector<1x128xi1> to vector<64x128xi1>
      %53 = vector.broadcast %cst_29 : f32 to vector<64x128xf32>
      %54 = arith.select %52, %48, %53 : vector<64x128xi1>, vector<64x128xf32>
      %55 = arith.addf %29, %54 : vector<64x128xf32>
      %cst_30 = arith.constant 0.000000e+00 : f32
      %56 = vector.broadcast %cst_30 : f32 to vector<64x128xf32>
      %c0_31 = arith.constant 0 : index
      %c0_32 = arith.constant 0 : index
      %c0_33 = arith.constant 0 : index
      %c8 = arith.constant 8 : index
      %57 = vector.load %arg3[%c0_31, %c0_32, %c0_33, %c8] : memref<1x1x16x256xbf16, #tpu.memory_space<vmem>>, vector<1x1x16x128xbf16>
      %58 = vector.shape_cast %57 : vector<1x1x16x128xbf16> to vector<16x128xbf16>
      %c1 = arith.constant 1 : index
      %c0_34 = arith.constant 0 : index
      %c0_35 = arith.constant 0 : index
      %59 = vector.load %arg4[%c1, %c0_34, %c0_35] : memref<9x64x16xbf16, #tpu.memory_space<vmem>>, vector<1x64x16xbf16>
      %60 = vector.shape_cast %59 : vector<1x64x16xbf16> to vector<64x16xbf16>
      %cst_36 = arith.constant dense<0.000000e+00> : vector<64x128xf32>
      %61 = tpu.matmul %60, %58, %cst_36 {dimension_numbers = #tpu.dot_dimension_numbers<[1], [0], [0], [1], [0, 0, 1, 1], [], []>} : vector<64x16xbf16>, vector<16x128xbf16>, vector<64x128xf32> -> vector<64x128xf32>
      %62 = arith.addf %56, %61 : vector<64x128xf32>
      %c0_37 = arith.constant 0 : index
      %c0_38 = arith.constant 0 : index
      %c0_39 = arith.constant 0 : index
      %c24 = arith.constant 24 : index
      %63 = vector.load %arg3[%c0_37, %c0_38, %c0_39, %c24] : memref<1x1x16x256xbf16, #tpu.memory_space<vmem>>, vector<1x1x16x128xbf16>
      %64 = vector.shape_cast %63 : vector<1x1x16x128xbf16> to vector<16x128xbf16>
      %c4 = arith.constant 4 : index
      %c0_40 = arith.constant 0 : index
      %c0_41 = arith.constant 0 : index
      %65 = vector.load %arg4[%c4, %c0_40, %c0_41] : memref<9x64x16xbf16, #tpu.memory_space<vmem>>, vector<1x64x16xbf16>
      %66 = vector.shape_cast %65 : vector<1x64x16xbf16> to vector<64x16xbf16>
      %cst_42 = arith.constant dense<0.000000e+00> : vector<64x128xf32>
      %67 = tpu.matmul %66, %64, %cst_42 {dimension_numbers = #tpu.dot_dimension_numbers<[1], [0], [0], [1], [0, 0, 1, 1], [], []>} : vector<64x16xbf16>, vector<16x128xbf16>, vector<64x128xf32> -> vector<64x128xf32>
      %68 = arith.addf %62, %67 : vector<64x128xf32>
      %c0_43 = arith.constant 0 : index
      %c0_44 = arith.constant 0 : index
      %c0_45 = arith.constant 0 : index
      %c40 = arith.constant 40 : index
      %69 = vector.load %arg3[%c0_43, %c0_44, %c0_45, %c40] : memref<1x1x16x256xbf16, #tpu.memory_space<vmem>>, vector<1x1x16x128xbf16>
      %70 = vector.shape_cast %69 : vector<1x1x16x128xbf16> to vector<16x128xbf16>
      %c7_46 = arith.constant 7 : index
      %c0_47 = arith.constant 0 : index
      %c0_48 = arith.constant 0 : index
      %71 = vector.load %arg4[%c7_46, %c0_47, %c0_48] : memref<9x64x16xbf16, #tpu.memory_space<vmem>>, vector<1x64x16xbf16>
      %72 = vector.shape_cast %71 : vector<1x64x16xbf16> to vector<64x16xbf16>
      %cst_49 = arith.constant dense<0.000000e+00> : vector<64x128xf32>
      %73 = tpu.matmul %72, %70, %cst_49 {dimension_numbers = #tpu.dot_dimension_numbers<[1], [0], [0], [1], [0, 0, 1, 1], [], []>} : vector<64x16xbf16>, vector<16x128xbf16>, vector<64x128xf32> -> vector<64x128xf32>
      %74 = arith.addf %68, %73 : vector<64x128xf32>
      %75 = arith.addf %55, %74 : vector<64x128xf32>
      %cst_50 = arith.constant 0.000000e+00 : f32
      %76 = vector.broadcast %cst_50 : f32 to vector<64x128xf32>
      %c0_51 = arith.constant 0 : index
      %c0_52 = arith.constant 0 : index
      %c0_53 = arith.constant 0 : index
      %c9 = arith.constant 9 : index
      %77 = vector.load %arg3[%c0_51, %c0_52, %c0_53, %c9] : memref<1x1x16x256xbf16, #tpu.memory_space<vmem>>, vector<1x1x16x128xbf16>
      %78 = vector.shape_cast %77 : vector<1x1x16x128xbf16> to vector<16x128xbf16>
      %c2 = arith.constant 2 : index
      %c0_54 = arith.constant 0 : index
      %c0_55 = arith.constant 0 : index
      %79 = vector.load %arg4[%c2, %c0_54, %c0_55] : memref<9x64x16xbf16, #tpu.memory_space<vmem>>, vector<1x64x16xbf16>
      %80 = vector.shape_cast %79 : vector<1x64x16xbf16> to vector<64x16xbf16>
      %cst_56 = arith.constant dense<0.000000e+00> : vector<64x128xf32>
      %81 = tpu.matmul %80, %78, %cst_56 {dimension_numbers = #tpu.dot_dimension_numbers<[1], [0], [0], [1], [0, 0, 1, 1], [], []>} : vector<64x16xbf16>, vector<16x128xbf16>, vector<64x128xf32> -> vector<64x128xf32>
      %82 = arith.addf %76, %81 : vector<64x128xf32>
      %c0_57 = arith.constant 0 : index
      %c0_58 = arith.constant 0 : index
      %c0_59 = arith.constant 0 : index
      %c25 = arith.constant 25 : index
      %83 = vector.load %arg3[%c0_57, %c0_58, %c0_59, %c25] : memref<1x1x16x256xbf16, #tpu.memory_space<vmem>>, vector<1x1x16x128xbf16>
      %84 = vector.shape_cast %83 : vector<1x1x16x128xbf16> to vector<16x128xbf16>
      %c5 = arith.constant 5 : index
      %c0_60 = arith.constant 0 : index
      %c0_61 = arith.constant 0 : index
      %85 = vector.load %arg4[%c5, %c0_60, %c0_61] : memref<9x64x16xbf16, #tpu.memory_space<vmem>>, vector<1x64x16xbf16>
      %86 = vector.shape_cast %85 : vector<1x64x16xbf16> to vector<64x16xbf16>
      %cst_62 = arith.constant dense<0.000000e+00> : vector<64x128xf32>
      %87 = tpu.matmul %86, %84, %cst_62 {dimension_numbers = #tpu.dot_dimension_numbers<[1], [0], [0], [1], [0, 0, 1, 1], [], []>} : vector<64x16xbf16>, vector<16x128xbf16>, vector<64x128xf32> -> vector<64x128xf32>
      %88 = arith.addf %82, %87 : vector<64x128xf32>
      %c0_63 = arith.constant 0 : index
      %c0_64 = arith.constant 0 : index
      %c0_65 = arith.constant 0 : index
      %c41 = arith.constant 41 : index
      %89 = vector.load %arg3[%c0_63, %c0_64, %c0_65, %c41] : memref<1x1x16x256xbf16, #tpu.memory_space<vmem>>, vector<1x1x16x128xbf16>
      %90 = vector.shape_cast %89 : vector<1x1x16x128xbf16> to vector<16x128xbf16>
      %c8_66 = arith.constant 8 : index
      %c0_67 = arith.constant 0 : index
      %c0_68 = arith.constant 0 : index
      %91 = vector.load %arg4[%c8_66, %c0_67, %c0_68] : memref<9x64x16xbf16, #tpu.memory_space<vmem>>, vector<1x64x16xbf16>
      %92 = vector.shape_cast %91 : vector<1x64x16xbf16> to vector<64x16xbf16>
      %cst_69 = arith.constant dense<0.000000e+00> : vector<64x128xf32>
      %93 = tpu.matmul %92, %90, %cst_69 {dimension_numbers = #tpu.dot_dimension_numbers<[1], [0], [0], [1], [0, 0, 1, 1], [], []>} : vector<64x16xbf16>, vector<16x128xbf16>, vector<64x128xf32> -> vector<64x128xf32>
      %94 = arith.addf %88, %93 : vector<64x128xf32>
      %c15_i32 = arith.constant 15 : i32
      %95 = vector.broadcast %c15_i32 : i32 to vector<1x128xi32>
      %96 = arith.cmpi ne, %28, %95 : vector<1x128xi32>
      %cst_70 = arith.constant 0.000000e+00 : f32
      %97 = vector.shape_cast %96 : vector<1x128xi1> to vector<1x128xi1>
      %98 = vector.broadcast %97 : vector<1x128xi1> to vector<64x128xi1>
      %99 = vector.broadcast %cst_70 : f32 to vector<64x128xf32>
      %100 = arith.select %98, %94, %99 : vector<64x128xi1>, vector<64x128xf32>
      %101 = arith.addf %75, %100 : vector<64x128xf32>
      %102 = arith.index_cast %arg2 : i32 to index
      %c0_71 = arith.constant 0 : index
      %c0_72 = arith.constant 0 : index
      %103 = vector.load %arg12[%102, %c0_71, %c0_72] : memref<2x64x128xf32, #tpu.memory_space<vmem>>, vector<1x64x128xf32>
      %104 = vector.shape_cast %103 : vector<1x64x128xf32> to vector<64x128xf32>
      %105 = vector.shape_cast %101 : vector<64x128xf32> to vector<1x64x128xf32>
      tpu.vector_store %arg12[%102, %c0_71, %c0_72], %105 {strides = array<i32>} : memref<2x64x128xf32, #tpu.memory_space<vmem>>, vector<1x64x128xf32>,
      %c0_73 = arith.constant 0 : index
      %c0_74 = arith.constant 0 : index
      %106 = vector.load %arg13[%c0_73, %c0_74] : memref<64x1xf32, #tpu.memory_space<vmem>>, vector<64x1xf32>
      %cst_75 = arith.constant dense<0.000000e+00> : vector<64xf32>
      %107 = vector.multi_reduction <add>, %101, %cst_75 [1] : vector<64x128xf32> to vector<64xf32>
      %108 = vector.shape_cast %107 : vector<64xf32> to vector<64x1xf32>
      %109 = arith.addf %106, %108 : vector<64x1xf32>
      %c0_76 = arith.constant 0 : index
      %c0_77 = arith.constant 0 : index
      %110 = vector.load %arg13[%c0_76, %c0_77] : memref<64x1xf32, #tpu.memory_space<vmem>>, vector<64x1xf32>
      tpu.vector_store %arg13[%c0_76, %c0_77], %109 {strides = array<i32>} : memref<64x1xf32, #tpu.memory_space<vmem>>, vector<64x1xf32>,
      %c0_78 = arith.constant 0 : index
      %c0_79 = arith.constant 0 : index
      %111 = vector.load %arg14[%c0_78, %c0_79] : memref<64x1xf32, #tpu.memory_space<vmem>>, vector<64x1xf32>
      %112 = arith.mulf %101, %101 : vector<64x128xf32>
      %cst_80 = arith.constant dense<0.000000e+00> : vector<64xf32>
      %113 = vector.multi_reduction <add>, %112, %cst_80 [1] : vector<64x128xf32> to vector<64xf32>
      %114 = vector.shape_cast %113 : vector<64xf32> to vector<64x1xf32>
      %115 = arith.addf %111, %114 : vector<64x1xf32>
      %c0_81 = arith.constant 0 : index
      %c0_82 = arith.constant 0 : index
      %116 = vector.load %arg14[%c0_81, %c0_82] : memref<64x1xf32, #tpu.memory_space<vmem>>, vector<64x1xf32>
      tpu.vector_store %arg14[%c0_81, %c0_82], %115 {strides = array<i32>} : memref<64x1xf32, #tpu.memory_space<vmem>>, vector<64x1xf32>,
    } else {
    }
    %c1_i32 = arith.constant 1 : i32
    %3 = arith.cmpi eq, %arg1, %c1_i32 : i32
    %4 = arith.extui %3 : i1 to i32
    %c0_i32_1 = arith.constant 0 : i32
    %5 = arith.cmpi ne, %4, %c0_i32_1 : i32
    scf.if %5 {
      %c0_i32_2 = arith.constant 0 : i32
      %6 = arith.cmpi eq, %arg2, %c0_i32_2 : i32
      %7 = arith.extui %6 : i1 to i32
      %c0_i32_3 = arith.constant 0 : i32
      %8 = arith.cmpi ne, %7, %c0_i32_3 : i32
      scf.if %8 {
        %c0_27 = arith.constant 0 : index
        %c0_28 = arith.constant 0 : index
        %71 = vector.load %arg5[%c0_27, %c0_28] : memref<64x1xf32, #tpu.memory_space<vmem>>, vector<64x1xf32>
        %c0_29 = arith.constant 0 : index
        %c0_30 = arith.constant 0 : index
        %72 = vector.load %arg13[%c0_29, %c0_30] : memref<64x1xf32, #tpu.memory_space<vmem>>, vector<64x1xf32>
        %cst_31 = arith.constant 2.560000e+02 : f32
        %73 = vector.broadcast %cst_31 : f32 to vector<64x1xf32>
        %74 = arith.mulf %73, %71 : vector<64x1xf32>
        %75 = arith.addf %72, %74 : vector<64x1xf32>
        %c0_32 = arith.constant 0 : index
        %c0_33 = arith.constant 0 : index
        %76 = vector.load %arg14[%c0_32, %c0_33] : memref<64x1xf32, #tpu.memory_space<vmem>>, vector<64x1xf32>
        %cst_34 = arith.constant 2.000000e+00 : f32
        %77 = vector.broadcast %cst_34 : f32 to vector<64x1xf32>
        %78 = arith.mulf %77, %71 : vector<64x1xf32>
        %79 = arith.mulf %78, %72 : vector<64x1xf32>
        %80 = arith.addf %76, %79 : vector<64x1xf32>
        %81 = arith.mulf %71, %71 : vector<64x1xf32>
        %cst_35 = arith.constant 2.560000e+02 : f32
        %82 = vector.broadcast %cst_35 : f32 to vector<64x1xf32>
        %83 = arith.mulf %82, %81 : vector<64x1xf32>
        %84 = arith.addf %80, %83 : vector<64x1xf32>
        %85 = tpu.iota {dimensions = array<i32: 0>} : vector<64x1xi32>
        %cst_36 = arith.constant 0.000000e+00 : f32
        %86 = vector.broadcast %cst_36 : f32 to vector<64x1xf32>
        %cst_37 = arith.constant 0.000000e+00 : f32
        %87 = vector.broadcast %cst_37 : f32 to vector<64x1xf32>
        %c0_i32_38 = arith.constant 0 : i32
        %88 = vector.broadcast %c0_i32_38 : i32 to vector<64x1xi32>
        %89 = arith.cmpi sge, %85, %88 : vector<64x1xi32>
        %c4_i32 = arith.constant 4 : i32
        %90 = vector.broadcast %c4_i32 : i32 to vector<64x1xi32>
        %91 = arith.cmpi slt, %85, %90 : vector<64x1xi32>
        %92 = arith.andi %89, %91 : vector<64x1xi1>
        %cst_39 = arith.constant 0.000000e+00 : f32
        %93 = vector.broadcast %cst_39 : f32 to vector<64x1xf32>
        %94 = arith.select %92, %75, %93 : vector<64x1xi1>, vector<64x1xf32>
        %95 = vector.shape_cast %94 : vector<64x1xf32> to vector<1x64x1xf32>
        %cst_40 = arith.constant dense<0.000000e+00> : vector<1xf32>
        %96 = vector.multi_reduction <add>, %95, %cst_40 [1, 2] : vector<1x64x1xf32> to vector<1xf32>
        %97 = vector.shape_cast %96 : vector<1xf32> to vector<1x1x1xf32>
        %98 = vector.extract %97[0, 0, 0] : f32 from vector<1x1x1xf32>
        %99 = vector.broadcast %98 : f32 to vector<1x1xf32>
        %cst_41 = arith.constant 0.000000e+00 : f32
        %100 = vector.broadcast %cst_41 : f32 to vector<64x1xf32>
        %101 = arith.select %92, %84, %100 : vector<64x1xi1>, vector<64x1xf32>
        %102 = vector.shape_cast %101 : vector<64x1xf32> to vector<1x64x1xf32>
        %cst_42 = arith.constant dense<0.000000e+00> : vector<1xf32>
        %103 = vector.multi_reduction <add>, %102, %cst_42 [1, 2] : vector<1x64x1xf32> to vector<1xf32>
        %104 = vector.shape_cast %103 : vector<1xf32> to vector<1x1x1xf32>
        %105 = vector.extract %104[0, 0, 0] : f32 from vector<1x1x1xf32>
        %106 = vector.broadcast %105 : f32 to vector<1x1xf32>
        %cst_43 = arith.constant 1.024000e+03 : f32
        %107 = vector.broadcast %cst_43 : f32 to vector<1x1xf32>
        %108 = arith.divf %99, %107 : vector<1x1xf32>
        %cst_44 = arith.constant 1.024000e+03 : f32
        %109 = vector.broadcast %cst_44 : f32 to vector<1x1xf32>
        %110 = arith.divf %106, %109 : vector<1x1xf32>
        %111 = arith.mulf %108, %108 : vector<1x1xf32>
        %112 = arith.subf %110, %111 : vector<1x1xf32>
        %cst_45 = arith.constant 0.000000e+00 : f32
        %113 = vector.broadcast %cst_45 : f32 to vector<1x1xf32>
        %114 = arith.maximumf %112, %113 : vector<1x1xf32>
        %cst_46 = arith.constant 9.99999974E-6 : f32
        %115 = vector.broadcast %cst_46 : f32 to vector<1x1xf32>
        %116 = arith.addf %114, %115 : vector<1x1xf32>
        %117 = math.rsqrt %116 : vector<1x1xf32>
        %cst_47 = arith.constant 0.000000e+00 : f32
        %118 = vector.shape_cast %108 : vector<1x1xf32> to vector<1x1xf32>
        %119 = vector.broadcast %118 : vector<1x1xf32> to vector<64x1xf32>
        %120 = vector.broadcast %cst_47 : f32 to vector<64x1xf32>
        %121 = arith.select %92, %119, %120 : vector<64x1xi1>, vector<64x1xf32>
        %122 = arith.addf %86, %121 : vector<64x1xf32>
        %cst_48 = arith.constant 0.000000e+00 : f32
        %123 = vector.shape_cast %117 : vector<1x1xf32> to vector<1x1xf32>
        %124 = vector.broadcast %123 : vector<1x1xf32> to vector<64x1xf32>
        %125 = vector.broadcast %cst_48 : f32 to vector<64x1xf32>
        %126 = arith.select %92, %124, %125 : vector<64x1xi1>, vector<64x1xf32>
        %127 = arith.addf %87, %126 : vector<64x1xf32>
        %c4_i32_49 = arith.constant 4 : i32
        %128 = vector.broadcast %c4_i32_49 : i32 to vector<64x1xi32>
        %129 = arith.cmpi sge, %85, %128 : vector<64x1xi32>
        %c8_i32 = arith.constant 8 : i32
        %130 = vector.broadcast %c8_i32 : i32 to vector<64x1xi32>
        %131 = arith.cmpi slt, %85, %130 : vector<64x1xi32>
        %132 = arith.andi %129, %131 : vector<64x1xi1>
        %cst_50 = arith.constant 0.000000e+00 : f32
        %133 = vector.broadcast %cst_50 : f32 to vector<64x1xf32>
        %134 = arith.select %132, %75, %133 : vector<64x1xi1>, vector<64x1xf32>
        %135 = vector.shape_cast %134 : vector<64x1xf32> to vector<1x64x1xf32>
        %cst_51 = arith.constant dense<0.000000e+00> : vector<1xf32>
        %136 = vector.multi_reduction <add>, %135, %cst_51 [1, 2] : vector<1x64x1xf32> to vector<1xf32>
        %137 = vector.shape_cast %136 : vector<1xf32> to vector<1x1x1xf32>
        %138 = vector.extract %137[0, 0, 0] : f32 from vector<1x1x1xf32>
        %139 = vector.broadcast %138 : f32 to vector<1x1xf32>
        %cst_52 = arith.constant 0.000000e+00 : f32
        %140 = vector.broadcast %cst_52 : f32 to vector<64x1xf32>
        %141 = arith.select %132, %84, %140 : vector<64x1xi1>, vector<64x1xf32>
        %142 = vector.shape_cast %141 : vector<64x1xf32> to vector<1x64x1xf32>
        %cst_53 = arith.constant dense<0.000000e+00> : vector<1xf32>
        %143 = vector.multi_reduction <add>, %142, %cst_53 [1, 2] : vector<1x64x1xf32> to vector<1xf32>
        %144 = vector.shape_cast %143 : vector<1xf32> to vector<1x1x1xf32>
        %145 = vector.extract %144[0, 0, 0] : f32 from vector<1x1x1xf32>
        %146 = vector.broadcast %145 : f32 to vector<1x1xf32>
        %cst_54 = arith.constant 1.024000e+03 : f32
        %147 = vector.broadcast %cst_54 : f32 to vector<1x1xf32>
        %148 = arith.divf %139, %147 : vector<1x1xf32>
        %cst_55 = arith.constant 1.024000e+03 : f32
        %149 = vector.broadcast %cst_55 : f32 to vector<1x1xf32>
        %150 = arith.divf %146, %149 : vector<1x1xf32>
        %151 = arith.mulf %148, %148 : vector<1x1xf32>
        %152 = arith.subf %150, %151 : vector<1x1xf32>
        %cst_56 = arith.constant 0.000000e+00 : f32
        %153 = vector.broadcast %cst_56 : f32 to vector<1x1xf32>
        %154 = arith.maximumf %152, %153 : vector<1x1xf32>
        %cst_57 = arith.constant 9.99999974E-6 : f32
        %155 = vector.broadcast %cst_57 : f32 to vector<1x1xf32>
        %156 = arith.addf %154, %155 : vector<1x1xf32>
        %157 = math.rsqrt %156 : vector<1x1xf32>
        %cst_58 = arith.constant 0.000000e+00 : f32
        %158 = vector.shape_cast %148 : vector<1x1xf32> to vector<1x1xf32>
        %159 = vector.broadcast %158 : vector<1x1xf32> to vector<64x1xf32>
        %160 = vector.broadcast %cst_58 : f32 to vector<64x1xf32>
        %161 = arith.select %132, %159, %160 : vector<64x1xi1>, vector<64x1xf32>
        %162 = arith.addf %122, %161 : vector<64x1xf32>
        %cst_59 = arith.constant 0.000000e+00 : f32
        %163 = vector.shape_cast %157 : vector<1x1xf32> to vector<1x1xf32>
        %164 = vector.broadcast %163 : vector<1x1xf32> to vector<64x1xf32>
        %165 = vector.broadcast %cst_59 : f32 to vector<64x1xf32>
        %166 = arith.select %132, %164, %165 : vector<64x1xi1>, vector<64x1xf32>
        %167 = arith.addf %127, %166 : vector<64x1xf32>
        %c8_i32_60 = arith.constant 8 : i32
        %168 = vector.broadcast %c8_i32_60 : i32 to vector<64x1xi32>
        %169 = arith.cmpi sge, %85, %168 : vector<64x1xi32>
        %c12_i32 = arith.constant 12 : i32
        %170 = vector.broadcast %c12_i32 : i32 to vector<64x1xi32>
        %171 = arith.cmpi slt, %85, %170 : vector<64x1xi32>
        %172 = arith.andi %169, %171 : vector<64x1xi1>
        %cst_61 = arith.constant 0.000000e+00 : f32
        %173 = vector.broadcast %cst_61 : f32 to vector<64x1xf32>
        %174 = arith.select %172, %75, %173 : vector<64x1xi1>, vector<64x1xf32>
        %175 = vector.shape_cast %174 : vector<64x1xf32> to vector<1x64x1xf32>
        %cst_62 = arith.constant dense<0.000000e+00> : vector<1xf32>
        %176 = vector.multi_reduction <add>, %175, %cst_62 [1, 2] : vector<1x64x1xf32> to vector<1xf32>
        %177 = vector.shape_cast %176 : vector<1xf32> to vector<1x1x1xf32>
        %178 = vector.extract %177[0, 0, 0] : f32 from vector<1x1x1xf32>
        %179 = vector.broadcast %178 : f32 to vector<1x1xf32>
        %cst_63 = arith.constant 0.000000e+00 : f32
        %180 = vector.broadcast %cst_63 : f32 to vector<64x1xf32>
        %181 = arith.select %172, %84, %180 : vector<64x1xi1>, vector<64x1xf32>
        %182 = vector.shape_cast %181 : vector<64x1xf32> to vector<1x64x1xf32>
        %cst_64 = arith.constant dense<0.000000e+00> : vector<1xf32>
        %183 = vector.multi_reduction <add>, %182, %cst_64 [1, 2] : vector<1x64x1xf32> to vector<1xf32>
        %184 = vector.shape_cast %183 : vector<1xf32> to vector<1x1x1xf32>
        %185 = vector.extract %184[0, 0, 0] : f32 from vector<1x1x1xf32>
        %186 = vector.broadcast %185 : f32 to vector<1x1xf32>
        %cst_65 = arith.constant 1.024000e+03 : f32
        %187 = vector.broadcast %cst_65 : f32 to vector<1x1xf32>
        %188 = arith.divf %179, %187 : vector<1x1xf32>
        %cst_66 = arith.constant 1.024000e+03 : f32
        %189 = vector.broadcast %cst_66 : f32 to vector<1x1xf32>
        %190 = arith.divf %186, %189 : vector<1x1xf32>
        %191 = arith.mulf %188, %188 : vector<1x1xf32>
        %192 = arith.subf %190, %191 : vector<1x1xf32>
        %cst_67 = arith.constant 0.000000e+00 : f32
        %193 = vector.broadcast %cst_67 : f32 to vector<1x1xf32>
        %194 = arith.maximumf %192, %193 : vector<1x1xf32>
        %cst_68 = arith.constant 9.99999974E-6 : f32
        %195 = vector.broadcast %cst_68 : f32 to vector<1x1xf32>
        %196 = arith.addf %194, %195 : vector<1x1xf32>
        %197 = math.rsqrt %196 : vector<1x1xf32>
        %cst_69 = arith.constant 0.000000e+00 : f32
        %198 = vector.shape_cast %188 : vector<1x1xf32> to vector<1x1xf32>
        %199 = vector.broadcast %198 : vector<1x1xf32> to vector<64x1xf32>
        %200 = vector.broadcast %cst_69 : f32 to vector<64x1xf32>
        %201 = arith.select %172, %199, %200 : vector<64x1xi1>, vector<64x1xf32>
        %202 = arith.addf %162, %201 : vector<64x1xf32>
        %cst_70 = arith.constant 0.000000e+00 : f32
        %203 = vector.shape_cast %197 : vector<1x1xf32> to vector<1x1xf32>
        %204 = vector.broadcast %203 : vector<1x1xf32> to vector<64x1xf32>
        %205 = vector.broadcast %cst_70 : f32 to vector<64x1xf32>
        %206 = arith.select %172, %204, %205 : vector<64x1xi1>, vector<64x1xf32>
        %207 = arith.addf %167, %206 : vector<64x1xf32>
        %c12_i32_71 = arith.constant 12 : i32
        %208 = vector.broadcast %c12_i32_71 : i32 to vector<64x1xi32>
        %209 = arith.cmpi sge, %85, %208 : vector<64x1xi32>
        %c16_i32 = arith.constant 16 : i32
        %210 = vector.broadcast %c16_i32 : i32 to vector<64x1xi32>
        %211 = arith.cmpi slt, %85, %210 : vector<64x1xi32>
        %212 = arith.andi %209, %211 : vector<64x1xi1>
        %cst_72 = arith.constant 0.000000e+00 : f32
        %213 = vector.broadcast %cst_72 : f32 to vector<64x1xf32>
        %214 = arith.select %212, %75, %213 : vector<64x1xi1>, vector<64x1xf32>
        %215 = vector.shape_cast %214 : vector<64x1xf32> to vector<1x64x1xf32>
        %cst_73 = arith.constant dense<0.000000e+00> : vector<1xf32>
        %216 = vector.multi_reduction <add>, %215, %cst_73 [1, 2] : vector<1x64x1xf32> to vector<1xf32>
        %217 = vector.shape_cast %216 : vector<1xf32> to vector<1x1x1xf32>
        %218 = vector.extract %217[0, 0, 0] : f32 from vector<1x1x1xf32>
        %219 = vector.broadcast %218 : f32 to vector<1x1xf32>
        %cst_74 = arith.constant 0.000000e+00 : f32
        %220 = vector.broadcast %cst_74 : f32 to vector<64x1xf32>
        %221 = arith.select %212, %84, %220 : vector<64x1xi1>, vector<64x1xf32>
        %222 = vector.shape_cast %221 : vector<64x1xf32> to vector<1x64x1xf32>
        %cst_75 = arith.constant dense<0.000000e+00> : vector<1xf32>
        %223 = vector.multi_reduction <add>, %222, %cst_75 [1, 2] : vector<1x64x1xf32> to vector<1xf32>
        %224 = vector.shape_cast %223 : vector<1xf32> to vector<1x1x1xf32>
        %225 = vector.extract %224[0, 0, 0] : f32 from vector<1x1x1xf32>
        %226 = vector.broadcast %225 : f32 to vector<1x1xf32>
        %cst_76 = arith.constant 1.024000e+03 : f32
        %227 = vector.broadcast %cst_76 : f32 to vector<1x1xf32>
        %228 = arith.divf %219, %227 : vector<1x1xf32>
        %cst_77 = arith.constant 1.024000e+03 : f32
        %229 = vector.broadcast %cst_77 : f32 to vector<1x1xf32>
        %230 = arith.divf %226, %229 : vector<1x1xf32>
        %231 = arith.mulf %228, %228 : vector<1x1xf32>
        %232 = arith.subf %230, %231 : vector<1x1xf32>
        %cst_78 = arith.constant 0.000000e+00 : f32
        %233 = vector.broadcast %cst_78 : f32 to vector<1x1xf32>
        %234 = arith.maximumf %232, %233 : vector<1x1xf32>
        %cst_79 = arith.constant 9.99999974E-6 : f32
        %235 = vector.broadcast %cst_79 : f32 to vector<1x1xf32>
        %236 = arith.addf %234, %235 : vector<1x1xf32>
        %237 = math.rsqrt %236 : vector<1x1xf32>
        %cst_80 = arith.constant 0.000000e+00 : f32
        %238 = vector.shape_cast %228 : vector<1x1xf32> to vector<1x1xf32>
        %239 = vector.broadcast %238 : vector<1x1xf32> to vector<64x1xf32>
        %240 = vector.broadcast %cst_80 : f32 to vector<64x1xf32>
        %241 = arith.select %212, %239, %240 : vector<64x1xi1>, vector<64x1xf32>
        %242 = arith.addf %202, %241 : vector<64x1xf32>
        %cst_81 = arith.constant 0.000000e+00 : f32
        %243 = vector.shape_cast %237 : vector<1x1xf32> to vector<1x1xf32>
        %244 = vector.broadcast %243 : vector<1x1xf32> to vector<64x1xf32>
        %245 = vector.broadcast %cst_81 : f32 to vector<64x1xf32>
        %246 = arith.select %212, %244, %245 : vector<64x1xi1>, vector<64x1xf32>
        %247 = arith.addf %207, %246 : vector<64x1xf32>
        %c16_i32_82 = arith.constant 16 : i32
        %248 = vector.broadcast %c16_i32_82 : i32 to vector<64x1xi32>
        %249 = arith.cmpi sge, %85, %248 : vector<64x1xi32>
        %c20_i32 = arith.constant 20 : i32
        %250 = vector.broadcast %c20_i32 : i32 to vector<64x1xi32>
        %251 = arith.cmpi slt, %85, %250 : vector<64x1xi32>
        %252 = arith.andi %249, %251 : vector<64x1xi1>
        %cst_83 = arith.constant 0.000000e+00 : f32
        %253 = vector.broadcast %cst_83 : f32 to vector<64x1xf32>
        %254 = arith.select %252, %75, %253 : vector<64x1xi1>, vector<64x1xf32>
        %255 = vector.shape_cast %254 : vector<64x1xf32> to vector<1x64x1xf32>
        %cst_84 = arith.constant dense<0.000000e+00> : vector<1xf32>
        %256 = vector.multi_reduction <add>, %255, %cst_84 [1, 2] : vector<1x64x1xf32> to vector<1xf32>
        %257 = vector.shape_cast %256 : vector<1xf32> to vector<1x1x1xf32>
        %258 = vector.extract %257[0, 0, 0] : f32 from vector<1x1x1xf32>
        %259 = vector.broadcast %258 : f32 to vector<1x1xf32>
        %cst_85 = arith.constant 0.000000e+00 : f32
        %260 = vector.broadcast %cst_85 : f32 to vector<64x1xf32>
        %261 = arith.select %252, %84, %260 : vector<64x1xi1>, vector<64x1xf32>
        %262 = vector.shape_cast %261 : vector<64x1xf32> to vector<1x64x1xf32>
        %cst_86 = arith.constant dense<0.000000e+00> : vector<1xf32>
        %263 = vector.multi_reduction <add>, %262, %cst_86 [1, 2] : vector<1x64x1xf32> to vector<1xf32>
        %264 = vector.shape_cast %263 : vector<1xf32> to vector<1x1x1xf32>
        %265 = vector.extract %264[0, 0, 0] : f32 from vector<1x1x1xf32>
        %266 = vector.broadcast %265 : f32 to vector<1x1xf32>
        %cst_87 = arith.constant 1.024000e+03 : f32
        %267 = vector.broadcast %cst_87 : f32 to vector<1x1xf32>
        %268 = arith.divf %259, %267 : vector<1x1xf32>
        %cst_88 = arith.constant 1.024000e+03 : f32
        %269 = vector.broadcast %cst_88 : f32 to vector<1x1xf32>
        %270 = arith.divf %266, %269 : vector<1x1xf32>
        %271 = arith.mulf %268, %268 : vector<1x1xf32>
        %272 = arith.subf %270, %271 : vector<1x1xf32>
        %cst_89 = arith.constant 0.000000e+00 : f32
        %273 = vector.broadcast %cst_89 : f32 to vector<1x1xf32>
        %274 = arith.maximumf %272, %273 : vector<1x1xf32>
        %cst_90 = arith.constant 9.99999974E-6 : f32
        %275 = vector.broadcast %cst_90 : f32 to vector<1x1xf32>
        %276 = arith.addf %274, %275 : vector<1x1xf32>
        %277 = math.rsqrt %276 : vector<1x1xf32>
        %cst_91 = arith.constant 0.000000e+00 : f32
        %278 = vector.shape_cast %268 : vector<1x1xf32> to vector<1x1xf32>
        %279 = vector.broadcast %278 : vector<1x1xf32> to vector<64x1xf32>
        %280 = vector.broadcast %cst_91 : f32 to vector<64x1xf32>
        %281 = arith.select %252, %279, %280 : vector<64x1xi1>, vector<64x1xf32>
        %282 = arith.addf %242, %281 : vector<64x1xf32>
        %cst_92 = arith.constant 0.000000e+00 : f32
        %283 = vector.shape_cast %277 : vector<1x1xf32> to vector<1x1xf32>
        %284 = vector.broadcast %283 : vector<1x1xf32> to vector<64x1xf32>
        %285 = vector.broadcast %cst_92 : f32 to vector<64x1xf32>
        %286 = arith.select %252, %284, %285 : vector<64x1xi1>, vector<64x1xf32>
        %287 = arith.addf %247, %286 : vector<64x1xf32>
        %c20_i32_93 = arith.constant 20 : i32
        %288 = vector.broadcast %c20_i32_93 : i32 to vector<64x1xi32>
        %289 = arith.cmpi sge, %85, %288 : vector<64x1xi32>
        %c24_i32 = arith.constant 24 : i32
        %290 = vector.broadcast %c24_i32 : i32 to vector<64x1xi32>
        %291 = arith.cmpi slt, %85, %290 : vector<64x1xi32>
        %292 = arith.andi %289, %291 : vector<64x1xi1>
        %cst_94 = arith.constant 0.000000e+00 : f32
        %293 = vector.broadcast %cst_94 : f32 to vector<64x1xf32>
        %294 = arith.select %292, %75, %293 : vector<64x1xi1>, vector<64x1xf32>
        %295 = vector.shape_cast %294 : vector<64x1xf32> to vector<1x64x1xf32>
        %cst_95 = arith.constant dense<0.000000e+00> : vector<1xf32>
        %296 = vector.multi_reduction <add>, %295, %cst_95 [1, 2] : vector<1x64x1xf32> to vector<1xf32>
        %297 = vector.shape_cast %296 : vector<1xf32> to vector<1x1x1xf32>
        %298 = vector.extract %297[0, 0, 0] : f32 from vector<1x1x1xf32>
        %299 = vector.broadcast %298 : f32 to vector<1x1xf32>
        %cst_96 = arith.constant 0.000000e+00 : f32
        %300 = vector.broadcast %cst_96 : f32 to vector<64x1xf32>
        %301 = arith.select %292, %84, %300 : vector<64x1xi1>, vector<64x1xf32>
        %302 = vector.shape_cast %301 : vector<64x1xf32> to vector<1x64x1xf32>
        %cst_97 = arith.constant dense<0.000000e+00> : vector<1xf32>
        %303 = vector.multi_reduction <add>, %302, %cst_97 [1, 2] : vector<1x64x1xf32> to vector<1xf32>
        %304 = vector.shape_cast %303 : vector<1xf32> to vector<1x1x1xf32>
        %305 = vector.extract %304[0, 0, 0] : f32 from vector<1x1x1xf32>
        %306 = vector.broadcast %305 : f32 to vector<1x1xf32>
        %cst_98 = arith.constant 1.024000e+03 : f32
        %307 = vector.broadcast %cst_98 : f32 to vector<1x1xf32>
        %308 = arith.divf %299, %307 : vector<1x1xf32>
        %cst_99 = arith.constant 1.024000e+03 : f32
        %309 = vector.broadcast %cst_99 : f32 to vector<1x1xf32>
        %310 = arith.divf %306, %309 : vector<1x1xf32>
        %311 = arith.mulf %308, %308 : vector<1x1xf32>
        %312 = arith.subf %310, %311 : vector<1x1xf32>
        %cst_100 = arith.constant 0.000000e+00 : f32
        %313 = vector.broadcast %cst_100 : f32 to vector<1x1xf32>
        %314 = arith.maximumf %312, %313 : vector<1x1xf32>
        %cst_101 = arith.constant 9.99999974E-6 : f32
        %315 = vector.broadcast %cst_101 : f32 to vector<1x1xf32>
        %316 = arith.addf %314, %315 : vector<1x1xf32>
        %317 = math.rsqrt %316 : vector<1x1xf32>
        %cst_102 = arith.constant 0.000000e+00 : f32
        %318 = vector.shape_cast %308 : vector<1x1xf32> to vector<1x1xf32>
        %319 = vector.broadcast %318 : vector<1x1xf32> to vector<64x1xf32>
        %320 = vector.broadcast %cst_102 : f32 to vector<64x1xf32>
        %321 = arith.select %292, %319, %320 : vector<64x1xi1>, vector<64x1xf32>
        %322 = arith.addf %282, %321 : vector<64x1xf32>
        %cst_103 = arith.constant 0.000000e+00 : f32
        %323 = vector.shape_cast %317 : vector<1x1xf32> to vector<1x1xf32>
        %324 = vector.broadcast %323 : vector<1x1xf32> to vector<64x1xf32>
        %325 = vector.broadcast %cst_103 : f32 to vector<64x1xf32>
        %326 = arith.select %292, %324, %325 : vector<64x1xi1>, vector<64x1xf32>
        %327 = arith.addf %287, %326 : vector<64x1xf32>
        %c24_i32_104 = arith.constant 24 : i32
        %328 = vector.broadcast %c24_i32_104 : i32 to vector<64x1xi32>
        %329 = arith.cmpi sge, %85, %328 : vector<64x1xi32>
        %c28_i32 = arith.constant 28 : i32
        %330 = vector.broadcast %c28_i32 : i32 to vector<64x1xi32>
        %331 = arith.cmpi slt, %85, %330 : vector<64x1xi32>
        %332 = arith.andi %329, %331 : vector<64x1xi1>
        %cst_105 = arith.constant 0.000000e+00 : f32
        %333 = vector.broadcast %cst_105 : f32 to vector<64x1xf32>
        %334 = arith.select %332, %75, %333 : vector<64x1xi1>, vector<64x1xf32>
        %335 = vector.shape_cast %334 : vector<64x1xf32> to vector<1x64x1xf32>
        %cst_106 = arith.constant dense<0.000000e+00> : vector<1xf32>
        %336 = vector.multi_reduction <add>, %335, %cst_106 [1, 2] : vector<1x64x1xf32> to vector<1xf32>
        %337 = vector.shape_cast %336 : vector<1xf32> to vector<1x1x1xf32>
        %338 = vector.extract %337[0, 0, 0] : f32 from vector<1x1x1xf32>
        %339 = vector.broadcast %338 : f32 to vector<1x1xf32>
        %cst_107 = arith.constant 0.000000e+00 : f32
        %340 = vector.broadcast %cst_107 : f32 to vector<64x1xf32>
        %341 = arith.select %332, %84, %340 : vector<64x1xi1>, vector<64x1xf32>
        %342 = vector.shape_cast %341 : vector<64x1xf32> to vector<1x64x1xf32>
        %cst_108 = arith.constant dense<0.000000e+00> : vector<1xf32>
        %343 = vector.multi_reduction <add>, %342, %cst_108 [1, 2] : vector<1x64x1xf32> to vector<1xf32>
        %344 = vector.shape_cast %343 : vector<1xf32> to vector<1x1x1xf32>
        %345 = vector.extract %344[0, 0, 0] : f32 from vector<1x1x1xf32>
        %346 = vector.broadcast %345 : f32 to vector<1x1xf32>
        %cst_109 = arith.constant 1.024000e+03 : f32
        %347 = vector.broadcast %cst_109 : f32 to vector<1x1xf32>
        %348 = arith.divf %339, %347 : vector<1x1xf32>
        %cst_110 = arith.constant 1.024000e+03 : f32
        %349 = vector.broadcast %cst_110 : f32 to vector<1x1xf32>
        %350 = arith.divf %346, %349 : vector<1x1xf32>
        %351 = arith.mulf %348, %348 : vector<1x1xf32>
        %352 = arith.subf %350, %351 : vector<1x1xf32>
        %cst_111 = arith.constant 0.000000e+00 : f32
        %353 = vector.broadcast %cst_111 : f32 to vector<1x1xf32>
        %354 = arith.maximumf %352, %353 : vector<1x1xf32>
        %cst_112 = arith.constant 9.99999974E-6 : f32
        %355 = vector.broadcast %cst_112 : f32 to vector<1x1xf32>
        %356 = arith.addf %354, %355 : vector<1x1xf32>
        %357 = math.rsqrt %356 : vector<1x1xf32>
        %cst_113 = arith.constant 0.000000e+00 : f32
        %358 = vector.shape_cast %348 : vector<1x1xf32> to vector<1x1xf32>
        %359 = vector.broadcast %358 : vector<1x1xf32> to vector<64x1xf32>
        %360 = vector.broadcast %cst_113 : f32 to vector<64x1xf32>
        %361 = arith.select %332, %359, %360 : vector<64x1xi1>, vector<64x1xf32>
        %362 = arith.addf %322, %361 : vector<64x1xf32>
        %cst_114 = arith.constant 0.000000e+00 : f32
        %363 = vector.shape_cast %357 : vector<1x1xf32> to vector<1x1xf32>
        %364 = vector.broadcast %363 : vector<1x1xf32> to vector<64x1xf32>
        %365 = vector.broadcast %cst_114 : f32 to vector<64x1xf32>
        %366 = arith.select %332, %364, %365 : vector<64x1xi1>, vector<64x1xf32>
        %367 = arith.addf %327, %366 : vector<64x1xf32>
        %c28_i32_115 = arith.constant 28 : i32
        %368 = vector.broadcast %c28_i32_115 : i32 to vector<64x1xi32>
        %369 = arith.cmpi sge, %85, %368 : vector<64x1xi32>
        %c32_i32 = arith.constant 32 : i32
        %370 = vector.broadcast %c32_i32 : i32 to vector<64x1xi32>
        %371 = arith.cmpi slt, %85, %370 : vector<64x1xi32>
        %372 = arith.andi %369, %371 : vector<64x1xi1>
        %cst_116 = arith.constant 0.000000e+00 : f32
        %373 = vector.broadcast %cst_116 : f32 to vector<64x1xf32>
        %374 = arith.select %372, %75, %373 : vector<64x1xi1>, vector<64x1xf32>
        %375 = vector.shape_cast %374 : vector<64x1xf32> to vector<1x64x1xf32>
        %cst_117 = arith.constant dense<0.000000e+00> : vector<1xf32>
        %376 = vector.multi_reduction <add>, %375, %cst_117 [1, 2] : vector<1x64x1xf32> to vector<1xf32>
        %377 = vector.shape_cast %376 : vector<1xf32> to vector<1x1x1xf32>
        %378 = vector.extract %377[0, 0, 0] : f32 from vector<1x1x1xf32>
        %379 = vector.broadcast %378 : f32 to vector<1x1xf32>
        %cst_118 = arith.constant 0.000000e+00 : f32
        %380 = vector.broadcast %cst_118 : f32 to vector<64x1xf32>
        %381 = arith.select %372, %84, %380 : vector<64x1xi1>, vector<64x1xf32>
        %382 = vector.shape_cast %381 : vector<64x1xf32> to vector<1x64x1xf32>
        %cst_119 = arith.constant dense<0.000000e+00> : vector<1xf32>
        %383 = vector.multi_reduction <add>, %382, %cst_119 [1, 2] : vector<1x64x1xf32> to vector<1xf32>
        %384 = vector.shape_cast %383 : vector<1xf32> to vector<1x1x1xf32>
        %385 = vector.extract %384[0, 0, 0] : f32 from vector<1x1x1xf32>
        %386 = vector.broadcast %385 : f32 to vector<1x1xf32>
        %cst_120 = arith.constant 1.024000e+03 : f32
        %387 = vector.broadcast %cst_120 : f32 to vector<1x1xf32>
        %388 = arith.divf %379, %387 : vector<1x1xf32>
        %cst_121 = arith.constant 1.024000e+03 : f32
        %389 = vector.broadcast %cst_121 : f32 to vector<1x1xf32>
        %390 = arith.divf %386, %389 : vector<1x1xf32>
        %391 = arith.mulf %388, %388 : vector<1x1xf32>
        %392 = arith.subf %390, %391 : vector<1x1xf32>
        %cst_122 = arith.constant 0.000000e+00 : f32
        %393 = vector.broadcast %cst_122 : f32 to vector<1x1xf32>
        %394 = arith.maximumf %392, %393 : vector<1x1xf32>
        %cst_123 = arith.constant 9.99999974E-6 : f32
        %395 = vector.broadcast %cst_123 : f32 to vector<1x1xf32>
        %396 = arith.addf %394, %395 : vector<1x1xf32>
        %397 = math.rsqrt %396 : vector<1x1xf32>
        %cst_124 = arith.constant 0.000000e+00 : f32
        %398 = vector.shape_cast %388 : vector<1x1xf32> to vector<1x1xf32>
        %399 = vector.broadcast %398 : vector<1x1xf32> to vector<64x1xf32>
        %400 = vector.broadcast %cst_124 : f32 to vector<64x1xf32>
        %401 = arith.select %372, %399, %400 : vector<64x1xi1>, vector<64x1xf32>
        %402 = arith.addf %362, %401 : vector<64x1xf32>
        %cst_125 = arith.constant 0.000000e+00 : f32
        %403 = vector.shape_cast %397 : vector<1x1xf32> to vector<1x1xf32>
        %404 = vector.broadcast %403 : vector<1x1xf32> to vector<64x1xf32>
        %405 = vector.broadcast %cst_125 : f32 to vector<64x1xf32>
        %406 = arith.select %372, %404, %405 : vector<64x1xi1>, vector<64x1xf32>
        %407 = arith.addf %367, %406 : vector<64x1xf32>
        %c32_i32_126 = arith.constant 32 : i32
        %408 = vector.broadcast %c32_i32_126 : i32 to vector<64x1xi32>
        %409 = arith.cmpi sge, %85, %408 : vector<64x1xi32>
        %c36_i32 = arith.constant 36 : i32
        %410 = vector.broadcast %c36_i32 : i32 to vector<64x1xi32>
        %411 = arith.cmpi slt, %85, %410 : vector<64x1xi32>
        %412 = arith.andi %409, %411 : vector<64x1xi1>
        %cst_127 = arith.constant 0.000000e+00 : f32
        %413 = vector.broadcast %cst_127 : f32 to vector<64x1xf32>
        %414 = arith.select %412, %75, %413 : vector<64x1xi1>, vector<64x1xf32>
        %415 = vector.shape_cast %414 : vector<64x1xf32> to vector<1x64x1xf32>
        %cst_128 = arith.constant dense<0.000000e+00> : vector<1xf32>
        %416 = vector.multi_reduction <add>, %415, %cst_128 [1, 2] : vector<1x64x1xf32> to vector<1xf32>
        %417 = vector.shape_cast %416 : vector<1xf32> to vector<1x1x1xf32>
        %418 = vector.extract %417[0, 0, 0] : f32 from vector<1x1x1xf32>
        %419 = vector.broadcast %418 : f32 to vector<1x1xf32>
        %cst_129 = arith.constant 0.000000e+00 : f32
        %420 = vector.broadcast %cst_129 : f32 to vector<64x1xf32>
        %421 = arith.select %412, %84, %420 : vector<64x1xi1>, vector<64x1xf32>
        %422 = vector.shape_cast %421 : vector<64x1xf32> to vector<1x64x1xf32>
        %cst_130 = arith.constant dense<0.000000e+00> : vector<1xf32>
        %423 = vector.multi_reduction <add>, %422, %cst_130 [1, 2] : vector<1x64x1xf32> to vector<1xf32>
        %424 = vector.shape_cast %423 : vector<1xf32> to vector<1x1x1xf32>
        %425 = vector.extract %424[0, 0, 0] : f32 from vector<1x1x1xf32>
        %426 = vector.broadcast %425 : f32 to vector<1x1xf32>
        %cst_131 = arith.constant 1.024000e+03 : f32
        %427 = vector.broadcast %cst_131 : f32 to vector<1x1xf32>
        %428 = arith.divf %419, %427 : vector<1x1xf32>
        %cst_132 = arith.constant 1.024000e+03 : f32
        %429 = vector.broadcast %cst_132 : f32 to vector<1x1xf32>
        %430 = arith.divf %426, %429 : vector<1x1xf32>
        %431 = arith.mulf %428, %428 : vector<1x1xf32>
        %432 = arith.subf %430, %431 : vector<1x1xf32>
        %cst_133 = arith.constant 0.000000e+00 : f32
        %433 = vector.broadcast %cst_133 : f32 to vector<1x1xf32>
        %434 = arith.maximumf %432, %433 : vector<1x1xf32>
        %cst_134 = arith.constant 9.99999974E-6 : f32
        %435 = vector.broadcast %cst_134 : f32 to vector<1x1xf32>
        %436 = arith.addf %434, %435 : vector<1x1xf32>
        %437 = math.rsqrt %436 : vector<1x1xf32>
        %cst_135 = arith.constant 0.000000e+00 : f32
        %438 = vector.shape_cast %428 : vector<1x1xf32> to vector<1x1xf32>
        %439 = vector.broadcast %438 : vector<1x1xf32> to vector<64x1xf32>
        %440 = vector.broadcast %cst_135 : f32 to vector<64x1xf32>
        %441 = arith.select %412, %439, %440 : vector<64x1xi1>, vector<64x1xf32>
        %442 = arith.addf %402, %441 : vector<64x1xf32>
        %cst_136 = arith.constant 0.000000e+00 : f32
        %443 = vector.shape_cast %437 : vector<1x1xf32> to vector<1x1xf32>
        %444 = vector.broadcast %443 : vector<1x1xf32> to vector<64x1xf32>
        %445 = vector.broadcast %cst_136 : f32 to vector<64x1xf32>
        %446 = arith.select %412, %444, %445 : vector<64x1xi1>, vector<64x1xf32>
        %447 = arith.addf %407, %446 : vector<64x1xf32>
        %c36_i32_137 = arith.constant 36 : i32
        %448 = vector.broadcast %c36_i32_137 : i32 to vector<64x1xi32>
        %449 = arith.cmpi sge, %85, %448 : vector<64x1xi32>
        %c40_i32 = arith.constant 40 : i32
        %450 = vector.broadcast %c40_i32 : i32 to vector<64x1xi32>
        %451 = arith.cmpi slt, %85, %450 : vector<64x1xi32>
        %452 = arith.andi %449, %451 : vector<64x1xi1>
        %cst_138 = arith.constant 0.000000e+00 : f32
        %453 = vector.broadcast %cst_138 : f32 to vector<64x1xf32>
        %454 = arith.select %452, %75, %453 : vector<64x1xi1>, vector<64x1xf32>
        %455 = vector.shape_cast %454 : vector<64x1xf32> to vector<1x64x1xf32>
        %cst_139 = arith.constant dense<0.000000e+00> : vector<1xf32>
        %456 = vector.multi_reduction <add>, %455, %cst_139 [1, 2] : vector<1x64x1xf32> to vector<1xf32>
        %457 = vector.shape_cast %456 : vector<1xf32> to vector<1x1x1xf32>
        %458 = vector.extract %457[0, 0, 0] : f32 from vector<1x1x1xf32>
        %459 = vector.broadcast %458 : f32 to vector<1x1xf32>
        %cst_140 = arith.constant 0.000000e+00 : f32
        %460 = vector.broadcast %cst_140 : f32 to vector<64x1xf32>
        %461 = arith.select %452, %84, %460 : vector<64x1xi1>, vector<64x1xf32>
        %462 = vector.shape_cast %461 : vector<64x1xf32> to vector<1x64x1xf32>
        %cst_141 = arith.constant dense<0.000000e+00> : vector<1xf32>
        %463 = vector.multi_reduction <add>, %462, %cst_141 [1, 2] : vector<1x64x1xf32> to vector<1xf32>
        %464 = vector.shape_cast %463 : vector<1xf32> to vector<1x1x1xf32>
        %465 = vector.extract %464[0, 0, 0] : f32 from vector<1x1x1xf32>
        %466 = vector.broadcast %465 : f32 to vector<1x1xf32>
        %cst_142 = arith.constant 1.024000e+03 : f32
        %467 = vector.broadcast %cst_142 : f32 to vector<1x1xf32>
        %468 = arith.divf %459, %467 : vector<1x1xf32>
        %cst_143 = arith.constant 1.024000e+03 : f32
        %469 = vector.broadcast %cst_143 : f32 to vector<1x1xf32>
        %470 = arith.divf %466, %469 : vector<1x1xf32>
        %471 = arith.mulf %468, %468 : vector<1x1xf32>
        %472 = arith.subf %470, %471 : vector<1x1xf32>
        %cst_144 = arith.constant 0.000000e+00 : f32
        %473 = vector.broadcast %cst_144 : f32 to vector<1x1xf32>
        %474 = arith.maximumf %472, %473 : vector<1x1xf32>
        %cst_145 = arith.constant 9.99999974E-6 : f32
        %475 = vector.broadcast %cst_145 : f32 to vector<1x1xf32>
        %476 = arith.addf %474, %475 : vector<1x1xf32>
        %477 = math.rsqrt %476 : vector<1x1xf32>
        %cst_146 = arith.constant 0.000000e+00 : f32
        %478 = vector.shape_cast %468 : vector<1x1xf32> to vector<1x1xf32>
        %479 = vector.broadcast %478 : vector<1x1xf32> to vector<64x1xf32>
        %480 = vector.broadcast %cst_146 : f32 to vector<64x1xf32>
        %481 = arith.select %452, %479, %480 : vector<64x1xi1>, vector<64x1xf32>
        %482 = arith.addf %442, %481 : vector<64x1xf32>
        %cst_147 = arith.constant 0.000000e+00 : f32
        %483 = vector.shape_cast %477 : vector<1x1xf32> to vector<1x1xf32>
        %484 = vector.broadcast %483 : vector<1x1xf32> to vector<64x1xf32>
        %485 = vector.broadcast %cst_147 : f32 to vector<64x1xf32>
        %486 = arith.select %452, %484, %485 : vector<64x1xi1>, vector<64x1xf32>
        %487 = arith.addf %447, %486 : vector<64x1xf32>
        %c40_i32_148 = arith.constant 40 : i32
        %488 = vector.broadcast %c40_i32_148 : i32 to vector<64x1xi32>
        %489 = arith.cmpi sge, %85, %488 : vector<64x1xi32>
        %c44_i32 = arith.constant 44 : i32
        %490 = vector.broadcast %c44_i32 : i32 to vector<64x1xi32>
        %491 = arith.cmpi slt, %85, %490 : vector<64x1xi32>
        %492 = arith.andi %489, %491 : vector<64x1xi1>
        %cst_149 = arith.constant 0.000000e+00 : f32
        %493 = vector.broadcast %cst_149 : f32 to vector<64x1xf32>
        %494 = arith.select %492, %75, %493 : vector<64x1xi1>, vector<64x1xf32>
        %495 = vector.shape_cast %494 : vector<64x1xf32> to vector<1x64x1xf32>
        %cst_150 = arith.constant dense<0.000000e+00> : vector<1xf32>
        %496 = vector.multi_reduction <add>, %495, %cst_150 [1, 2] : vector<1x64x1xf32> to vector<1xf32>
        %497 = vector.shape_cast %496 : vector<1xf32> to vector<1x1x1xf32>
        %498 = vector.extract %497[0, 0, 0] : f32 from vector<1x1x1xf32>
        %499 = vector.broadcast %498 : f32 to vector<1x1xf32>
        %cst_151 = arith.constant 0.000000e+00 : f32
        %500 = vector.broadcast %cst_151 : f32 to vector<64x1xf32>
        %501 = arith.select %492, %84, %500 : vector<64x1xi1>, vector<64x1xf32>
        %502 = vector.shape_cast %501 : vector<64x1xf32> to vector<1x64x1xf32>
        %cst_152 = arith.constant dense<0.000000e+00> : vector<1xf32>
        %503 = vector.multi_reduction <add>, %502, %cst_152 [1, 2] : vector<1x64x1xf32> to vector<1xf32>
        %504 = vector.shape_cast %503 : vector<1xf32> to vector<1x1x1xf32>
        %505 = vector.extract %504[0, 0, 0] : f32 from vector<1x1x1xf32>
        %506 = vector.broadcast %505 : f32 to vector<1x1xf32>
        %cst_153 = arith.constant 1.024000e+03 : f32
        %507 = vector.broadcast %cst_153 : f32 to vector<1x1xf32>
        %508 = arith.divf %499, %507 : vector<1x1xf32>
        %cst_154 = arith.constant 1.024000e+03 : f32
        %509 = vector.broadcast %cst_154 : f32 to vector<1x1xf32>
        %510 = arith.divf %506, %509 : vector<1x1xf32>
        %511 = arith.mulf %508, %508 : vector<1x1xf32>
        %512 = arith.subf %510, %511 : vector<1x1xf32>
        %cst_155 = arith.constant 0.000000e+00 : f32
        %513 = vector.broadcast %cst_155 : f32 to vector<1x1xf32>
        %514 = arith.maximumf %512, %513 : vector<1x1xf32>
        %cst_156 = arith.constant 9.99999974E-6 : f32
        %515 = vector.broadcast %cst_156 : f32 to vector<1x1xf32>
        %516 = arith.addf %514, %515 : vector<1x1xf32>
        %517 = math.rsqrt %516 : vector<1x1xf32>
        %cst_157 = arith.constant 0.000000e+00 : f32
        %518 = vector.shape_cast %508 : vector<1x1xf32> to vector<1x1xf32>
        %519 = vector.broadcast %518 : vector<1x1xf32> to vector<64x1xf32>
        %520 = vector.broadcast %cst_157 : f32 to vector<64x1xf32>
        %521 = arith.select %492, %519, %520 : vector<64x1xi1>, vector<64x1xf32>
        %522 = arith.addf %482, %521 : vector<64x1xf32>
        %cst_158 = arith.constant 0.000000e+00 : f32
        %523 = vector.shape_cast %517 : vector<1x1xf32> to vector<1x1xf32>
        %524 = vector.broadcast %523 : vector<1x1xf32> to vector<64x1xf32>
        %525 = vector.broadcast %cst_158 : f32 to vector<64x1xf32>
        %526 = arith.select %492, %524, %525 : vector<64x1xi1>, vector<64x1xf32>
        %527 = arith.addf %487, %526 : vector<64x1xf32>
        %c44_i32_159 = arith.constant 44 : i32
        %528 = vector.broadcast %c44_i32_159 : i32 to vector<64x1xi32>
        %529 = arith.cmpi sge, %85, %528 : vector<64x1xi32>
        %c48_i32 = arith.constant 48 : i32
        %530 = vector.broadcast %c48_i32 : i32 to vector<64x1xi32>
        %531 = arith.cmpi slt, %85, %530 : vector<64x1xi32>
        %532 = arith.andi %529, %531 : vector<64x1xi1>
        %cst_160 = arith.constant 0.000000e+00 : f32
        %533 = vector.broadcast %cst_160 : f32 to vector<64x1xf32>
        %534 = arith.select %532, %75, %533 : vector<64x1xi1>, vector<64x1xf32>
        %535 = vector.shape_cast %534 : vector<64x1xf32> to vector<1x64x1xf32>
        %cst_161 = arith.constant dense<0.000000e+00> : vector<1xf32>
        %536 = vector.multi_reduction <add>, %535, %cst_161 [1, 2] : vector<1x64x1xf32> to vector<1xf32>
        %537 = vector.shape_cast %536 : vector<1xf32> to vector<1x1x1xf32>
        %538 = vector.extract %537[0, 0, 0] : f32 from vector<1x1x1xf32>
        %539 = vector.broadcast %538 : f32 to vector<1x1xf32>
        %cst_162 = arith.constant 0.000000e+00 : f32
        %540 = vector.broadcast %cst_162 : f32 to vector<64x1xf32>
        %541 = arith.select %532, %84, %540 : vector<64x1xi1>, vector<64x1xf32>
        %542 = vector.shape_cast %541 : vector<64x1xf32> to vector<1x64x1xf32>
        %cst_163 = arith.constant dense<0.000000e+00> : vector<1xf32>
        %543 = vector.multi_reduction <add>, %542, %cst_163 [1, 2] : vector<1x64x1xf32> to vector<1xf32>
        %544 = vector.shape_cast %543 : vector<1xf32> to vector<1x1x1xf32>
        %545 = vector.extract %544[0, 0, 0] : f32 from vector<1x1x1xf32>
        %546 = vector.broadcast %545 : f32 to vector<1x1xf32>
        %cst_164 = arith.constant 1.024000e+03 : f32
        %547 = vector.broadcast %cst_164 : f32 to vector<1x1xf32>
        %548 = arith.divf %539, %547 : vector<1x1xf32>
        %cst_165 = arith.constant 1.024000e+03 : f32
        %549 = vector.broadcast %cst_165 : f32 to vector<1x1xf32>
        %550 = arith.divf %546, %549 : vector<1x1xf32>
        %551 = arith.mulf %548, %548 : vector<1x1xf32>
        %552 = arith.subf %550, %551 : vector<1x1xf32>
        %cst_166 = arith.constant 0.000000e+00 : f32
        %553 = vector.broadcast %cst_166 : f32 to vector<1x1xf32>
        %554 = arith.maximumf %552, %553 : vector<1x1xf32>
        %cst_167 = arith.constant 9.99999974E-6 : f32
        %555 = vector.broadcast %cst_167 : f32 to vector<1x1xf32>
        %556 = arith.addf %554, %555 : vector<1x1xf32>
        %557 = math.rsqrt %556 : vector<1x1xf32>
        %cst_168 = arith.constant 0.000000e+00 : f32
        %558 = vector.shape_cast %548 : vector<1x1xf32> to vector<1x1xf32>
        %559 = vector.broadcast %558 : vector<1x1xf32> to vector<64x1xf32>
        %560 = vector.broadcast %cst_168 : f32 to vector<64x1xf32>
        %561 = arith.select %532, %559, %560 : vector<64x1xi1>, vector<64x1xf32>
        %562 = arith.addf %522, %561 : vector<64x1xf32>
        %cst_169 = arith.constant 0.000000e+00 : f32
        %563 = vector.shape_cast %557 : vector<1x1xf32> to vector<1x1xf32>
        %564 = vector.broadcast %563 : vector<1x1xf32> to vector<64x1xf32>
        %565 = vector.broadcast %cst_169 : f32 to vector<64x1xf32>
        %566 = arith.select %532, %564, %565 : vector<64x1xi1>, vector<64x1xf32>
        %567 = arith.addf %527, %566 : vector<64x1xf32>
        %c48_i32_170 = arith.constant 48 : i32
        %568 = vector.broadcast %c48_i32_170 : i32 to vector<64x1xi32>
        %569 = arith.cmpi sge, %85, %568 : vector<64x1xi32>
        %c52_i32 = arith.constant 52 : i32
        %570 = vector.broadcast %c52_i32 : i32 to vector<64x1xi32>
        %571 = arith.cmpi slt, %85, %570 : vector<64x1xi32>
        %572 = arith.andi %569, %571 : vector<64x1xi1>
        %cst_171 = arith.constant 0.000000e+00 : f32
        %573 = vector.broadcast %cst_171 : f32 to vector<64x1xf32>
        %574 = arith.select %572, %75, %573 : vector<64x1xi1>, vector<64x1xf32>
        %575 = vector.shape_cast %574 : vector<64x1xf32> to vector<1x64x1xf32>
        %cst_172 = arith.constant dense<0.000000e+00> : vector<1xf32>
        %576 = vector.multi_reduction <add>, %575, %cst_172 [1, 2] : vector<1x64x1xf32> to vector<1xf32>
        %577 = vector.shape_cast %576 : vector<1xf32> to vector<1x1x1xf32>
        %578 = vector.extract %577[0, 0, 0] : f32 from vector<1x1x1xf32>
        %579 = vector.broadcast %578 : f32 to vector<1x1xf32>
        %cst_173 = arith.constant 0.000000e+00 : f32
        %580 = vector.broadcast %cst_173 : f32 to vector<64x1xf32>
        %581 = arith.select %572, %84, %580 : vector<64x1xi1>, vector<64x1xf32>
        %582 = vector.shape_cast %581 : vector<64x1xf32> to vector<1x64x1xf32>
        %cst_174 = arith.constant dense<0.000000e+00> : vector<1xf32>
        %583 = vector.multi_reduction <add>, %582, %cst_174 [1, 2] : vector<1x64x1xf32> to vector<1xf32>
        %584 = vector.shape_cast %583 : vector<1xf32> to vector<1x1x1xf32>
        %585 = vector.extract %584[0, 0, 0] : f32 from vector<1x1x1xf32>
        %586 = vector.broadcast %585 : f32 to vector<1x1xf32>
        %cst_175 = arith.constant 1.024000e+03 : f32
        %587 = vector.broadcast %cst_175 : f32 to vector<1x1xf32>
        %588 = arith.divf %579, %587 : vector<1x1xf32>
        %cst_176 = arith.constant 1.024000e+03 : f32
        %589 = vector.broadcast %cst_176 : f32 to vector<1x1xf32>
        %590 = arith.divf %586, %589 : vector<1x1xf32>
        %591 = arith.mulf %588, %588 : vector<1x1xf32>
        %592 = arith.subf %590, %591 : vector<1x1xf32>
        %cst_177 = arith.constant 0.000000e+00 : f32
        %593 = vector.broadcast %cst_177 : f32 to vector<1x1xf32>
        %594 = arith.maximumf %592, %593 : vector<1x1xf32>
        %cst_178 = arith.constant 9.99999974E-6 : f32
        %595 = vector.broadcast %cst_178 : f32 to vector<1x1xf32>
        %596 = arith.addf %594, %595 : vector<1x1xf32>
        %597 = math.rsqrt %596 : vector<1x1xf32>
        %cst_179 = arith.constant 0.000000e+00 : f32
        %598 = vector.shape_cast %588 : vector<1x1xf32> to vector<1x1xf32>
        %599 = vector.broadcast %598 : vector<1x1xf32> to vector<64x1xf32>
        %600 = vector.broadcast %cst_179 : f32 to vector<64x1xf32>
        %601 = arith.select %572, %599, %600 : vector<64x1xi1>, vector<64x1xf32>
        %602 = arith.addf %562, %601 : vector<64x1xf32>
        %cst_180 = arith.constant 0.000000e+00 : f32
        %603 = vector.shape_cast %597 : vector<1x1xf32> to vector<1x1xf32>
        %604 = vector.broadcast %603 : vector<1x1xf32> to vector<64x1xf32>
        %605 = vector.broadcast %cst_180 : f32 to vector<64x1xf32>
        %606 = arith.select %572, %604, %605 : vector<64x1xi1>, vector<64x1xf32>
        %607 = arith.addf %567, %606 : vector<64x1xf32>
        %c52_i32_181 = arith.constant 52 : i32
        %608 = vector.broadcast %c52_i32_181 : i32 to vector<64x1xi32>
        %609 = arith.cmpi sge, %85, %608 : vector<64x1xi32>
        %c56_i32 = arith.constant 56 : i32
        %610 = vector.broadcast %c56_i32 : i32 to vector<64x1xi32>
        %611 = arith.cmpi slt, %85, %610 : vector<64x1xi32>
        %612 = arith.andi %609, %611 : vector<64x1xi1>
        %cst_182 = arith.constant 0.000000e+00 : f32
        %613 = vector.broadcast %cst_182 : f32 to vector<64x1xf32>
        %614 = arith.select %612, %75, %613 : vector<64x1xi1>, vector<64x1xf32>
        %615 = vector.shape_cast %614 : vector<64x1xf32> to vector<1x64x1xf32>
        %cst_183 = arith.constant dense<0.000000e+00> : vector<1xf32>
        %616 = vector.multi_reduction <add>, %615, %cst_183 [1, 2] : vector<1x64x1xf32> to vector<1xf32>
        %617 = vector.shape_cast %616 : vector<1xf32> to vector<1x1x1xf32>
        %618 = vector.extract %617[0, 0, 0] : f32 from vector<1x1x1xf32>
        %619 = vector.broadcast %618 : f32 to vector<1x1xf32>
        %cst_184 = arith.constant 0.000000e+00 : f32
        %620 = vector.broadcast %cst_184 : f32 to vector<64x1xf32>
        %621 = arith.select %612, %84, %620 : vector<64x1xi1>, vector<64x1xf32>
        %622 = vector.shape_cast %621 : vector<64x1xf32> to vector<1x64x1xf32>
        %cst_185 = arith.constant dense<0.000000e+00> : vector<1xf32>
        %623 = vector.multi_reduction <add>, %622, %cst_185 [1, 2] : vector<1x64x1xf32> to vector<1xf32>
        %624 = vector.shape_cast %623 : vector<1xf32> to vector<1x1x1xf32>
        %625 = vector.extract %624[0, 0, 0] : f32 from vector<1x1x1xf32>
        %626 = vector.broadcast %625 : f32 to vector<1x1xf32>
        %cst_186 = arith.constant 1.024000e+03 : f32
        %627 = vector.broadcast %cst_186 : f32 to vector<1x1xf32>
        %628 = arith.divf %619, %627 : vector<1x1xf32>
        %cst_187 = arith.constant 1.024000e+03 : f32
        %629 = vector.broadcast %cst_187 : f32 to vector<1x1xf32>
        %630 = arith.divf %626, %629 : vector<1x1xf32>
        %631 = arith.mulf %628, %628 : vector<1x1xf32>
        %632 = arith.subf %630, %631 : vector<1x1xf32>
        %cst_188 = arith.constant 0.000000e+00 : f32
        %633 = vector.broadcast %cst_188 : f32 to vector<1x1xf32>
        %634 = arith.maximumf %632, %633 : vector<1x1xf32>
        %cst_189 = arith.constant 9.99999974E-6 : f32
        %635 = vector.broadcast %cst_189 : f32 to vector<1x1xf32>
        %636 = arith.addf %634, %635 : vector<1x1xf32>
        %637 = math.rsqrt %636 : vector<1x1xf32>
        %cst_190 = arith.constant 0.000000e+00 : f32
        %638 = vector.shape_cast %628 : vector<1x1xf32> to vector<1x1xf32>
        %639 = vector.broadcast %638 : vector<1x1xf32> to vector<64x1xf32>
        %640 = vector.broadcast %cst_190 : f32 to vector<64x1xf32>
        %641 = arith.select %612, %639, %640 : vector<64x1xi1>, vector<64x1xf32>
        %642 = arith.addf %602, %641 : vector<64x1xf32>
        %cst_191 = arith.constant 0.000000e+00 : f32
        %643 = vector.shape_cast %637 : vector<1x1xf32> to vector<1x1xf32>
        %644 = vector.broadcast %643 : vector<1x1xf32> to vector<64x1xf32>
        %645 = vector.broadcast %cst_191 : f32 to vector<64x1xf32>
        %646 = arith.select %612, %644, %645 : vector<64x1xi1>, vector<64x1xf32>
        %647 = arith.addf %607, %646 : vector<64x1xf32>
        %c56_i32_192 = arith.constant 56 : i32
        %648 = vector.broadcast %c56_i32_192 : i32 to vector<64x1xi32>
        %649 = arith.cmpi sge, %85, %648 : vector<64x1xi32>
        %c60_i32 = arith.constant 60 : i32
        %650 = vector.broadcast %c60_i32 : i32 to vector<64x1xi32>
        %651 = arith.cmpi slt, %85, %650 : vector<64x1xi32>
        %652 = arith.andi %649, %651 : vector<64x1xi1>
        %cst_193 = arith.constant 0.000000e+00 : f32
        %653 = vector.broadcast %cst_193 : f32 to vector<64x1xf32>
        %654 = arith.select %652, %75, %653 : vector<64x1xi1>, vector<64x1xf32>
        %655 = vector.shape_cast %654 : vector<64x1xf32> to vector<1x64x1xf32>
        %cst_194 = arith.constant dense<0.000000e+00> : vector<1xf32>
        %656 = vector.multi_reduction <add>, %655, %cst_194 [1, 2] : vector<1x64x1xf32> to vector<1xf32>
        %657 = vector.shape_cast %656 : vector<1xf32> to vector<1x1x1xf32>
        %658 = vector.extract %657[0, 0, 0] : f32 from vector<1x1x1xf32>
        %659 = vector.broadcast %658 : f32 to vector<1x1xf32>
        %cst_195 = arith.constant 0.000000e+00 : f32
        %660 = vector.broadcast %cst_195 : f32 to vector<64x1xf32>
        %661 = arith.select %652, %84, %660 : vector<64x1xi1>, vector<64x1xf32>
        %662 = vector.shape_cast %661 : vector<64x1xf32> to vector<1x64x1xf32>
        %cst_196 = arith.constant dense<0.000000e+00> : vector<1xf32>
        %663 = vector.multi_reduction <add>, %662, %cst_196 [1, 2] : vector<1x64x1xf32> to vector<1xf32>
        %664 = vector.shape_cast %663 : vector<1xf32> to vector<1x1x1xf32>
        %665 = vector.extract %664[0, 0, 0] : f32 from vector<1x1x1xf32>
        %666 = vector.broadcast %665 : f32 to vector<1x1xf32>
        %cst_197 = arith.constant 1.024000e+03 : f32
        %667 = vector.broadcast %cst_197 : f32 to vector<1x1xf32>
        %668 = arith.divf %659, %667 : vector<1x1xf32>
        %cst_198 = arith.constant 1.024000e+03 : f32
        %669 = vector.broadcast %cst_198 : f32 to vector<1x1xf32>
        %670 = arith.divf %666, %669 : vector<1x1xf32>
        %671 = arith.mulf %668, %668 : vector<1x1xf32>
        %672 = arith.subf %670, %671 : vector<1x1xf32>
        %cst_199 = arith.constant 0.000000e+00 : f32
        %673 = vector.broadcast %cst_199 : f32 to vector<1x1xf32>
        %674 = arith.maximumf %672, %673 : vector<1x1xf32>
        %cst_200 = arith.constant 9.99999974E-6 : f32
        %675 = vector.broadcast %cst_200 : f32 to vector<1x1xf32>
        %676 = arith.addf %674, %675 : vector<1x1xf32>
        %677 = math.rsqrt %676 : vector<1x1xf32>
        %cst_201 = arith.constant 0.000000e+00 : f32
        %678 = vector.shape_cast %668 : vector<1x1xf32> to vector<1x1xf32>
        %679 = vector.broadcast %678 : vector<1x1xf32> to vector<64x1xf32>
        %680 = vector.broadcast %cst_201 : f32 to vector<64x1xf32>
        %681 = arith.select %652, %679, %680 : vector<64x1xi1>, vector<64x1xf32>
        %682 = arith.addf %642, %681 : vector<64x1xf32>
        %cst_202 = arith.constant 0.000000e+00 : f32
        %683 = vector.shape_cast %677 : vector<1x1xf32> to vector<1x1xf32>
        %684 = vector.broadcast %683 : vector<1x1xf32> to vector<64x1xf32>
        %685 = vector.broadcast %cst_202 : f32 to vector<64x1xf32>
        %686 = arith.select %652, %684, %685 : vector<64x1xi1>, vector<64x1xf32>
        %687 = arith.addf %647, %686 : vector<64x1xf32>
        %c60_i32_203 = arith.constant 60 : i32
        %688 = vector.broadcast %c60_i32_203 : i32 to vector<64x1xi32>
        %689 = arith.cmpi sge, %85, %688 : vector<64x1xi32>
        %c64_i32 = arith.constant 64 : i32
        %690 = vector.broadcast %c64_i32 : i32 to vector<64x1xi32>
        %691 = arith.cmpi slt, %85, %690 : vector<64x1xi32>
        %692 = arith.andi %689, %691 : vector<64x1xi1>
        %cst_204 = arith.constant 0.000000e+00 : f32
        %693 = vector.broadcast %cst_204 : f32 to vector<64x1xf32>
        %694 = arith.select %692, %75, %693 : vector<64x1xi1>, vector<64x1xf32>
        %695 = vector.shape_cast %694 : vector<64x1xf32> to vector<1x64x1xf32>
        %cst_205 = arith.constant dense<0.000000e+00> : vector<1xf32>
        %696 = vector.multi_reduction <add>, %695, %cst_205 [1, 2] : vector<1x64x1xf32> to vector<1xf32>
        %697 = vector.shape_cast %696 : vector<1xf32> to vector<1x1x1xf32>
        %698 = vector.extract %697[0, 0, 0] : f32 from vector<1x1x1xf32>
        %699 = vector.broadcast %698 : f32 to vector<1x1xf32>
        %cst_206 = arith.constant 0.000000e+00 : f32
        %700 = vector.broadcast %cst_206 : f32 to vector<64x1xf32>
        %701 = arith.select %692, %84, %700 : vector<64x1xi1>, vector<64x1xf32>
        %702 = vector.shape_cast %701 : vector<64x1xf32> to vector<1x64x1xf32>
        %cst_207 = arith.constant dense<0.000000e+00> : vector<1xf32>
        %703 = vector.multi_reduction <add>, %702, %cst_207 [1, 2] : vector<1x64x1xf32> to vector<1xf32>
        %704 = vector.shape_cast %703 : vector<1xf32> to vector<1x1x1xf32>
        %705 = vector.extract %704[0, 0, 0] : f32 from vector<1x1x1xf32>
        %706 = vector.broadcast %705 : f32 to vector<1x1xf32>
        %cst_208 = arith.constant 1.024000e+03 : f32
        %707 = vector.broadcast %cst_208 : f32 to vector<1x1xf32>
        %708 = arith.divf %699, %707 : vector<1x1xf32>
        %cst_209 = arith.constant 1.024000e+03 : f32
        %709 = vector.broadcast %cst_209 : f32 to vector<1x1xf32>
        %710 = arith.divf %706, %709 : vector<1x1xf32>
        %711 = arith.mulf %708, %708 : vector<1x1xf32>
        %712 = arith.subf %710, %711 : vector<1x1xf32>
        %cst_210 = arith.constant 0.000000e+00 : f32
        %713 = vector.broadcast %cst_210 : f32 to vector<1x1xf32>
        %714 = arith.maximumf %712, %713 : vector<1x1xf32>
        %cst_211 = arith.constant 9.99999974E-6 : f32
        %715 = vector.broadcast %cst_211 : f32 to vector<1x1xf32>
        %716 = arith.addf %714, %715 : vector<1x1xf32>
        %717 = math.rsqrt %716 : vector<1x1xf32>
        %cst_212 = arith.constant 0.000000e+00 : f32
        %718 = vector.shape_cast %708 : vector<1x1xf32> to vector<1x1xf32>
        %719 = vector.broadcast %718 : vector<1x1xf32> to vector<64x1xf32>
        %720 = vector.broadcast %cst_212 : f32 to vector<64x1xf32>
        %721 = arith.select %692, %719, %720 : vector<64x1xi1>, vector<64x1xf32>
        %722 = arith.addf %682, %721 : vector<64x1xf32>
        %cst_213 = arith.constant 0.000000e+00 : f32
        %723 = vector.shape_cast %717 : vector<1x1xf32> to vector<1x1xf32>
        %724 = vector.broadcast %723 : vector<1x1xf32> to vector<64x1xf32>
        %725 = vector.broadcast %cst_213 : f32 to vector<64x1xf32>
        %726 = arith.select %692, %724, %725 : vector<64x1xi1>, vector<64x1xf32>
        %727 = arith.addf %687, %726 : vector<64x1xf32>
        %c0_214 = arith.constant 0 : index
        %c0_215 = arith.constant 0 : index
        %728 = vector.load %arg6[%c0_214, %c0_215] : memref<64x1xf32, #tpu.memory_space<vmem>>, vector<64x1xf32>
        %729 = arith.mulf %727, %728 : vector<64x1xf32>
        %c0_216 = arith.constant 0 : index
        %c0_217 = arith.constant 0 : index
        %730 = vector.load %arg15[%c0_216, %c0_217] : memref<64x1xf32, #tpu.memory_space<vmem>>, vector<64x1xf32>
        tpu.vector_store %arg15[%c0_216, %c0_217], %729 {strides = array<i32>} : memref<64x1xf32, #tpu.memory_space<vmem>>, vector<64x1xf32>,
        %c0_218 = arith.constant 0 : index
        %c0_219 = arith.constant 0 : index
        %731 = vector.load %arg7[%c0_218, %c0_219] : memref<64x1xf32, #tpu.memory_space<vmem>>, vector<64x1xf32>
        %732 = arith.subf %71, %722 : vector<64x1xf32>
        %733 = arith.mulf %732, %729 : vector<64x1xf32>
        %734 = arith.addf %731, %733 : vector<64x1xf32>
        %c0_220 = arith.constant 0 : index
        %c0_221 = arith.constant 0 : index
        %735 = vector.load %arg16[%c0_220, %c0_221] : memref<64x1xf32, #tpu.memory_space<vmem>>, vector<64x1xf32>
        tpu.vector_store %arg16[%c0_220, %c0_221], %734 {strides = array<i32>} : memref<64x1xf32, #tpu.memory_space<vmem>>, vector<64x1xf32>,
      } else {
      }
      %9 = arith.index_cast %arg2 : i32 to index
      %c0 = arith.constant 0 : index
      %c0_4 = arith.constant 0 : index
      %10 = vector.load %arg12[%9, %c0, %c0_4] : memref<2x64x128xf32, #tpu.memory_space<vmem>>, vector<1x64x128xf32>
      %11 = vector.shape_cast %10 : vector<1x64x128xf32> to vector<64x128xf32>
      %c0_5 = arith.constant 0 : index
      %c0_6 = arith.constant 0 : index
      %12 = vector.load %arg15[%c0_5, %c0_6] : memref<64x1xf32, #tpu.memory_space<vmem>>, vector<64x1xf32>
      %13 = vector.broadcast %12 : vector<64x1xf32> to vector<64x128xf32>
      %14 = arith.mulf %11, %13 : vector<64x128xf32>
      %c0_7 = arith.constant 0 : index
      %c0_8 = arith.constant 0 : index
      %15 = vector.load %arg16[%c0_7, %c0_8] : memref<64x1xf32, #tpu.memory_space<vmem>>, vector<64x1xf32>
      %16 = vector.broadcast %15 : vector<64x1xf32> to vector<64x128xf32>
      %17 = arith.addf %14, %16 : vector<64x128xf32>
      %cst = arith.constant 0.000000e+00 : f32
      %18 = vector.broadcast %cst : f32 to vector<64x128xf32>
      %19 = arith.maximumf %17, %18 : vector<64x128xf32>
      %c0_9 = arith.constant 0 : index
      %c0_10 = arith.constant 0 : index
      %20 = vector.load %arg8[%c0_9, %c0_10] : memref<11x64xf32, #tpu.memory_space<vmem>>, vector<11x64xf32>
      %cst_11 = arith.constant dense<0.000000e+00> : vector<11x128xf32>
      %21 = tpu.matmul %20, %19, %cst_11 {dimension_numbers = #tpu.dot_dimension_numbers<[1], [0], [0], [1], [0, 0, 1, 1], [], []>} : vector<11x64xf32>, vector<64x128xf32>, vector<11x128xf32> -> vector<11x128xf32>
      %c0_12 = arith.constant 0 : index
      %c0_13 = arith.constant 0 : index
      %22 = vector.load %arg9[%c0_12, %c0_13] : memref<11x1xf32, #tpu.memory_space<vmem>>, vector<11x1xf32>
      %23 = vector.broadcast %22 : vector<11x1xf32> to vector<11x128xf32>
      %24 = arith.addf %21, %23 : vector<11x128xf32>
      %25 = vector.extract_strided_slice %24 {offsets = [0, 0], sizes = [3, 128], strides = [1, 1]} : vector<11x128xf32> to vector<3x128xf32>
      %26 = arith.negf %25 : vector<3x128xf32>
      %27 = math.exp %26 : vector<3x128xf32>
      %cst_14 = arith.constant 1.000000e+00 : f32
      %28 = vector.broadcast %cst_14 : f32 to vector<3x128xf32>
      %29 = arith.addf %28, %27 : vector<3x128xf32>
      %30 = arith.divf %28, %29 : vector<3x128xf32>
      %cst_15 = arith.constant 9.99999974E-5 : f32
      %cst_16 = arith.constant 0.999899983 : f32
      %31 = vector.broadcast %cst_15 : f32 to vector<3x128xf32>
      %32 = arith.maximumf %31, %30 : vector<3x128xf32>
      %33 = vector.broadcast %cst_16 : f32 to vector<3x128xf32>
      %34 = arith.minimumf %33, %32 : vector<3x128xf32>
      %35 = vector.extract_strided_slice %24 {offsets = [3, 0], sizes = [8, 128], strides = [1, 1]} : vector<11x128xf32> to vector<8x128xf32>
      %36 = tpu.iota {dimensions = array<i32: 0>} : vector<8x128xi32>
      %37 = vector.extract_strided_slice %35 {offsets = [6, 0], sizes = [1, 128], strides = [1, 1]} : vector<8x128xf32> to vector<1x128xf32>
      %38 = vector.extract_strided_slice %35 {offsets = [6, 0], sizes = [1, 128], strides = [1, 1]} : vector<8x128xf32> to vector<1x128xf32>
      %39 = arith.mulf %37, %38 : vector<1x128xf32>
      %40 = vector.extract_strided_slice %35 {offsets = [7, 0], sizes = [1, 128], strides = [1, 1]} : vector<8x128xf32> to vector<1x128xf32>
      %41 = vector.extract_strided_slice %35 {offsets = [7, 0], sizes = [1, 128], strides = [1, 1]} : vector<8x128xf32> to vector<1x128xf32>
      %42 = arith.mulf %40, %41 : vector<1x128xf32>
      %43 = arith.addf %39, %42 : vector<1x128xf32>
      %cst_17 = arith.constant 1.000000e-24 : f32
      %44 = vector.broadcast %cst_17 : f32 to vector<1x128xf32>
      %45 = arith.maximumf %43, %44 : vector<1x128xf32>
      %46 = math.rsqrt %45 : vector<1x128xf32>
      %c3_i32 = arith.constant 3 : i32
      %47 = vector.broadcast %c3_i32 : i32 to vector<8x128xi32>
      %48 = arith.cmpi sge, %36, %47 : vector<8x128xi32>
      %c6_i32 = arith.constant 6 : i32
      %49 = vector.broadcast %c6_i32 : i32 to vector<8x128xi32>
      %50 = arith.cmpi slt, %36, %49 : vector<8x128xi32>
      %51 = arith.andi %48, %50 : vector<8x128xi1>
      %52 = arith.negf %35 : vector<8x128xf32>
      %53 = math.exp %52 : vector<8x128xf32>
      %cst_18 = arith.constant 1.000000e+00 : f32
      %54 = vector.broadcast %cst_18 : f32 to vector<8x128xf32>
      %55 = arith.addf %54, %53 : vector<8x128xf32>
      %56 = arith.divf %54, %55 : vector<8x128xf32>
      %cst_19 = arith.constant 5.000000e-01 : f32
      %57 = vector.broadcast %cst_19 : f32 to vector<8x128xf32>
      %58 = arith.subf %56, %57 : vector<8x128xf32>
      %c6_i32_20 = arith.constant 6 : i32
      %59 = vector.broadcast %c6_i32_20 : i32 to vector<8x128xi32>
      %60 = arith.cmpi sge, %36, %59 : vector<8x128xi32>
      %61 = vector.broadcast %46 : vector<1x128xf32> to vector<8x128xf32>
      %62 = arith.mulf %35, %61 : vector<8x128xf32>
      %63 = arith.select %60, %62, %35 : vector<8x128xi1>, vector<8x128xf32>
      %64 = arith.select %51, %58, %63 : vector<8x128xi1>, vector<8x128xf32>
      %c0_21 = arith.constant 0 : index
      %c0_22 = arith.constant 0 : index
      %c0_23 = arith.constant 0 : index
      %65 = vector.load %arg10[%c0_21, %c0_22, %c0_23] : memref<1x3x128xf32, #tpu.memory_space<vmem>>, vector<1x3x128xf32>
      %66 = vector.shape_cast %65 : vector<1x3x128xf32> to vector<3x128xf32>
      %67 = vector.shape_cast %34 : vector<3x128xf32> to vector<1x3x128xf32>
      tpu.vector_store %arg10[%c0_21, %c0_22, %c0_23], %67 {strides = array<i32>} : memref<1x3x128xf32, #tpu.memory_space<vmem>>, vector<1x3x128xf32>,
      %c0_24 = arith.constant 0 : index
      %c0_25 = arith.constant 0 : index
      %c0_26 = arith.constant 0 : index
      %68 = vector.load %arg11[%c0_24, %c0_25, %c0_26] : memref<1x8x128xf32, #tpu.memory_space<vmem>>, vector<1x8x128xf32>
      %69 = vector.shape_cast %68 : vector<1x8x128xf32> to vector<8x128xf32>
      %70 = vector.shape_cast %64 : vector<8x128xf32> to vector<1x8x128xf32>
      tpu.vector_store %arg11[%c0_24, %c0_25, %c0_26], %70 {strides = array<i32>} : memref<1x8x128xf32, #tpu.memory_space<vmem>>, vector<1x8x128xf32>,
    } else {
    }
    return
  }
  func.func @transform_0(%arg0: i32, %arg1: i32, %arg2: i32) -> (i32, i32, i32, i32) {
    %c1_i32 = arith.constant 1 : i32
    %0 = arith.muli %arg1, %c1_i32 : i32
    %c1_i32_0 = arith.constant 1 : i32
    %1 = arith.subi %c1_i32_0, %arg1 : i32
    %2 = arith.muli %1, %arg2 : i32
    %3 = arith.addi %0, %2 : i32
    %c0_i32 = arith.constant 0 : i32
    %c0_i32_1 = arith.constant 0 : i32
    %c0_i32_2 = arith.constant 0 : i32
    return %arg0, %3, %c0_i32, %c0_i32_1 : i32, i32, i32, i32
  }
  func.func @transform_1(%arg0: i32, %arg1: i32, %arg2: i32) -> (i32, i32, i32) {
    %c0_i32 = arith.constant 0 : i32
    %c0_i32_0 = arith.constant 0 : i32
    %c0_i32_1 = arith.constant 0 : i32
    %c0_i32_2 = arith.constant 0 : i32
    return %c0_i32, %c0_i32_0, %c0_i32_1 : i32, i32, i32
  }
  func.func @transform_2(%arg0: i32, %arg1: i32, %arg2: i32) -> (i32, i32) {
    %c0_i32 = arith.constant 0 : i32
    %c0_i32_0 = arith.constant 0 : i32
    %c0_i32_1 = arith.constant 0 : i32
    return %c0_i32, %c0_i32_0 : i32, i32
  }
  func.func @transform_3(%arg0: i32, %arg1: i32, %arg2: i32) -> (i32, i32) {
    %c0_i32 = arith.constant 0 : i32
    %c0_i32_0 = arith.constant 0 : i32
    %c0_i32_1 = arith.constant 0 : i32
    return %c0_i32, %c0_i32_0 : i32, i32
  }
  func.func @transform_4(%arg0: i32, %arg1: i32, %arg2: i32) -> (i32, i32) {
    %c0_i32 = arith.constant 0 : i32
    %c0_i32_0 = arith.constant 0 : i32
    %c0_i32_1 = arith.constant 0 : i32
    return %c0_i32, %c0_i32_0 : i32, i32
  }
  func.func @transform_5(%arg0: i32, %arg1: i32, %arg2: i32) -> (i32, i32) {
    %c0_i32 = arith.constant 0 : i32
    %c0_i32_0 = arith.constant 0 : i32
    %c0_i32_1 = arith.constant 0 : i32
    return %c0_i32, %c0_i32_0 : i32, i32
  }
  func.func @transform_6(%arg0: i32, %arg1: i32, %arg2: i32) -> (i32, i32) {
    %c0_i32 = arith.constant 0 : i32
    %c0_i32_0 = arith.constant 0 : i32
    %c0_i32_1 = arith.constant 0 : i32
    return %c0_i32, %c0_i32_0 : i32, i32
  }
  func.func @transform_7(%arg0: i32, %arg1: i32, %arg2: i32) -> (i32, i32, i32) {
    %0 = arith.muli %arg1, %arg2 : i32
    %c0_i32 = arith.constant 0 : i32
    %c0_i32_0 = arith.constant 0 : i32
    return %arg0, %c0_i32, %0 : i32, i32, i32
  }
  func.func @transform_8(%arg0: i32, %arg1: i32, %arg2: i32) -> (i32, i32, i32) {
    %0 = arith.muli %arg1, %arg2 : i32
    %c0_i32 = arith.constant 0 : i32
    %c0_i32_0 = arith.constant 0 : i32
    return %arg0, %c0_i32, %0 : i32, i32, i32
  }
}

</mosaic_0001>

<bundles_post_ra>
// kernel: tpu_custom_call.1
= control target key start
LH: loop header
LB: loop body
LE: loop exit
PB: predicated region body
PF: predicated region fallthrough
CT: control target
= control target key end

     0   :  { %s6483_s0 = inlined_call_operand.hbm [shape: bf16[2,2,16,256], index: 0, kind: input, shape index: {}]   ;;  %s6484_s1 = inlined_call_operand.hbm [shape: bf16[9,64,16], index: 1, kind: input, shape index: {}]   ;;  %s6485_s2 = inlined_call_operand.hbm [shape: f32[64,1], index: 2, kind: input, shape index: {}]   ;;  %s6486_s3 = inlined_call_operand.hbm [shape: f32[64,1], index: 3, kind: input, shape index: {}]   ;;  %s6487_s4 = inlined_call_operand.hbm [shape: f32[64,1], index: 4, kind: input, shape index: {}]   ;;  %s6488_s5 = inlined_call_operand.hbm [shape: f32[11,64], index: 5, kind: input, shape index: {}]   ;;  %s6489_s6 = inlined_call_operand.hbm [shape: f32[11,1], index: 6, kind: input, shape index: {}]   ;;  %s6490_s7 = inlined_call_operand.hbm [shape: f32[2,3,256], index: 7, kind: output, shape index: {0}]   ;;  %s6491_s8 = inlined_call_operand.hbm [shape: f32[2,8,256], index: 8, kind: output, shape index: {1}]  }
   0x1   :  { %6509 = sst [smem:[#allocation35_spill]] %s6483_s0 }
   0x2   :  { %6510 = sst [smem:[#allocation36_spill]] %s6484_s1 }
   0x3   :  { %6511 = sst [smem:[#allocation37_spill]] %s6485_s2 }
   0x4   :  { %6512 = sst [smem:[#allocation38_spill]] %s6486_s3 }
   0x5   :  { %6513 = sst [smem:[#allocation39_spill]] %s6487_s4 }
   0x6   :  { %6514 = sst [smem:[#allocation40_spill]] %s6488_s5 }
   0x7   :  { %6515 = sst [smem:[#allocation41_spill]] %s6489_s6 }
   0x8   :  { %6516 = sst [smem:[#allocation42_spill]] %s6490_s7 }
   0x9   :  { %6517 = sst [smem:[#allocation43_spill]] %s6491_s8 }
   0xa   :  { %14 = vsyncpa [#allocation8], 0 }
   0xb   :  { %16 = vsyncpa [#allocation8 + $0x1], 0 }
   0xc   :  { %17 = vsyncpa [#allocation11], 0 }
   0xd   :  { %18 = vsyncpa [#allocation14], 0 }
   0xe   :  { %19 = vsyncpa [#allocation17], 0 }
   0xf   :  { %20 = vsyncpa [#allocation9], 0 }
  0x10   :  { %22 = vsyncpa [#allocation9 + $0x1], 0 }
  0x11   :  { %23 = vsyncpa [#allocation21], 0 }
  0x12   :  { %25 = vsyncpa [#allocation21 + $0x1], 0  ;;  %s5606_s27 = smov 0   ;;  %s5608_s28 = smov 0  }
  0x13   :  { %s5610_s29 = smov 0   ;;  %s5612_s30 = smov 0  }
  0x14   :  { %s5614_s9 = smov 0   ;;  %s5616_s10 = smov 0  }
  0x15   :  { %s5618_s11 = smov 0   ;;  %s5620_s12 = smov 0  }
  0x16   :  { %s5622_s13 = smov 0   ;;  %s5624_s14 = smov 0  }
  0x17   :  { %s5626_s15 = smov 0   ;;  %s5628_s16 = smov 0  }
  0x18   :  { %s5630_s17 = smov 0  }
  0x19 LB: > { %6518 = sst [smem:[#allocation28_spill]] %s5487_s27  ;;  %s6492_s18 = sadd.s32 4294967295, %s5535_s17   ;;  %s5535_s17 = sphi %s5630_s17, %s31_s17   ;;  %s5531_s16 = sphi %s5628_s16, %s6583_s16   ;;  %s5527_s15 = sphi %s5626_s15, %s6582_s15   ;;  %s5523_s14 = sphi %s5624_s14, %s6581_s14   ;;  %s5519_s13 = sphi %s5622_s13, %s6580_s13   ;;  %s5515_s12 = sphi %s5620_s12, %s6579_s12   ;;  %s5511_s11 = sphi %s5618_s11, %s6578_s11   ;;  %s5507_s10 = sphi %s5616_s10, %s6577_s10   ;;  %s5503_s9 = sphi %s5614_s9, %s6576_s9   ;;  %s5499_s30 = sphi %s5612_s30, %s6575_s30   ;;  %s5495_s29 = sphi %s5610_s29, %s6574_s29   ;;  %s5491_s28 = sphi %s5608_s28, %s6572_s28   ;;  %s5487_s27 = sphi %s5606_s27, %s6571_s27  }
  0x1a   : > { %6519 = sst [smem:[#allocation29_spill]] %s5491_s28  ;;  %p4453_p0 = scmp.ge.s32.totalorder %s5535_s17, 1 }
  0x1b   : > { %6520 = sst [smem:[#allocation30_spill]] %s5495_s29  ;;  %p5675_p1 = scmp.eq.s32.totalorder %s6492_s18, 0 }
  0x1c   : > { %6521 = sst [smem:[#allocation31_spill]] %s5511_s11  ;;  %p275_p2 = scmp.lt.s32.totalorder %s5535_s17, 9 }
  0x1d   : > { %6522 = sst [smem:[#allocation32_spill]] %s5515_s12  ;;  %s5537_s21 = smov [#allocation10]  }
  0x1e   : > { %6523 = sst [smem:[#allocation33_spill]] %s5519_s13  ;;  %p5680_p3 = pnand %p4453_p0, %p275_p2 }
  0x1f   : > { %s6524_s19 = scalar_select %p5675_p1, 1, 0 }
  0x20   : > { %s6525_s20 = scalar_select %p5680_p3, 1, 0 }
  0x21   : > { %s287_s22 = sshll.u32 %s5537_s21, 4  ;;  %p4895_p4 = pneg %p5680_p3  ;;  %s288_s22 = int_to_ptr.vmem [resolvable:$true] %s287_s22 }
  0x22   : > { %6526 = sst [smem:[#allocation34_spill]] %s6525_s20  ;;  %s5538_s24 = smov [#allocation13]  }
  0x23   : > { %p5688_p5 = pnand %p4895_p4, %p5675_p1  ;;  %s313_s25 = sshll.u32 %s5538_s24, 4  ;;  %s314_s25 = int_to_ptr.vmem [resolvable:$true] %s313_s25 }
  0x24   : > { %s6528_s1 = sld [smem:[#allocation36_spill]] }
  0x25   : > { %p5700_p7 = pneg %p5688_p5 }
  0x2a   : > { %s5155_s8 = scalar_lea.hbm %s6528_s1, 4608 }
  0x2b   : > { %p5156_p6 = scmp.ne.s32.totalorder %s6528_s1, %s5155_s8  ;;  %p5162_p10 = scmp.lt.u32.totalorder %s5155_s8, %s6528_s1 }
  0x2d   : > { %p5158_p8 = pnand %p5700_p7, %p5156_p6 }
  0x2f   : > { %p5159_p9 = pneg %p5158_p8 }
  0x31   : > { %p5164_p11 = pnand %p5162_p10, %p5159_p9 }
  0x33   : > { %5167 = shalt.err (!%p5164_p11)
}
  0x34   : > { %s5168_s18 = scalar_lea.vmem %s288_s22, 4608  ;;  %p5176_p2 = scmp.lt.s32.totalorder %s288_s22, %s288_s22 }
  0x35   : > { %p5169_p12 = scmp.ne.s32.totalorder %s288_s22, %s5168_s18  ;;  %p5177_p4 = scmp.lt.s32.totalorder %s5168_s18, %s5168_s18 }
  0x37   : > { %p5171_p13 = pnand %p5169_p12, %p5700_p7  ;;  %p5178_p3 = por %p5177_p4, %p5176_p2 }
  0x39   : > { %p5172_p0 = pneg %p5171_p13 }
  0x3b   : > { %p5179_p1 = pnand %p5178_p3, %p5172_p0 }
  0x3d   : > { %5182 = shalt.err (!%p5179_p1)
}
  0x3e   : > { %s5539_s7 = smov 64   ;;  %s5540_s13 = smov 4  }
  0x3f   : > { %4898 = dma.hbm_to_vmem [thread:$0]  (!%p5688_p5), %s6528_s1, 4608, %s288_s22, [#allocation11], %s5539_s7, %s5539_s7, %s5540_s13  }
  0x40   : > { %s5541_s12 = smov [#allocation16]   ;;  %s6530_s3 = sld [smem:[#allocation38_spill]] }
  0x41   : > { %s339_s24 = sshll.u32 %s5541_s12, 4  ;;  %s340_s24 = int_to_ptr.vmem [resolvable:$true] %s339_s24 }
  0x46   : > { %s5183_s0 = scalar_lea.hbm %s6530_s3, 1024 }
  0x47   : > { %p5184_p1 = scmp.ne.s32.totalorder %s6530_s3, %s5183_s0  ;;  %p5190_p8 = scmp.lt.u32.totalorder %s5183_s0, %s6530_s3 }
  0x49   : > { %p5186_p3 = pnand %p5184_p1, %p5700_p7 }
  0x4b   : > { %p5187_p6 = pneg %p5186_p3 }
  0x4d   : > { %p5192_p9 = pnand %p5190_p8, %p5187_p6 }
  0x4f   : > { %5195 = shalt.err (!%p5192_p9)
}
  0x50   : > { %s5196_s22 = scalar_lea.vmem %s314_s25, 1024  ;;  %p5204_p13 = scmp.lt.s32.totalorder %s314_s25, %s314_s25 }
  0x51   : > { %p5197_p10 = scmp.ne.s32.totalorder %s314_s25, %s5196_s22  ;;  %p5205_p0 = scmp.lt.s32.totalorder %s5196_s22, %s5196_s22 }
  0x53   : > { %p5199_p11 = pnand %p5197_p10, %p5700_p7  ;;  %p5206_p2 = por %p5205_p0, %p5204_p13 }
  0x55   : > { %p5200_p12 = pneg %p5199_p11 }
  0x57   : > { %p5207_p4 = pnand %p5206_p2, %p5200_p12 }
  0x59   : > { %5210 = shalt.err (!%p5207_p4)
}
  0x5a   : > { %s6503_s27 = smov 128   ;;  %s6504_s20 = smov 8  }
  0x5b   : > { %4904 = dma.hbm_to_vmem [thread:$0]  (!%p5688_p5), %s6530_s3, 1024, %s314_s25, [#allocation14], %s6503_s27, %s6503_s27, %s6504_s20  }
  0x5c   : > { %s6531_s5 = sld [smem:[#allocation40_spill]] }
  0x62   : > { %s5211_s13 = scalar_lea.hbm %s6531_s5, 256 }
  0x63   : > { %p5212_p1 = scmp.ne.s32.totalorder %s6531_s5, %s5211_s13  ;;  %p5218_p8 = scmp.lt.u32.totalorder %s5211_s13, %s6531_s5 }
  0x65   : > { %p5214_p3 = pnand %p5212_p1, %p5700_p7 }
  0x67   : > { %p5215_p6 = pneg %p5214_p3 }
  0x69   : > { %p5220_p9 = pnand %p5218_p8, %p5215_p6 }
  0x6b   : > { %5223 = shalt.err (!%p5220_p9)
}
  0x6c   : > { %s5224_s18 = scalar_lea.vmem %s340_s24, 256  ;;  %p5232_p13 = scmp.lt.s32.totalorder %s340_s24, %s340_s24 }
  0x6d   : > { %p5225_p10 = scmp.ne.s32.totalorder %s340_s24, %s5224_s18  ;;  %p5233_p0 = scmp.lt.s32.totalorder %s5224_s18, %s5224_s18 }
  0x6f   : > { %p5227_p11 = pnand %p5225_p10, %p5700_p7  ;;  %p5234_p2 = por %p5233_p0, %p5232_p13 }
  0x71   : > { %p5228_p12 = pneg %p5227_p11 }
  0x73   : > { %p5235_p4 = pnand %p5234_p2, %p5228_p12 }
  0x75   : > { %5238 = shalt.err (!%p5235_p4)
}
  0x76   : > { %4910 = dma.hbm_to_vmem [thread:$0]  (!%p5688_p5), %s6531_s5, 256, %s340_s24, [#allocation17], %s6503_s27, %s6503_s27, %s6504_s20  }
  0x77   : > { %s5544_s0 = smov [#allocation12]   ;;  %s5545_s29 = smov [#allocation15]  }
  0x78   : > { %s300_s28 = sshll.u32 %s5544_s0, 4  ;;  %s326_s7 = sshll.u32 %s5545_s29, 4  ;;  %s301_s28 = int_to_ptr.vmem [resolvable:$true] %s300_s28  ;;  %s327_s7 = int_to_ptr.vmem [resolvable:$true] %s326_s7 }
  0x79   : > { %s6532_s2 = sld [smem:[#allocation37_spill]] }
  0x7f   : > { %s5239_s8 = scalar_lea.hbm %s6532_s2, 1024 }
  0x80   : > { %p5240_p1 = scmp.ne.s32.totalorder %s6532_s2, %s5239_s8  ;;  %p5246_p8 = scmp.lt.u32.totalorder %s5239_s8, %s6532_s2 }
  0x82   : > { %p5242_p3 = pnand %p5240_p1, %p5700_p7 }
  0x84   : > { %p5243_p6 = pneg %p5242_p3 }
  0x86   : > { %p5248_p9 = pnand %p5246_p8, %p5243_p6 }
  0x88   : > { %5251 = shalt.err (!%p5248_p9)
}
  0x89   : > { %s5252_s24 = scalar_lea.vmem %s301_s28, 1024  ;;  %p5260_p13 = scmp.lt.s32.totalorder %s301_s28, %s301_s28 }
  0x8a   : > { %p5253_p10 = scmp.ne.s32.totalorder %s301_s28, %s5252_s24  ;;  %p5261_p0 = scmp.lt.s32.totalorder %s5252_s24, %s5252_s24 }
  0x8c   : > { %p5255_p11 = pnand %p5253_p10, %p5700_p7  ;;  %p5262_p2 = por %p5261_p0, %p5260_p13 }
  0x8e   : > { %p5256_p12 = pneg %p5255_p11 }
  0x90   : > { %p5263_p4 = pnand %p5262_p2, %p5256_p12 }
  0x92   : > { %5266 = shalt.err (!%p5263_p4)
}
  0x93   : > { %4901 = dma.hbm_to_vmem [thread:$0]  (!%p5688_p5), %s6532_s2, 1024, %s301_s28, [#allocation11], %s6503_s27, %s6503_s27, %s6504_s20  }
  0x94   : > { %s6533_s4 = sld [smem:[#allocation39_spill]] }
  0x9a   : > { %s5267_s11 = scalar_lea.hbm %s6533_s4, 1024 }
  0x9b   : > { %p5268_p1 = scmp.ne.s32.totalorder %s6533_s4, %s5267_s11  ;;  %p5274_p8 = scmp.lt.u32.totalorder %s5267_s11, %s6533_s4 }
  0x9d   : > { %p5270_p3 = pnand %p5268_p1, %p5700_p7 }
  0x9f   : > { %p5271_p6 = pneg %p5270_p3 }
  0xa1   : > { %p5276_p9 = pnand %p5274_p8, %p5271_p6 }
  0xa3   : > { %5279 = shalt.err (!%p5276_p9)
}
  0xa4   : > { %s5280_s25 = scalar_lea.vmem %s327_s7, 1024  ;;  %p5288_p13 = scmp.lt.s32.totalorder %s327_s7, %s327_s7 }
  0xa5   : > { %p5281_p10 = scmp.ne.s32.totalorder %s327_s7, %s5280_s25  ;;  %p5289_p0 = scmp.lt.s32.totalorder %s5280_s25, %s5280_s25 }
  0xa7   : > { %p5283_p11 = pnand %p5281_p10, %p5700_p7  ;;  %p5290_p2 = por %p5289_p0, %p5288_p13 }
  0xa9   : > { %p5284_p12 = pneg %p5283_p11 }
  0xab   : > { %p5291_p4 = pnand %p5290_p2, %p5284_p12 }
  0xad   : > { %5294 = shalt.err (!%p5291_p4)
}
  0xae   : > { %4907 = dma.hbm_to_vmem [thread:$0]  (!%p5688_p5), %s6533_s4, 1024, %s327_s7, [#allocation14], %s6503_s27, %s6503_s27, %s6504_s20  }
  0xaf   : > { %s5546_s22 = smov [#allocation18]   ;;  %s6534_s6 = sld [smem:[#allocation41_spill]] }
  0xb0   : > { %s352_s0 = sshll.u32 %s5546_s22, 4  ;;  %s353_s0 = int_to_ptr.vmem [resolvable:$true] %s352_s0 }
  0xb5   : > { %s5295_s11 = scalar_lea.hbm %s6534_s6, 256 }
  0xb6   : > { %p5296_p1 = scmp.ne.s32.totalorder %s6534_s6, %s5295_s11  ;;  %p5302_p8 = scmp.lt.u32.totalorder %s5295_s11, %s6534_s6 }
  0xb8   : > { %p5298_p3 = pnand %p5296_p1, %p5700_p7 }
  0xba   : > { %p5299_p6 = pneg %p5298_p3 }
  0xbc   : > { %p5304_p9 = pnand %p5302_p8, %p5299_p6 }
  0xbe   : > { %5307 = shalt.err (!%p5304_p9)
}
  0xbf   : > { %s5308_s7 = scalar_lea.vmem %s353_s0, 256  ;;  %p5316_p13 = scmp.lt.s32.totalorder %s353_s0, %s353_s0 }
  0xc0   : > { %p5309_p10 = scmp.ne.s32.totalorder %s353_s0, %s5308_s7  ;;  %p5317_p0 = scmp.lt.s32.totalorder %s5308_s7, %s5308_s7 }
  0xc2   : > { %p5311_p11 = pnand %p5309_p10, %p5700_p7  ;;  %p5318_p2 = por %p5317_p0, %p5316_p13 }
  0xc4   : > { %p5312_p12 = pneg %p5311_p11 }
  0xc6   : > { %p5319_p4 = pnand %p5318_p2, %p5312_p12 }
  0xc8   : > { %5322 = shalt.err (!%p5319_p4)
}
  0xc9   : > { %4913 = dma.hbm_to_vmem [thread:$0]  (!%p5688_p5), %s6534_s6, 256, %s353_s0, [#allocation17], %s6503_s27, %s6503_s27, %s6504_s20  }
  0xca   : > { %s43_s21 = sadd.s32 1, %s5523_s14  ;;  %s46_s24 = sadd.s32 1, %s5527_s15 }
  0xcb   : > { %p44_p7 = scmp.ge.s32.totalorder %s43_s21, 2  ;;  %s50_s22 = sadd.s32 1, %s5531_s16 }
  0xcc   : > { %s54_s29 = ssub.s32 1, %s5527_s15  ;;  %s65_s11 = sadd.s32 1, %s5507_s10 }
  0xcd   : > { %s6585_s21 = smov (%p44_p7, %s43_s21), 0  ;;  %s6587_s24 = smov (!%p44_p7, %s46_s24), %s5527_s15 }
  0xce   : > { %s55_s13 = smul.u32 %s5523_s14, %s54_s29  ;;  %p48_p5 = scmp.ge.s32.totalorder %s6587_s24, 2 }
  0xcf   : > { %p72_p1 = scmp.ne.s32.totalorder %s5507_s10, %s5503_s9  ;;  %p73_p3 = scmp.eq.s32.totalorder %s5535_s17, 0 }
  0xd0   : > { %s5834_s0 = sadd.s32 %s5527_s15, %s55_s13  ;;  %s6589_s24 = smov (%p48_p5, %s6587_s24), 0 }
  0xd1   : > { %s6535_s8 = sld [smem:[#allocation30_spill]]  ;;  %s6591_s22 = smov (!%p48_p5, %s50_s22), %s5531_s16 }
  0xd2   : > { %s57_s12 = ssub.s32 1, %s6589_s24  ;;  %s6536_s26 = sld [smem:[#allocation29_spill]] }
  0xd3   : > { %p5841_p6 = por %p73_p3, %p72_p1  ;;  %p52_p8 = scmp.ge.s32.totalorder %s6591_s22, 2 }
  0xd4   : > { %s58_s7 = smul.u32 %s57_s12, %s6585_s21  ;;  %p78_p9 = scmp.ne.s32.totalorder %s5503_s9, %s5499_s30 }
  0xd5   : > { %s214_s25 = smul.u32 %s5523_s14, %s5527_s15  ;;  %s6538_s28 = sld [smem:[#allocation28_spill]] }
  0xd6   : > { %s6593_s22 = smov (%p52_p8, %s6591_s22), 0  ;;  %s59_s29 = sadd.s32 %s58_s7, %s6589_s24 }
  0xd7   : > { %p6539_p10 = scmp.ne.s32.totalorder %s6524_s19, 0  ;;  %s60_s27 = ssub.s32 %s5531_s16, %s6593_s22 }
  0xd8   : > { %s61_s20 = ssub.s32 %s5834_s0, %s59_s29  ;;  %s215_s30 = smul.u32 %s6589_s24, %s6585_s21 }
  0xd9   : > { %p5855_p11 = por %p6539_p10, %p78_p9  ;;  %s62_s12 = sor.u32 %s61_s20, %s60_s27 }
  0xda   : > { %p63_p12 = scmp.eq.s32.totalorder %s62_s12, 0  ;;  %s221_s23 = sadd.s32 1, %s6535_s8 }
  0xdb   : > { %s217_s1 = ssub.s32 %s214_s25, %s215_s30  ;;  %p231_p13 = scmp.ne.s32.totalorder %s6535_s8, %s6536_s26 }
  0xdc   : > { %s5868_s7 = scalar_select %p63_p12, %s5507_s10, %s65_s11  }
  0xdd   : > { %s218_s2 = sor.u32 %s217_s1, %s60_s27  ;;  %s6541_s3 = sadd.s32 4294967295, %s5535_s17  }
  0xde   : > { %p232_p0 = scmp.eq.s32.totalorder %s6541_s3, 7  ;;  %p219_p2 = scmp.eq.s32.totalorder %s218_s2, 0 }
  0xdf   : > { %p237_p4 = scmp.ne.s32.totalorder %s6536_s26, %s6538_s28  ;;  %s6543_s20 = sadd.s32 4294967294, %s5535_s17  }
  0xe0   : > { %p5874_p7 = por %p232_p0, %p231_p13  ;;  %p238_p5 = scmp.eq.s32.totalorder %s6543_s20, 7 }
  0xe1   : > { %s6595_s8 = smov (!%p219_p2, %s6535_s8), %s221_s23  ;;  %p4931_p3 = scmp.lt.s32.totalorder %s5535_s17, 8 }
  0xe2   : > { %s6542_s29 = scalar_select %p5874_p7, 1, 0 }
  0xe3   : > { %p5883_p1 = por %p238_p5, %p237_p4  ;;  %s366_s11 = sand.u32 1, %s5507_s10  }
  0xe4   : > { %s4462_s1 = sshll.u32 %s5834_s0, 2  ;;  %s4461_s27 = sshll.u32 %s366_s11, 4 }
  0xe5   : > { %s6544_s12 = scalar_select %p5883_p1, 1, 0 }
  0xe6   : > { %s4463_s3 = sshll.u32 %s5531_s16, 3  ;;  %s370_s26 = scalar_lea.vmem [#allocation7], %s4461_s27 }
  0xe7   : > { %s379_s2 = sadd.s32 %s4463_s3, %s4462_s1  ;;  %s382_s25 = sshll.u32 %s370_s26, 4  ;;  %s5891_s25 = int_to_ptr.vmem [resolvable:$true] %s382_s25 }
  0xe8   : > { %s4464_s28 = sshll.u32 %s379_s2, 6  ;;  %s6545_s20 = sld [smem:[#allocation35_spill]] }
  0xe9   : > { %p5900_p8 = pnand %p4931_p3, %p5841_p6  ;;  %s5904_s1 = scalar_lea.sflag [#allocation8], %s366_s11 }
  0xeb   : > { %p5325_p10 = pneg %p5900_p8 }
  0xee   : > { %s5896_s23 = scalar_lea.hbm %s6545_s20, %s4464_s28  ;;  %s5328_s3 = scalar_lea.hbm %s6545_s20, 1024 }
  0xef   : > { %s5323_s27 = scalar_lea.hbm %s5896_s23, 256  ;;  %p5329_p6 = scmp.lt.u32.totalorder %s5896_s23, %s6545_s20 }
  0xf0   : > { %p5324_p9 = scmp.ne.s32.totalorder %s5896_s23, %s5323_s27  ;;  %p5330_p0 = scmp.lt.u32.totalorder %s5328_s3, %s5323_s27 }
  0xf1   : > { %p5332_p4 = scmp.lt.u32.totalorder %s5323_s27, %s5896_s23 }
  0xf2   : > { %p5326_p12 = pnand %p5325_p10, %p5324_p9  ;;  %p5331_p2 = por %p5330_p0, %p5329_p6 }
  0xf4   : > { %p5327_p13 = pneg %p5326_p12  ;;  %p5333_p5 = por %p5332_p4, %p5331_p2 }
  0xf6   : > { %p5334_p3 = pnand %p5333_p5, %p5327_p13 }
  0xf8   : > { %5337 = shalt.err (!%p5334_p3)
}
  0xf9   : > { %s5338_s11 = scalar_lea.vmem %s5891_s25, 256  ;;  %s5547_s28 = smov [#allocation7]  }
  0xfa   : > { %p5339_p9 = scmp.ne.s32.totalorder %s5891_s25, %s5338_s11  ;;  %s5343_s30 = sshll.u32 %s5547_s28, 4  ;;  %s5344_s30 = int_to_ptr.vmem [resolvable:$false] %s5343_s30 }
  0xfb   : > { %s5345_s4 = scalar_lea.vmem %s5344_s30, 512  ;;  %p5346_p7 = scmp.lt.s32.totalorder %s5891_s25, %s5344_s30 }
  0xfc   : > { %p5341_p12 = pnand %p5339_p9, %p5325_p10  ;;  %p5347_p6 = scmp.lt.s32.totalorder %s5345_s4, %s5338_s11 }
  0xfe   : > { %p5342_p1 = pneg %p5341_p12  ;;  %p5348_p0 = por %p5347_p6, %p5346_p7 }
 0x100   : > { %p5349_p2 = pnand %p5348_p0, %p5342_p1 }
 0x102   : > { %5352 = shalt.err (!%p5349_p2)
}
 0x103   : > { %s6547_s27 = smov 8   ;;  %s6548_s18 = smov 128  }
 0x104   : > { %4917 = dma.hbm_to_vmem [thread:$0]  (!%p5900_p8), %s5896_s23, 256, %s5891_s25, %s5904_s1, %s6548_s18, %s6548_s18, %s6547_s27  }
 0x105   : > { %s6549_s3 = sld [smem:[#allocation34_spill]] }
 0x10b   : > { %p6550_p10 = scmp.ne.s32.totalorder %s6549_s3, 0 }
 0x10c   : > { %s396_s2 = sand.u32 (!%p6550_p10), 1, %s5503_s9  }
 0x10d   : > { %394 = sbr.rel (%p6550_p10) target bundleno = 1676 (0x68c), region = 48  ;;  %s5938_s26 = sshll.u32 (!%p6550_p10), %s396_s2, 4 }
 0x10e   : > { %s397_s11 = scalar_lea.sflag (!%p6550_p10), [#allocation8], %s396_s2  ;;  %s400_s28 = scalar_lea.vmem (!%p6550_p10), [#allocation7], %s5938_s26 }
 0x114   : > { %5462 = dma.done.wait (%p5855_p11), %s397_s11, 256  }
 0x115   : > { %5464 = vsyncadd (%p5855_p11), %s397_s11, 4294967040  ;;  %p6551_p7 = scmp.ne.s32.totalorder %s6524_s19, 0 }
 0x117   : > { %5466 = dma.done.wait (%p6551_p7), [#allocation11], 5632  }
 0x118   : > { %5468 = vsyncadd (%p6551_p7), [#allocation11], 4294961664 }
 0x119   : > { %5470 = dma.done.wait (%p6551_p7), [#allocation14], 2048  }
 0x11a   : > { %5472 = vsyncadd (%p6551_p7), [#allocation14], 4294965248 }
 0x11b   : > { %5474 = dma.done.wait (%p6551_p7), [#allocation17], 512  }
 0x11c   : > { %5476 = vsyncadd (%p6551_p7), [#allocation17], 4294966784  ;;  %s6552_s13 = sld [smem:[#allocation29_spill]]  ;;  %s6553_s4 = sld [smem:[#allocation32_spill]] }
 0x122   : > { %s5958_s25 = sand.u32 1, %s6552_s13   ;;  %p4475_p11 = scmp.ne.s32.totalorder %s6553_s4, 0 }
 0x123   : > { %s4473_s23 = sshll.u32 %s5958_s25, 2  ;;  %s4474_s0 = sshll.u32 %s5958_s25, 3 }
 0x124   : > { %s5962_s1 = scalar_lea.vmem [#allocation19], %s4473_s23  ;;  %s5964_s30 = scalar_lea.vmem [#allocation20], %s4474_s0 }
 0x125   : > { %471 = sbr.rel (%p4475_p11) target bundleno = 887 (0x377), region = 80  ;;  %s6554_s27 = sld [smem:[#allocation31_spill]] (!%p4475_p11) }
 0x12b   : > { %p4476_p1 = scmp.ne.s32.totalorder (!%p4475_p11), %s6554_s27, 0 }
 0x12c   : > { %vm476_vm0 = vcmask (!%p4476_p1), 7168   ;;  %v5548_v0 = vmov (!%p4476_p1), 0.0  }
 0x12d   : > { %475 = sbr.rel (%p4476_p1) target bundleno = 309 (0x135), region = 84  ;;  %477 = vst.msk [vmem:[#allocation3] sm:$0xff] (!%p4476_p1), %vm476_vm0, %v5548_v0  ;;  %478 = vst.msk [vmem:[#allocation3 + $0x8] sm:$0xff] (!%p4476_p1), %vm476_vm0, %v5548_v0 }
 0x12e   : > { %479 = vst.msk [vmem:[#allocation3 + $0x10] sm:$0xff] (!%p4476_p1), %vm476_vm0, %v5548_v0  ;;  %480 = vst.msk [vmem:[#allocation3 + $0x18] sm:$0xff] (!%p4476_p1), %vm476_vm0, %v5548_v0 }
 0x12f   : > { %481 = vst.msk [vmem:[#allocation3 + $0x20] sm:$0xff] (!%p4476_p1), %vm476_vm0, %v5548_v0  ;;  %482 = vst.msk [vmem:[#allocation3 + $0x28] sm:$0xff] (!%p4476_p1), %vm476_vm0, %v5548_v0 }
 0x130   : > { %483 = vst.msk [vmem:[#allocation3 + $0x30] sm:$0xff] (!%p4476_p1), %vm476_vm0, %v5548_v0  ;;  %484 = vst.msk [vmem:[#allocation3 + $0x38] sm:$0xff] (!%p4476_p1), %vm476_vm0, %v5548_v0 }
 0x131   : > { %485 = vst.msk [vmem:[#allocation4] sm:$0xff] (!%p4476_p1), %vm476_vm0, %v5548_v0  ;;  %486 = vst.msk [vmem:[#allocation4 + $0x8] sm:$0xff] (!%p4476_p1), %vm476_vm0, %v5548_v0 }
 0x132   : > { %487 = vst.msk [vmem:[#allocation4 + $0x10] sm:$0xff] (!%p4476_p1), %vm476_vm0, %v5548_v0  ;;  %488 = vst.msk [vmem:[#allocation4 + $0x18] sm:$0xff] (!%p4476_p1), %vm476_vm0, %v5548_v0 }
 0x133   : > { %489 = vst.msk [vmem:[#allocation4 + $0x20] sm:$0xff] (!%p4476_p1), %vm476_vm0, %v5548_v0  ;;  %490 = vst.msk [vmem:[#allocation4 + $0x28] sm:$0xff] (!%p4476_p1), %vm476_vm0, %v5548_v0 }
 0x134   : > { %491 = vst.msk [vmem:[#allocation4 + $0x30] sm:$0xff] %vm476_vm0, %v5548_v0  ;;  %492 = vst.msk [vmem:[#allocation4 + $0x38] sm:$0xff] %vm476_vm0, %v5548_v0 }
 0x135 PF: > { %v5064_v1 = vld [vmem:[%s400_s28] ss:$8 sps:$4 sm:$0xff]   ;;  %s5549_s19 = smov 121   ;;  %s5550_s18 = smov 105   ;;  %v5066_v2 = vld [vmem:[%s400_s28 + $0x4] ss:$8 sps:$4 sm:$0xff]  }
 0x136   : > { %662 = vrot.lane.b32.xlu1 %v5064_v1, %s5549_s19  ;;  %557 = vrot.lane.b32.xlu0 %v5064_v1, %s5550_s18  ;;  %v5067_v3 = vld [vmem:[#allocation10 + $0x60] sm:$0xff]   ;;  %vm564_vm1 = vcmask 130048   ;;  %s5551_s3 = smov 89   ;;  %s5552_s2 = smov 104   ;;  %vm666_vm2 = vcmask 990208   ;;  %vm561_vm3 = vcmask 859136  }
 0x137   : > { %v5068_v4 = vld [vmem:[#allocation10] sm:$0xff]   ;;  %4628 = vmatprep.mubr.msk.bf16.mxu1 %vm564_vm1, %v5067_v3  ;;  %s5553_s11 = smov 103   ;;  %s5554_s26 = smov 120   ;;  %v5069_v11 = vld [vmem:[#allocation10 + $0x68] sm:$0xff]   ;;  %vm779_vm4 = vcmask 728064   ;;  %v5071_v15 = vld [vmem:[#allocation10 + $0x70] sm:$0xff]  }
 0x138   : > { %4638 = vmatprep.mubr.msk.bf16.mxu0 %vm564_vm1, %v5068_v4  ;;  %s5555_s28 = smov 119   ;;  %s5556_s13 = smov 88   ;;  %v5070_v12 = vld [vmem:[#allocation10 + $0x8] sm:$0xff]   ;;  %v5073_v17 = vld [vmem:[#allocation10 + $0xc0] sm:$0xff]   ;;  %vm928_vm5 = vcmask 850944   ;;  %v5072_v21 = vld [vmem:[#allocation10 + $0x78] sm:$0xff]  }
 0x139   : > { %s5557_s23 = smov 87   ;;  %vm1283_vm6 = vcmask 842752   ;;  %v5075_v22 = vld [vmem:[#allocation10 + $0x10] sm:$0xff]   ;;  %v5074_v26 = vld [vmem:[#allocation10 + $0xc8] sm:$0xff]   ;;  %vm1387_vm7 = vcmask 973824   ;;  %v5077_v33 = vld [vmem:[#allocation10 + $0x18] sm:$0xff]  }
 0x13a   : > { %664 = vrot.lane.b32.xlu1 %v5066_v2, %s5549_s19  ;;  %559 = vrot.lane.b32.xlu0 %v5066_v2, %s5550_s18  ;;  %v5076_v27 = vld [vmem:[#allocation10 + $0xd0] sm:$0xff]   ;;  %v5078_v34 = vld [vmem:[#allocation10 + $0xd8] sm:$0xff]   ;;  %vm1032_vm8 = vcmask 982016   ;;  %v5079_v35 = vld [vmem:[#allocation10 + $0x80] sm:$0xff]   ;;  %vm1145_vm9 = vcmask 719872   ;;  %vm1500_vm10 = vcmask 711680  }
 0x13b   : > { %v5080_v36 = vld [vmem:[#allocation10 + $0xa0] sm:$0xff]   ;;  %v5081_v40 = vld [vmem:[#allocation10 + $0x88] sm:$0xff]   ;;  %v5083_v44 = vld [vmem:[#allocation10 + $0x90] sm:$0xff]   ;;  %s6555_s0 = sld [smem:[#allocation31_spill]] }
 0x13c   : > { %v5082_v41 = vld [vmem:[#allocation10 + $0xa8] sm:$0xff]   ;;  %v5084_v45 = vld [vmem:[#allocation10 + $0xb0] sm:$0xff]   ;;  %v5085_v48 = vld [vmem:[#allocation10 + $0x98] sm:$0xff]  }
 0x13d   : > { %v5086_v49 = vld [vmem:[#allocation10 + $0xb8] sm:$0xff]   ;;  %v5087_v50 = vld [vmem:[#allocation10 + $0x20] sm:$0xff]   ;;  %v5089_v52 = vld [vmem:[#allocation10 + $0x28] sm:$0xff]  }
 0x13e   : > { %777 = vrot.lane.b32.xlu1 %v5066_v2, %s5551_s3  ;;  %775 = vrot.lane.b32.xlu0 %v5064_v1, %s5551_s3  ;;  %v5088_v51 = vld [vmem:[#allocation10 + $0x40] sm:$0xff]   ;;  %v5090_v53 = vld [vmem:[#allocation10 + $0x48] sm:$0xff]   ;;  %v5091_v54 = vld [vmem:[#allocation10 + $0x30] sm:$0xff]  }
 0x13f   : > { %v5092_v55 = vld [vmem:[#allocation10 + $0x50] sm:$0xff]   ;;  %v5093_v56 = vld [vmem:[#allocation10 + $0x38] sm:$0xff]   ;;  %v5095_v58 = vld [vmem:[#allocation10 + $0xe0] sm:$0xff]  }
 0x140   : > { %v5094_v57 = vld [vmem:[#allocation10 + $0x58] sm:$0xff]   ;;  %v5096_v59 = vld [vmem:[#allocation10 + $0x100] sm:$0xff]   ;;  %v5097_v60 = vld [vmem:[#allocation10 + $0xe8] sm:$0xff]  }
 0x141   : > { %v5098_v61 = vld [vmem:[#allocation10 + $0x108] sm:$0xff]   ;;  %v5099_v62 = vld [vmem:[#allocation10 + $0xf0] sm:$0xff]   ;;  %v5101_v0 = vld [vmem:[#allocation10 + $0xf8] sm:$0xff]   ;;  %s4477_s4 = sshll.u32 %s6555_s0, 7  ;;  %s4553_s27 = sshll.u32 %s6555_s0, 6 }
 0x142   : > { %926 = vrot.lane.b32.xlu1 %v5066_v2, %s5552_s2  ;;  %924 = vrot.lane.b32.xlu0 %v5064_v1, %s5552_s2  ;;  %v5100_v63 = vld [vmem:[#allocation10 + $0x110] sm:$0xff]   ;;  %s6036_s19 = scalar_lea.vmem [#allocation2], %s4553_s27 }
 0x146   : > { %1281 = vrot.lane.b32.xlu1 %v5066_v2, %s5553_s11  ;;  %1279 = vrot.lane.b32.xlu0 %v5064_v1, %s5553_s11 }
 0x14a   : > { %1030 = vrot.lane.b32.xlu1 %v5066_v2, %s5554_s26  ;;  %1028 = vrot.lane.b32.xlu0 %v5064_v1, %s5554_s26 }
 0x14e   : > { %1385 = vrot.lane.b32.xlu1 %v5066_v2, %s5555_s28  ;;  %1383 = vrot.lane.b32.xlu0 %v5064_v1, %s5555_s28 }
 0x152   : > { %1143 = vrot.lane.b32.xlu1 %v5066_v2, %s5556_s13  ;;  %1141 = vrot.lane.b32.xlu0 %v5064_v1, %s5556_s13 }
 0x156   : > { %1498 = vrot.lane.b32.xlu1 %v5066_v2, %s5557_s23  ;;  %1496 = vrot.lane.b32.xlu0 %v5064_v1, %s5557_s23  ;;  %v5102_v1 = vld [vmem:[#allocation10 + $0x118] sm:$0xff]  }
 0x1a8   : > { %v663_v5 = vpop.permute.xlu1 %662  ;;  %v558_v6 = vpop.permute.xlu0 %557 }
 0x1ac   : > { %v665_v7 = vpop.permute.xlu1 %664  ;;  %v560_v8 = vpop.permute.xlu0 %559 }
 0x1ad   : > { %v667_v9 = vsel %vm666_vm2, %v663_v5, %v665_v7  ;;  %v562_v10 = vsel %vm561_vm3, %v558_v6, %v560_v8 }
 0x1ae   : > { %4626 = vmatprep.subr.bf16.mxu1 %v562_v10  ;;  %4636 = vmatprep.subr.bf16.mxu0 %v667_v9 }
 0x1af   : > { %4627 = vmatpush3.bf16.msra.mxu1 %v562_v10  ;;  %4637 = vmatpush3.bf16.msra.mxu0 %v667_v9 }
 0x1b0   : > { %v778_v13 = vpop.permute.xlu1 %777  ;;  %4751 = vmatprep.subr.bf16.mxu1 %v667_v9  ;;  %v776_v14 = vpop.permute.xlu0 %775 }
 0x1b1   : > { %v780_v16 = vsel %vm779_vm4, %v776_v14, %v778_v13  ;;  %v494_v14 = vlaneseq }
 0x1b2   : > { %4629 = vmatmul.mubr.msk.bf16.vlgmr.msra.gmra.mrb[0].mxu1 %vm564_vm1, %v5069_v11  ;;  %4639 = vmatmul.mubr.msk.bf16.vlgmr.msra.gmra.mrb[0].mxu0 %vm564_vm1, %v5070_v12 }
 0x1b3   : > { %4646 = vmatprep.subr.bf16.mxu0 %v780_v16  ;;  %4752 = vmatpush3.bf16.msra.mxu1 %v667_v9 }
 0x1b4   : > { %4647 = vmatpush3.bf16.msra.mxu0 %v780_v16  ;;  %v927_v18 = vpop.permute.xlu1 %926  ;;  %v925_v19 = vpop.permute.xlu0 %924  ;;  %4632 = vmatprep.mubr.msk.bf16.mxu1 %vm564_vm1, %v5071_v15 }
 0x1b5   : > { %v929_v20 = vsel %vm928_vm5, %v925_v19, %v927_v18  ;;  %4648 = vmatprep.mubr.msk.bf16.mxu0 %vm564_vm1, %v5073_v17 }
 0x1b6   : > { %4656 = vmatprep.subr.bf16.mxu1 %v929_v20 }
 0x1b8   : > { %v1282_v23 = vpop.permute.xlu1 %1281  ;;  %v1280_v24 = vpop.permute.xlu0 %1279 }
 0x1b9   : > { %v1284_v25 = vsel %vm1283_vm6, %v1280_v24, %v1282_v23  ;;  %v496_v24 = vstv %s4477_s4 }
 0x1ba   : > { %4633 = vmatmul.mubr.msk.bf16.gmra.mrb[4].mxu1 %vm564_vm1, %v5072_v21  ;;  %4686 = vmatprep.subr.bf16.mxu0 %v1284_v25 }
 0x1bb   : > { %4642 = vmatprep.mubr.msk.bf16.mxu1 %vm564_vm1, %v5075_v22 }
 0x1bc   : > { %v1031_v28 = vpop.permute.xlu1 %1030  ;;  %v1029_v29 = vpop.permute.xlu0 %1028 }
 0x1bd   : > { %v1033_v37 = vsel %vm1032_vm8, %v1029_v29, %v1031_v28 }
 0x1be   : > { %4649 = vmatmul.mubr.msk.bf16.vlgmr.msra.gmra.mrb[0].mxu0 %vm564_vm1, %v5074_v26 }
 0x1bf   : > { %4687 = vmatpush3.bf16.msra.mxu0 %v1284_v25  ;;  %4652 = vmatprep.mubr.msk.bf16.mxu0 %vm564_vm1, %v5076_v27 }
 0x1c0   : > { %v1386_v30 = vpop.permute.xlu1 %1385  ;;  %v1384_v31 = vpop.permute.xlu0 %1383 }
 0x1c1   : > { %v1388_v32 = vsel %vm1387_vm7, %v1384_v31, %v1386_v30 }
 0x1c2   : > { %4696 = vmatprep.subr.bf16.mxu0 %v1388_v32 }
 0x1c4   : > { %v1144_v38 = vpop.permute.xlu1 %1143  ;;  %v1142_v39 = vpop.permute.xlu0 %1141 }
 0x1c5   : > { %v1146_v46 = vsel %vm1145_vm9, %v1142_v39, %v1144_v38 }
 0x1c6   : > { %4643 = vmatmul.mubr.msk.bf16.vlgmr.msra.gmra.mrb[4].mxu1 %vm564_vm1, %v5077_v33  ;;  %4653 = vmatmul.mubr.msk.bf16.gmra.mrb[4].mxu0 %vm564_vm1, %v5078_v34 }
 0x1c7   : > { %4657 = vmatpush3.bf16.msra.mxu1 %v929_v20  ;;  %4658 = vmatprep.mubr.msk.bf16.mxu1 %vm564_vm1, %v5079_v35  ;;  %v495_v20 = vand.u32 127, %v494_v14 }
 0x1c8   : > { %4666 = vmatprep.subr.bf16.mxu1 %v1033_v37  ;;  %4688 = vmatprep.mubr.msk.bf16.mxu0 %vm564_vm1, %v5080_v36  ;;  %v1499_v42 = vpop.permute.xlu1 %1498  ;;  %v1497_v43 = vpop.permute.xlu0 %1496 }
 0x1c9   : > { %v1501_v47 = vsel %vm1500_vm10, %v1497_v43, %v1499_v42  ;;  %v497_v29 = vadd.s32 %v496_v24, %v495_v20 }
 0x1cb   : > { %v499_v30 = vsub.s32 0, %v497_v29  ;;  %vm498_vm11 = vcmp.lt.s32.totalorder %v497_v29, 0 }
 0x1cd   : > { %v4478_v31 = vmin.u32 %v499_v30, %v497_v29  ;;  %v1619_v29 = vld [vmem:[#allocation3 + $0x10] sm:$0xff] }
 0x1ce   : > { %4659 = vmatmul.mubr.msk.bf16.vlgmr.msra.gmra.mrb[8].mxu1 %vm564_vm1, %v5081_v40  ;;  %4689 = vmatmul.mubr.msk.bf16.vlgmr.msra.gmra.mrb[8].mxu0 %vm564_vm1, %v5082_v41 }
 0x1cf   : > { %4667 = vmatpush3.bf16.msra.mxu1 %v1033_v37  ;;  %4697 = vmatpush3.bf16.msra.mxu0 %v1388_v32  ;;  %v502_v32 = vand.u32 15, %v4478_v31  ;;  %v1660_v31 = vld [vmem:[#allocation4 + $0x10] sm:$0xff] }
 0x1d0   : > { %4662 = vmatprep.mubr.msk.bf16.mxu1 %vm564_vm1, %v5083_v44  ;;  %4692 = vmatprep.mubr.msk.bf16.mxu0 %vm564_vm1, %v5084_v45 }
 0x1d1   : > { %4676 = vmatprep.subr.bf16.mxu1 %v1146_v46  ;;  %4706 = vmatprep.subr.bf16.mxu0 %v1501_v47  ;;  %v503_v33 = vsub.s32 0, %v502_v32 }
 0x1d3   : > { %v504_v34 = vsel %vm498_vm11, %v503_v33, %v502_v32 }
 0x1d4   : > { %vm505_vm12 = vcmp.ne.s32.totalorder %v504_v34, 0  ;;  %vm506_vm13 = vcmp.lt.s32.totalorder %v504_v34, 0  ;;  %v508_v35 = vadd.s32 16, %v504_v34 }
 0x1d5   : > { %vm507_vm14 = vmand %vm506_vm13, %vm505_vm12 }
 0x1d6   : > { %4663 = vmatmul.mubr.msk.bf16.gmra.mrb[12].mxu1 %vm564_vm1, %v5085_v48  ;;  %4693 = vmatmul.mubr.msk.bf16.gmra.mrb[12].mxu0 %vm564_vm1, %v5086_v49  ;;  %v509_v36 = vsel %vm507_vm14, %v508_v35, %v504_v34  ;;  %v1617_v34 = vld [vmem:[#allocation3] sm:$0xff] }
 0x1d7   : > { %4668 = vmatprep.mubr.msk.bf16.mxu1 %vm564_vm1, %v5087_v50  ;;  %4698 = vmatprep.mubr.msk.bf16.mxu0 %vm564_vm1, %v5088_v51  ;;  %vm867_vm15 = vcmp.ne.s32.totalorder %v509_v36, 0  ;;  %vm1588_vm0 = vcmp.ne.s32.totalorder %v509_v36, 15 }
 0x1de   : > { %4669 = vmatmul.mubr.msk.bf16.vlgmr.msra.gmra.mrb[8].mxu1 %vm564_vm1, %v5089_v52  ;;  %4699 = vmatmul.mubr.msk.bf16.vlgmr.msra.gmra.mrb[8].mxu0 %vm564_vm1, %v5090_v53 }
 0x1df   : > { %4677 = vmatpush3.bf16.msra.mxu1 %v1146_v46  ;;  %4707 = vmatpush3.bf16.msra.mxu0 %v1501_v47 }
 0x1e0   : > { %4672 = vmatprep.mubr.msk.bf16.mxu1 %vm564_vm1, %v5091_v54  ;;  %4702 = vmatprep.mubr.msk.bf16.mxu0 %vm564_vm1, %v5092_v55 }
 0x1e6   : > { %4673 = vmatmul.mubr.msk.bf16.gmra.mrb[12].mxu1 %vm564_vm1, %v5093_v56  ;;  %4703 = vmatmul.mubr.msk.bf16.gmra.mrb[12].mxu0 %vm564_vm1, %v5094_v57 }
 0x1e7   : > { %4678 = vmatprep.mubr.msk.bf16.mxu1 %vm564_vm1, %v5095_v58  ;;  %4708 = vmatprep.mubr.msk.bf16.mxu0 %vm564_vm1, %v5096_v59 }
 0x1ee   : > { %4679 = vmatmul.mubr.msk.bf16.vlgmr.msra.gmra.mrb[8].mxu1 %vm564_vm1, %v5097_v60  ;;  %4709 = vmatmul.mubr.msk.bf16.vlgmr.msra.gmra.mrb[8].mxu0 %vm564_vm1, %v5098_v61 }
 0x1ef   : > { %4682 = vmatprep.mubr.msk.bf16.mxu1 %vm564_vm1, %v5099_v62  ;;  %4712 = vmatprep.mubr.msk.bf16.mxu0 %vm564_vm1, %v5100_v63 }
 0x1f6   : > { %4683 = vmatmul.mubr.msk.bf16.gmra.mrb[12].mxu1 %vm564_vm1, %v5101_v0  ;;  %4713 = vmatmul.mubr.msk.bf16.gmra.mrb[12].mxu0 %vm564_vm1, %v5102_v1  ;;  %vm1649_vm1 = vcmask 7168  }
 0x285   : > { %v4630_v2 = vpop.f32.mrb[0].mxu1 }
 0x286   : > { %v611_v3 = vpop.f32.mrb[1].mxu1 }
 0x287   : > { %v4631_v4 = vpop.f32.mrb[2].mxu1 }
 0x288   : > { %v614_v5 = vpop.f32.mrb[3].mxu1 }
 0x291   : > { %v4650_v6 = vpop.f32.mrb[0].mxu0 }
 0x292   : > { %v4753_v7 = vadd.f32 %v4650_v6, %v4630_v2  ;;  %v828_v8 = vpop.f32.mrb[1].mxu0 }
 0x293   : > { %v4754_v9 = vadd.f32 %v828_v8, %v611_v3  ;;  %v4651_v10 = vpop.f32.mrb[2].mxu0 }
 0x294   : > { %v4755_v11 = vadd.f32 %v4651_v10, %v4631_v4  ;;  %v831_v12 = vpop.f32.mrb[3].mxu0  ;;  %v872_v37 = vsel %vm867_vm15, %v4753_v7, 0.0 }
 0x295   : > { %v4756_v13 = vadd.f32 %v831_v12, %v614_v5  ;;  %v870_v42 = vsel %vm867_vm15, %v4754_v9, 0.0 }
 0x296   : > { %v873_v47 = vsel %vm867_vm15, %v4755_v11, 0.0 }
 0x297   : > { %v871_v53 = vsel %vm867_vm15, %v4756_v13, 0.0 }
 0x299   : > { %v4644_v15 = vpop.f32.mrb[4].mxu1  ;;  %v4654_v16 = vpop.f32.mrb[4].mxu0 }
 0x29a   : > { %v4757_v17 = vadd.f32 %v4654_v16, %v4644_v15  ;;  %v731_v18 = vpop.f32.mrb[5].mxu1  ;;  %v844_v19 = vpop.f32.mrb[5].mxu0 }
 0x29b   : > { %v4758_v21 = vadd.f32 %v844_v19, %v731_v18  ;;  %v4645_v22 = vpop.f32.mrb[6].mxu1  ;;  %v4655_v23 = vpop.f32.mrb[6].mxu0 }
 0x29c   : > { %v4759_v25 = vadd.f32 %v4655_v23, %v4645_v22  ;;  %v734_v26 = vpop.f32.mrb[7].mxu1  ;;  %v847_v27 = vpop.f32.mrb[7].mxu0  ;;  %v876_v62 = vsel %vm867_vm15, %v4757_v17, 0.0 }
 0x29d   : > { %v6025_v28 = vadd.f32 %v847_v27, %v734_v26  ;;  %v874_v3 = vsel %vm867_vm15, %v4758_v21, 0.0 }
 0x29e   : > { %v877_v8 = vsel %vm867_vm15, %v4759_v25, 0.0 }
 0x29f   : > { %v875_v14 = vsel %vm867_vm15, %v6025_v28, 0.0 }
 0x2c1   : > { %v4680_v38 = vpop.f32.mrb[8].mxu1  ;;  %v4710_v39 = vpop.f32.mrb[8].mxu0 }
 0x2c2   : > { %v1235_v40 = vadd.f32 %v4680_v38, %v872_v37  ;;  %v1593_v41 = vsel %vm1588_vm0, %v4710_v39, 0.0  ;;  %v1194_v43 = vpop.f32.mrb[9].mxu1  ;;  %v1549_v44 = vpop.f32.mrb[9].mxu0  ;;  %v1618_v37 = vld [vmem:[#allocation3 + $0x8] sm:$0xff] }
 0x2c3   : > { %v1233_v45 = vadd.f32 %v1194_v43, %v870_v42  ;;  %v1591_v46 = vsel %vm1588_vm0, %v1549_v44, 0.0  ;;  %v4681_v48 = vpop.f32.mrb[10].mxu1  ;;  %v4711_v49 = vpop.f32.mrb[10].mxu0  ;;  %v1658_v43 = vld [vmem:[#allocation4] sm:$0xff] }
 0x2c4   : > { %v1601_v50 = vadd.f32 %v1593_v41, %v1235_v40  ;;  %v1236_v51 = vadd.f32 %v4681_v48, %v873_v47  ;;  %v1594_v52 = vsel %vm1588_vm0, %v4711_v49, 0.0  ;;  %v1197_v54 = vpop.f32.mrb[11].mxu1  ;;  %v1552_v55 = vpop.f32.mrb[11].mxu0  ;;  %v1620_v40 = vld [vmem:[#allocation3 + $0x18] sm:$0xff]  ;;  %v1623_v49 = vld [vmem:[#allocation3 + $0x30] sm:$0xff] }
 0x2c5   : > { %v1599_v56 = vadd.f32 %v1591_v46, %v1233_v45  ;;  %v1234_v57 = vadd.f32 %v1197_v54, %v871_v53  ;;  %v1592_v58 = vsel %vm1588_vm0, %v1552_v55, 0.0  ;;  %v1661_v46 = vld [vmem:[#allocation4 + $0x18] sm:$0xff]  ;;  %v1621_v55 = vld [vmem:[#allocation3 + $0x20] sm:$0xff] }
 0x2c6   : > { %1611 = vst [vmem:[%s6036_s19 + $0x10] sm:$0xff] %v1601_v50  ;;  %v1602_v59 = vadd.f32 %v1594_v52, %v1236_v51  ;;  %1629 = vadd.xlane.f32.xlu0 %v1601_v50  ;;  %v1668_v60 = vmul.f32 %v1601_v50, %v1601_v50  ;;  %v1659_v52 = vld [vmem:[#allocation4 + $0x8] sm:$0xff] }
 0x2c7   : > { %1609 = vst [vmem:[%s6036_s19] sm:$0xff] %v1599_v56  ;;  %v1600_v61 = vadd.f32 %v1592_v58, %v1234_v57  ;;  %v1666_v21 = vmul.f32 %v1599_v56, %v1599_v56  ;;  %v1624_v58 = vld [vmem:[#allocation3 + $0x38] sm:$0xff] }
 0x2c8   : > { %1612 = vst [vmem:[%s6036_s19 + $0x18] sm:$0xff] %v1602_v59  ;;  %1678 = vadd.xlane.f32.xlu1 %v1668_v60  ;;  %v1669_v23 = vmul.f32 %v1602_v59, %v1602_v59 }
 0x2c9   : > { %1610 = vst [vmem:[%s6036_s19 + $0x8] sm:$0xff] %v1600_v61  ;;  %v4684_v63 = vpop.f32.mrb[12].mxu1  ;;  %v4714_v0 = vpop.f32.mrb[12].mxu0  ;;  %v1667_v24 = vmul.f32 %v1600_v61, %v1600_v61 }
 0x2ca   : > { %v1239_v1 = vadd.f32 %v4684_v63, %v876_v62  ;;  %v1597_v2 = vsel %vm1588_vm0, %v4714_v0, 0.0  ;;  %v1210_v4 = vpop.f32.mrb[13].mxu1  ;;  %v1565_v5 = vpop.f32.mrb[13].mxu0  ;;  %1625 = vadd.xlane.f32.xlu0 %v1599_v56  ;;  %v1622_v0 = vld [vmem:[#allocation3 + $0x28] sm:$0xff] }
 0x2cb   : > { %v1237_v6 = vadd.f32 %v1210_v4, %v874_v3  ;;  %v1595_v7 = vsel %vm1588_vm0, %v1565_v5, 0.0  ;;  %v4685_v9 = vpop.f32.mrb[14].mxu1  ;;  %v4715_v10 = vpop.f32.mrb[14].mxu0  ;;  %v1664_v3 = vld [vmem:[#allocation4 + $0x30] sm:$0xff] }
 0x2cc   : > { %v1605_v11 = vadd.f32 %v1597_v2, %v1239_v1  ;;  %v1240_v12 = vadd.f32 %v4685_v9, %v877_v8  ;;  %v1598_v13 = vsel %vm1588_vm0, %v4715_v10, 0.0  ;;  %v1213_v15 = vpop.f32.mrb[15].mxu1  ;;  %v1568_v16 = vpop.f32.mrb[15].mxu0  ;;  %1627 = vadd.xlane.f32.xlu1 %v1600_v61  ;;  %v1662_v61 = vld [vmem:[#allocation4 + $0x20] sm:$0xff]  ;;  %v1665_v10 = vld [vmem:[#allocation4 + $0x38] sm:$0xff] }
 0x2cd   : > { %v1603_v17 = vadd.f32 %v1595_v7, %v1237_v6  ;;  %v1238_v18 = vadd.f32 %v1213_v15, %v875_v14  ;;  %v1596_v19 = vsel %vm1588_vm0, %v1568_v16, 0.0  ;;  %v1663_v6 = vld [vmem:[#allocation4 + $0x28] sm:$0xff] }
 0x2ce   : > { %1615 = vst [vmem:[%s6036_s19 + $0x30] sm:$0xff] %v1605_v11  ;;  %v1606_v20 = vadd.f32 %v1598_v13, %v1240_v12  ;;  %1631 = vadd.xlane.f32.xlu0 %v1602_v59  ;;  %v1672_v26 = vmul.f32 %v1605_v11, %v1605_v11 }
 0x2cf   : > { %1613 = vst [vmem:[%s6036_s19 + $0x20] sm:$0xff] %v1603_v17  ;;  %v1604_v22 = vadd.f32 %v1596_v19, %v1238_v18  ;;  %v1670_v25 = vmul.f32 %v1603_v17, %v1603_v17 }
 0x2d0   : > { %1616 = vst [vmem:[%s6036_s19 + $0x38] sm:$0xff] %v1606_v20  ;;  %1674 = vadd.xlane.f32.xlu1 %v1666_v21  ;;  %v1673_v28 = vmul.f32 %v1606_v20, %v1606_v20 }
 0x2d1   : > { %1614 = vst [vmem:[%s6036_s19 + $0x28] sm:$0xff] %v1604_v22  ;;  %v1671_v27 = vmul.f32 %v1604_v22, %v1604_v22 }
 0x2d2   : > { %1680 = vadd.xlane.f32.xlu0 %v1669_v23 }
 0x2d4   : > { %1637 = vadd.xlane.f32.xlu1 %v1605_v11 }
 0x2d6   : > { %1676 = vadd.xlane.f32.xlu0 %v1667_v24 }
 0x2d8   : > { %1633 = vadd.xlane.f32.xlu1 %v1603_v17 }
 0x2da   : > { %1639 = vadd.xlane.f32.xlu0 %v1606_v20 }
 0x2dc   : > { %1682 = vadd.xlane.f32.xlu1 %v1670_v25 }
 0x2de   : > { %1635 = vadd.xlane.f32.xlu0 %v1604_v22 }
 0x2e0   : > { %1686 = vadd.xlane.f32.xlu1 %v1672_v26 }
 0x2e2   : > { %1684 = vadd.xlane.f32.xlu0 %v1671_v27 }
 0x2e6   : > { %1688 = vadd.xlane.f32.xlu0 %v1673_v28 }
 0x353   : > { %v1630_v30 = vpop.xlane.xlu0 %1629 }
 0x354   : > { %v1643_v32 = vadd.f32 %v1630_v30, %v1619_v29 }
 0x355   : > { %v1679_v33 = vpop.xlane.xlu1 %1678 }
 0x356   : > { %1652 = vst.msk [vmem:[#allocation3 + $0x10] sm:$0xff] %vm1649_vm1, %v1643_v32  ;;  %v1692_v35 = vadd.f32 %v1679_v33, %v1660_v31 }
 0x357   : > { %v1626_v36 = vpop.xlane.xlu0 %1625 }
 0x358   : > { %1700 = vst.msk [vmem:[#allocation4 + $0x10] sm:$0xff] %vm1649_vm1, %v1692_v35  ;;  %v1641_v38 = vadd.f32 %v1626_v36, %v1617_v34 }
 0x359   : > { %v1628_v39 = vpop.xlane.xlu1 %1627 }
 0x35a   : > { %1650 = vst.msk [vmem:[#allocation3] sm:$0xff] %vm1649_vm1, %v1641_v38  ;;  %v1642_v41 = vadd.f32 %v1628_v39, %v1618_v37 }
 0x35b   : > { %v1632_v42 = vpop.xlane.xlu0 %1631 }
 0x35c   : > { %1651 = vst.msk [vmem:[#allocation3 + $0x8] sm:$0xff] %vm1649_vm1, %v1642_v41  ;;  %v1644_v44 = vadd.f32 %v1632_v42, %v1620_v40 }
 0x35d   : > { %v1675_v45 = vpop.xlane.xlu1 %1674 }
 0x35e   : > { %1653 = vst.msk [vmem:[#allocation3 + $0x18] sm:$0xff] %vm1649_vm1, %v1644_v44  ;;  %v1690_v47 = vadd.f32 %v1675_v45, %v1658_v43 }
 0x35f   : > { %v1681_v48 = vpop.xlane.xlu0 %1680 }
 0x360   : > { %1698 = vst.msk [vmem:[#allocation4] sm:$0xff] %vm1649_vm1, %v1690_v47  ;;  %v1693_v50 = vadd.f32 %v1681_v48, %v1661_v46 }
 0x361   : > { %v1638_v51 = vpop.xlane.xlu1 %1637 }
 0x362   : > { %1701 = vst.msk [vmem:[#allocation4 + $0x18] sm:$0xff] %vm1649_vm1, %v1693_v50  ;;  %v1647_v53 = vadd.f32 %v1638_v51, %v1623_v49 }
 0x363   : > { %v1677_v54 = vpop.xlane.xlu0 %1676 }
 0x364   : > { %1656 = vst.msk [vmem:[#allocation3 + $0x30] sm:$0xff] %vm1649_vm1, %v1647_v53  ;;  %v1691_v56 = vadd.f32 %v1677_v54, %v1659_v52 }
 0x365   : > { %v1634_v57 = vpop.xlane.xlu1 %1633 }
 0x366   : > { %1699 = vst.msk [vmem:[#allocation4 + $0x8] sm:$0xff] %vm1649_vm1, %v1691_v56  ;;  %v1645_v59 = vadd.f32 %v1634_v57, %v1621_v55 }
 0x367   : > { %v1640_v60 = vpop.xlane.xlu0 %1639 }
 0x368   : > { %1654 = vst.msk [vmem:[#allocation3 + $0x20] sm:$0xff] %vm1649_vm1, %v1645_v59  ;;  %v1648_v62 = vadd.f32 %v1640_v60, %v1624_v58 }
 0x369   : > { %v1683_v63 = vpop.xlane.xlu1 %1682 }
 0x36a   : > { %1657 = vst.msk [vmem:[#allocation3 + $0x38] sm:$0xff] %vm1649_vm1, %v1648_v62  ;;  %v1694_v1 = vadd.f32 %v1683_v63, %v1662_v61 }
 0x36b   : > { %v1636_v2 = vpop.xlane.xlu0 %1635 }
 0x36c   : > { %1702 = vst.msk [vmem:[#allocation4 + $0x20] sm:$0xff] %vm1649_vm1, %v1694_v1  ;;  %v1646_v4 = vadd.f32 %v1636_v2, %v1622_v0 }
 0x36d   : > { %v1687_v5 = vpop.xlane.xlu1 %1686 }
 0x36e   : > { %1655 = vst.msk [vmem:[#allocation3 + $0x28] sm:$0xff] %vm1649_vm1, %v1646_v4  ;;  %v1696_v7 = vadd.f32 %v1687_v5, %v1664_v3 }
 0x36f   : > { %v1685_v8 = vpop.xlane.xlu0 %1684 }
 0x370   : > { %1704 = vst.msk [vmem:[#allocation4 + $0x30] sm:$0xff] %vm1649_vm1, %v1696_v7  ;;  %v1695_v9 = vadd.f32 %v1685_v8, %v1663_v6 }
 0x372   : > { %1703 = vst.msk [vmem:[#allocation4 + $0x28] sm:$0xff] %vm1649_vm1, %v1695_v9 }
 0x373   : > { %v1689_v11 = vpop.xlane.xlu0 %1688 }
 0x374   : > { %v1697_v12 = vadd.f32 %v1689_v11, %v1665_v10 }
 0x376   : > { %1705 = vst.msk [vmem:[#allocation4 + $0x38] sm:$0xff] %vm1649_vm1, %v1697_v12 }
 0x377 PF: > { %s6556_s18 = sld [smem:[#allocation32_spill]] }
 0x37d   : > { %p4554_p8 = scmp.ne.s32.totalorder %s6556_s18, 1 }
 0x37e   : > { %s6557_s3 = sld [smem:[#allocation31_spill]] (!%p4554_p8) }
 0x37f   : > { %1709 = sbr.rel (%p4554_p8) target bundleno = 1621 (0x655), region = 88 }
 0x384   : > { %p4555_p13 = scmp.ne.s32.totalorder (!%p4554_p8), %s6557_s3, 0 }
 0x386   : > { %1713 = sbr.rel (%p4555_p13) target bundleno = 1205 (0x4b5), region = 92  ;;  %v1714_v13 = vld [vmem:[#allocation12] sm:$0xff] (!%p4555_p13)  ;;  %v1802_v15 = vlaneseq (!%p4555_p13)  ;;  %vm1843_vm2 = vcmask (!%p4555_p13), 7168   ;;  %v1715_v19 = vld [vmem:[#allocation12 + $0x8] sm:$0xff] (!%p4555_p13)  ;;  %v1716_v26 = vld [vmem:[#allocation12 + $0x10] sm:$0xff] (!%p4555_p13) }
 0x387   : > { %v1722_v14 = vld [vmem:[#allocation3] sm:$0xff] (!%p4555_p13)  ;;  %v1730_v16 = vmul.f32 (!%p4555_p13), 256.0, %v1714_v13  ;;  %v1754_v17 = vmul.f32 (!%p4555_p13), 2.0, %v1714_v13  ;;  %v1778_v18 = vmul.f32 (!%p4555_p13), %v1714_v13, %v1714_v13  ;;  %v1723_v20 = vld [vmem:[#allocation3 + $0x8] sm:$0xff] (!%p4555_p13)  ;;  %v1731_v23 = vmul.f32 (!%p4555_p13), 256.0, %v1715_v19  ;;  %v1724_v34 = vld [vmem:[#allocation3 + $0x10] sm:$0xff] (!%p4555_p13) }
 0x388   : > { %v6073_v21 = vshrl.u32 (!%p4555_p13), %v1802_v15, 7  ;;  %v1746_v22 = vld [vmem:[#allocation4] sm:$0xff] (!%p4555_p13)  ;;  %v1755_v24 = vmul.f32 (!%p4555_p13), 2.0, %v1715_v19  ;;  %v1779_v25 = vmul.f32 (!%p4555_p13), %v1715_v19, %v1715_v19  ;;  %v1747_v30 = vld [vmem:[#allocation4 + $0x8] sm:$0xff] (!%p4555_p13)  ;;  %v1756_v31 = vmul.f32 (!%p4555_p13), 2.0, %v1716_v26  ;;  %v1748_v47 = vld [vmem:[#allocation4 + $0x10] sm:$0xff] (!%p4555_p13) }
 0x389   : > { %v1738_v27 = vadd.f32 (!%p4555_p13), %v1730_v16, %v1722_v14  ;;  %v1762_v28 = vmul.f32 (!%p4555_p13), %v1754_v17, %v1722_v14  ;;  %v1786_v29 = vmul.f32 (!%p4555_p13), 256.0, %v1778_v18  ;;  %v1739_v32 = vadd.f32 (!%p4555_p13), %v1731_v23, %v1723_v20  ;;  %v1717_v52 = vld [vmem:[#allocation12 + $0x18] sm:$0xff] (!%p4555_p13)  ;;  %v1718_v3 = vld [vmem:[#allocation12 + $0x20] sm:$0xff] (!%p4555_p13) }
 0x38a   : > { %vm1942_vm3 = vcmp.ge.s32.totalorder (!%p4555_p13), %v6073_v21, 4  ;;  %vm1819_vm4 = vcmp.lt.s32.totalorder (!%p4555_p13), %v6073_v21, 4  ;;  %v1763_v33 = vmul.f32 (!%p4555_p13), %v1755_v24, %v1723_v20  ;;  %v6082_v38 = vadd.s32 (!%p4555_p13), 8, %v6073_v21  ;;  %v1725_v59 = vld [vmem:[#allocation3 + $0x18] sm:$0xff] (!%p4555_p13)  ;;  %v1726_v15 = vld [vmem:[#allocation3 + $0x20] sm:$0xff] (!%p4555_p13) }
 0x38b   : > { %v1966_v35 = vsel (!%p4555_p13), %vm1942_vm3, %v1738_v27, 0.0  ;;  %v1835_v36 = vsel (!%p4555_p13), %vm1819_vm4, %v1738_v27, 0.0  ;;  %v1770_v37 = vadd.f32 (!%p4555_p13), %v1762_v28, %v1746_v22  ;;  %v1787_v42 = vmul.f32 (!%p4555_p13), 256.0, %v1779_v25  ;;  %v1749_v5 = vld [vmem:[#allocation4 + $0x18] sm:$0xff] (!%p4555_p13)  ;;  %v1719_v27 = vld [vmem:[#allocation12 + $0x28] sm:$0xff] (!%p4555_p13) }
 0x38c   : > { %v1974_v39 = vsel (!%p4555_p13), %vm1843_vm2, %v1966_v35, 0.0  ;;  %v1844_v40 = vsel (!%p4555_p13), %vm1843_vm2, %v1835_v36, 0.0  ;;  %v1771_v41 = vadd.f32 (!%p4555_p13), %v1763_v33, %v1747_v30  ;;  %vm2080_vm5 = vcmp.lt.s32.totalorder (!%p4555_p13), %v6082_v38, 12 }
 0x38d   : > { %1989 = vadd.xlane.f32.xlu1 %v1974_v39  ;;  %1859 = vadd.xlane.f32.xlu0 %v1844_v40  ;;  %v1794_v43 = vadd.f32 %v1786_v29, %v1770_v37  ;;  %v1764_v44 = vmul.f32 %v1756_v31, %v1724_v34  ;;  %v2096_v45 = vsel %vm2080_vm5, %v1739_v32, 0.0  ;;  %vm2201_vm6 = vcmp.ge.s32.totalorder %v6082_v38, 12  ;;  %v1727_v37 = vld [vmem:[#allocation3 + $0x28] sm:$0xff] }
 0x38e   : > { %v1795_v46 = vadd.f32 %v1787_v42, %v1771_v41  ;;  %v1780_v48 = vmul.f32 %v1716_v26, %v1716_v26  ;;  %v2104_v50 = vsel %vm1843_vm2, %v2096_v45, 0.0  ;;  %v2225_v56 = vsel %vm2201_vm6, %v1739_v32, 0.0 }
 0x38f   : > { %v1999_v49 = vsel %vm1942_vm3, %v1794_v43, 0.0  ;;  %v1869_v51 = vsel %vm1819_vm4, %v1794_v43, 0.0  ;;  %v1772_v57 = vadd.f32 %v1764_v44, %v1748_v47  ;;  %v6103_v61 = vadd.s32 16, %v6073_v21  ;;  %v1751_v47 = vld [vmem:[#allocation4 + $0x28] sm:$0xff] }
 0x390   : > { %v2007_v53 = vsel %vm1843_vm2, %v1999_v49, 0.0  ;;  %v2129_v54 = vsel %vm2080_vm5, %v1795_v46, 0.0  ;;  %v1877_v55 = vsel %vm1843_vm2, %v1869_v51, 0.0  ;;  %v1788_v58 = vmul.f32 256.0, %v1780_v48  ;;  %v1720_v48 = vld [vmem:[#allocation12 + $0x30] sm:$0xff] }
 0x391   : > { %2022 = vadd.xlane.f32.xlu1 %v2007_v53  ;;  %2118 = vadd.xlane.f32.xlu0 %v2104_v50  ;;  %v2137_v60 = vsel %vm1843_vm2, %v2129_v54, 0.0  ;;  %v1732_v62 = vmul.f32 256.0, %v1716_v26  ;;  %v1757_v63 = vmul.f32 2.0, %v1717_v52  ;;  %v2258_v0 = vsel %vm2201_vm6, %v1795_v46, 0.0  ;;  %v1750_v26 = vld [vmem:[#allocation4 + $0x20] sm:$0xff] }
 0x392   : > { %v1796_v1 = vadd.f32 %v1788_v58, %v1772_v57  ;;  %v1781_v2 = vmul.f32 %v1717_v52, %v1717_v52  ;;  %vm2339_vm7 = vcmp.lt.s32.totalorder %v6103_v61, 20  ;;  %v2233_v7 = vsel %vm1843_vm2, %v2225_v56, 0.0  ;;  %v1728_v58 = vld [vmem:[#allocation3 + $0x30] sm:$0xff] }
 0x393   : > { %v1740_v4 = vadd.f32 %v1732_v62, %v1724_v34  ;;  %v1765_v6 = vmul.f32 %v1757_v63, %v1725_v59  ;;  %v2266_v8 = vsel %vm1843_vm2, %v2258_v0, 0.0  ;;  %vm2460_vm8 = vcmp.ge.s32.totalorder %v6103_v61, 20 }
 0x394   : > { %v2388_v9 = vsel %vm2339_vm7, %v1796_v1, 0.0  ;;  %v1758_v10 = vmul.f32 2.0, %v1718_v3  ;;  %v1789_v13 = vmul.f32 256.0, %v1781_v2  ;;  %v1733_v14 = vmul.f32 256.0, %v1717_v52 }
 0x395   : > { %2151 = vadd.xlane.f32.xlu1 %v2137_v60  ;;  %1892 = vadd.xlane.f32.xlu0 %v1877_v55  ;;  %v2355_v11 = vsel %vm2339_vm7, %v1740_v4, 0.0  ;;  %v1773_v12 = vadd.f32 %v1765_v6, %v1749_v5  ;;  %v6116_v16 = vadd.s32 24, %v6073_v21  ;;  %v2397_v17 = vsel %vm1843_vm2, %v2388_v9, 0.0  ;;  %v1752_v5 = vld [vmem:[#allocation4 + $0x30] sm:$0xff] }
 0x396   : > { %v2517_v18 = vsel %vm2460_vm8, %v1796_v1, 0.0  ;;  %v2364_v19 = vsel %vm1843_vm2, %v2355_v11, 0.0  ;;  %v2484_v20 = vsel %vm2460_vm8, %v1740_v4, 0.0  ;;  %v1766_v22 = vmul.f32 %v1758_v10, %v1726_v15  ;;  %v1721_v4 = vld [vmem:[#allocation12 + $0x38] sm:$0xff] }
 0x397   : > { %v1782_v23 = vmul.f32 %v1718_v3, %v1718_v3  ;;  %v1797_v24 = vadd.f32 %v1789_v13, %v1773_v12  ;;  %v1741_v25 = vadd.f32 %v1733_v14, %v1725_v59  ;;  %vm2598_vm9 = vcmp.lt.s32.totalorder %v6116_v16, 28 }
 0x398   : > { %v2526_v28 = vsel %vm1843_vm2, %v2517_v18, 0.0  ;;  %v2493_v29 = vsel %vm1843_vm2, %v2484_v20, 0.0  ;;  %vm2719_vm10 = vcmp.ge.s32.totalorder %v6116_v16, 28  ;;  %v1774_v30 = vadd.f32 %v1766_v22, %v1750_v26  ;;  %v1753_v26 = vld [vmem:[#allocation4 + $0x38] sm:$0xff] }
 0x399   : > { %2280 = vadd.xlane.f32.xlu1 %v2266_v8  ;;  %2247 = vadd.xlane.f32.xlu0 %v2233_v7  ;;  %v1790_v31 = vmul.f32 256.0, %v1782_v23  ;;  %v1734_v32 = vmul.f32 256.0, %v1718_v3  ;;  %v2647_v33 = vsel %vm2598_vm9, %v1797_v24, 0.0  ;;  %v2614_v34 = vsel %vm2598_vm9, %v1741_v25, 0.0 }
 0x39a   : > { %v6133_v35 = vadd.s32 32, %v6073_v21  ;;  %v1759_v36 = vmul.f32 2.0, %v1719_v27  ;;  %v2743_v39 = vsel %vm2719_vm10, %v1741_v25, 0.0  ;;  %v2657_v40 = vsel %vm1843_vm2, %v2647_v33, 0.0 }
 0x39b   : > { %v2624_v41 = vsel %vm1843_vm2, %v2614_v34, 0.0  ;;  %v1798_v42 = vadd.f32 %v1790_v31, %v1774_v30  ;;  %v1742_v43 = vadd.f32 %v1734_v32, %v1726_v15  ;;  %v2776_v44 = vsel %vm2719_vm10, %v1797_v24, 0.0  ;;  %v1729_v15 = vld [vmem:[#allocation3 + $0x38] sm:$0xff] }
 0x39c   : > { %vm2857_vm11 = vcmp.lt.s32.totalorder %v6133_v35, 36  ;;  %v1767_v45 = vmul.f32 %v1759_v36, %v1727_v37  ;;  %v1783_v46 = vmul.f32 %v1719_v27, %v1719_v27  ;;  %v2753_v49 = vsel %vm1843_vm2, %v2743_v39, 0.0 }
 0x39d   : > { %2409 = vadd.xlane.f32.xlu1 %v2397_v17  ;;  %2376 = vadd.xlane.f32.xlu0 %v2364_v19  ;;  %v2786_v50 = vsel %vm1843_vm2, %v2776_v44, 0.0  ;;  %v2906_v51 = vsel %vm2857_vm11, %v1798_v42, 0.0  ;;  %v2873_v52 = vsel %vm2857_vm11, %v1742_v43, 0.0  ;;  %vm2978_vm12 = vcmp.ge.s32.totalorder %v6133_v35, 36 }
 0x39e   : > { %v1775_v53 = vadd.f32 %v1767_v45, %v1751_v47  ;;  %v1791_v54 = vmul.f32 256.0, %v1783_v46  ;;  %v1735_v55 = vmul.f32 256.0, %v1719_v27  ;;  %v1760_v56 = vmul.f32 2.0, %v1720_v48 }
 0x39f   : > { %v6150_v57 = vadd.s32 40, %v6073_v21  ;;  %v2917_v59 = vsel %vm1843_vm2, %v2906_v51, 0.0  ;;  %v2884_v60 = vsel %vm1843_vm2, %v2873_v52, 0.0  ;;  %v3035_v62 = vsel %vm2978_vm12, %v1798_v42, 0.0 }
 0x3a0   : > { %v3002_v63 = vsel %vm2978_vm12, %v1742_v43, 0.0  ;;  %v1799_v0 = vadd.f32 %v1791_v54, %v1775_v53  ;;  %v1743_v1 = vadd.f32 %v1735_v55, %v1727_v37  ;;  %v1768_v2 = vmul.f32 %v1760_v56, %v1728_v58 }
 0x3a1   : > { %2538 = vadd.xlane.f32.xlu1 %v2526_v28  ;;  %2505 = vadd.xlane.f32.xlu0 %v2493_v29  ;;  %v1784_v3 = vmul.f32 %v1720_v48, %v1720_v48  ;;  %vm3116_vm13 = vcmp.lt.s32.totalorder %v6150_v57, 44  ;;  %v3013_v6 = vsel %vm1843_vm2, %v3002_v63, 0.0  ;;  %v6161_v7 = vadd.s32 48, %v6073_v21 }
 0x3a2   : > { %v3046_v8 = vsel %vm1843_vm2, %v3035_v62, 0.0  ;;  %vm3237_vm14 = vcmp.ge.s32.totalorder %v6150_v57, 44  ;;  %v1736_v9 = vmul.f32 256.0, %v1720_v48  ;;  %v1761_v10 = vmul.f32 2.0, %v1721_v4 }
 0x3a3   : > { %v3165_v11 = vsel %vm3116_vm13, %v1799_v0, 0.0  ;;  %v3132_v12 = vsel %vm3116_vm13, %v1743_v1, 0.0  ;;  %v1776_v13 = vadd.f32 %v1768_v2, %v1752_v5  ;;  %v1792_v14 = vmul.f32 256.0, %v1784_v3 }
 0x3a4   : > { %vm6506_vm15 = vcmp.lt.s32.totalorder %v6161_v7, 52  ;;  %v3177_v17 = vsel %vm1843_vm2, %v3165_v11, 0.0  ;;  %v3144_v18 = vsel %vm1843_vm2, %v3132_v12, 0.0  ;;  %v3261_v19 = vsel %vm3237_vm14, %v1743_v1, 0.0 }
 0x3a5   : > { %2667 = vadd.xlane.f32.xlu1 %v2657_v40  ;;  %2634 = vadd.xlane.f32.xlu0 %v2624_v41  ;;  %v1744_v20 = vadd.f32 %v1736_v9, %v1728_v58  ;;  %v3294_v22 = vsel %vm3237_vm14, %v1799_v0, 0.0  ;;  %v1800_v23 = vadd.f32 %v1792_v14, %v1776_v13  ;;  %v1769_v24 = vmul.f32 %v1761_v10, %v1729_v15 }
 0x3a6   : > { %v1785_v25 = vmul.f32 %v1721_v4, %v1721_v4  ;;  %v3306_v27 = vsel %vm1843_vm2, %v3294_v22, 0.0  ;;  %v3273_v28 = vsel %vm1843_vm2, %v3261_v19, 0.0  ;;  %v1737_v33 = vmul.f32 256.0, %v1721_v4 }
 0x3a7   : > { %v3391_v29 = vsel %vm6506_vm15, %v1744_v20, 0.0  ;;  %v3424_v30 = vsel %vm6506_vm15, %v1800_v23, 0.0  ;;  %v1777_v31 = vadd.f32 %v1769_v24, %v1753_v26  ;;  %vm3496_vm0 = vcmp.ge.s32.totalorder %v6161_v7, 52 }
 0x3a8   : > { %v1793_v32 = vmul.f32 256.0, %v1785_v25  ;;  %v6184_v34 = vadd.s32 56, %v6073_v21  ;;  %v3437_v36 = vsel %vm1843_vm2, %v3424_v30, 0.0  ;;  %v3404_v37 = vsel %vm1843_vm2, %v3391_v29, 0.0 }
 0x3a9   : > { %2796 = vadd.xlane.f32.xlu1 %v2786_v50  ;;  %2763 = vadd.xlane.f32.xlu0 %v2753_v49  ;;  %v3553_v39 = vsel %vm3496_vm0, %v1800_v23, 0.0  ;;  %v3520_v40 = vsel %vm3496_vm0, %v1744_v20, 0.0  ;;  %v1745_v42 = vadd.f32 %v1737_v33, %v1729_v15 }
 0x3aa   : > { %v1801_v41 = vadd.f32 %v1793_v32, %v1777_v31  ;;  %vm3634_vm1 = vcmp.lt.s32.totalorder %v6184_v34, 60  ;;  %v3566_v43 = vsel %vm1843_vm2, %v3553_v39, 0.0  ;;  %v3533_v44 = vsel %vm1843_vm2, %v3520_v40, 0.0 }
 0x3ab   : > { %v3650_v46 = vsel %vm3634_vm1, %v1745_v42, 0.0  ;;  %vm3755_vm15 = vcmp.ge.s32.totalorder %v6184_v34, 60 }
 0x3ac   : > { %v3683_v45 = vsel %vm3634_vm1, %v1801_v41, 0.0  ;;  %v3664_v48 = vsel %vm1843_vm2, %v3650_v46, 0.0  ;;  %v3812_v49 = vsel %vm3755_vm15, %v1801_v41, 0.0  ;;  %v3779_v50 = vsel %vm3755_vm15, %v1745_v42, 0.0 }
 0x3ad   : > { %2925 = vadd.xlane.f32.xlu1 %v2917_v59  ;;  %2892 = vadd.xlane.f32.xlu0 %v2884_v60  ;;  %v3697_v47 = vsel %vm1843_vm2, %v3683_v45, 0.0  ;;  %v3826_v51 = vsel %vm1843_vm2, %v3812_v49, 0.0  ;;  %v3793_v52 = vsel %vm1843_vm2, %v3779_v50, 0.0 }
 0x3b1   : > { %3054 = vadd.xlane.f32.xlu1 %v3046_v8  ;;  %3021 = vadd.xlane.f32.xlu0 %v3013_v6 }
 0x3b5   : > { %3183 = vadd.xlane.f32.xlu1 %v3177_v17  ;;  %3150 = vadd.xlane.f32.xlu0 %v3144_v18 }
 0x3b9   : > { %3312 = vadd.xlane.f32.xlu1 %v3306_v27  ;;  %3279 = vadd.xlane.f32.xlu0 %v3273_v28 }
 0x3bd   : > { %3441 = vadd.xlane.f32.xlu1 %v3437_v36  ;;  %3408 = vadd.xlane.f32.xlu0 %v3404_v37 }
 0x3c1   : > { %3570 = vadd.xlane.f32.xlu1 %v3566_v43  ;;  %3537 = vadd.xlane.f32.xlu0 %v3533_v44 }
 0x3c5   : > { %3699 = vadd.xlane.f32.xlu1 %v3697_v47  ;;  %3666 = vadd.xlane.f32.xlu0 %v3664_v48 }
 0x3c9   : > { %3828 = vadd.xlane.f32.xlu1 %v3826_v51  ;;  %3795 = vadd.xlane.f32.xlu0 %v3793_v52 }
 0x41a   : > { %v1990_v53 = vpop.xlane.xlu1 %1989  ;;  %v1860_v54 = vpop.xlane.xlu0 %1859 }
 0x41b   : > { %v1991_v55 = vrot.slane %v1990_v53, 4  ;;  %v1861_v56 = vrot.slane %v1860_v54, 4 }
 0x41d   : > { %v1862_v58 = vadd.f32 %v1861_v56, %v1860_v54  ;;  %v1992_v59 = vadd.f32 %v1991_v55, %v1990_v53 }
 0x41e   : > { %v2023_v60 = vpop.xlane.xlu1 %2022  ;;  %v2119_v62 = vpop.xlane.xlu0 %2118 }
 0x41f   : > { %v1863_v63 = vrot.slane %v1862_v58, 2  ;;  %v2024_v0 = vrot.slane %v2023_v60, 4  ;;  %v2120_v1 = vrot.slane %v2119_v62, 4  ;;  %v1993_v5 = vrot.slane %v1992_v59, 2 }
 0x421   : > { %v2025_v2 = vadd.f32 %v2024_v0, %v2023_v60  ;;  %v2121_v3 = vadd.f32 %v2120_v1, %v2119_v62  ;;  %v1864_v4 = vadd.f32 %v1863_v63, %v1862_v58  ;;  %v1994_v20 = vadd.f32 %v1993_v5, %v1992_v59 }
 0x422   : > { %v2152_v6 = vpop.xlane.xlu1 %2151  ;;  %v1893_v8 = vpop.xlane.xlu0 %1892 }
 0x423   : > { %v2026_v9 = vrot.slane %v2025_v2, 2  ;;  %v2153_v10 = vrot.slane %v2152_v6, 4  ;;  %v1894_v11 = vrot.slane %v1893_v8, 4  ;;  %v2122_v12 = vrot.slane %v2121_v3, 2 }
 0x424   : > { %v1865_v13 = vrot.slane %v1864_v4, 1  ;;  %v1995_v36 = vrot.slane %v1994_v20, 1 }
 0x425   : > { %v2154_v14 = vadd.f32 %v2153_v10, %v2152_v6  ;;  %v1895_v15 = vadd.f32 %v1894_v11, %v1893_v8  ;;  %v2027_v22 = vadd.f32 %v2026_v9, %v2025_v2  ;;  %v2123_v27 = vadd.f32 %v2122_v12, %v2121_v3 }
 0x426   : > { %v2281_v17 = vpop.xlane.xlu1 %2280  ;;  %v2248_v18 = vpop.xlane.xlu0 %2247  ;;  %v1866_v19 = vadd.f32 %v1865_v13, %v1864_v4  ;;  %v1996_v53 = vadd.f32 %v1995_v36, %v1994_v20 }
 0x427   : > { %v2155_v23 = vrot.slane %v2154_v14, 2  ;;  %v1896_v24 = vrot.slane %v1895_v15, 2  ;;  %v2282_v25 = vrot.slane %v2281_v17, 4  ;;  %v2249_v26 = vrot.slane %v2248_v18, 4 }
 0x428   : > { %4801 = vpush %v1866_v19  ;;  %v2028_v37 = vrot.slane %v2027_v22, 1  ;;  %v2124_v44 = vrot.slane %v2123_v27, 1 }
 0x429   : > { %v2283_v28 = vadd.f32 %v2282_v25, %v2281_v17  ;;  %v2250_v29 = vadd.f32 %v2249_v26, %v2248_v18  ;;  %v1897_v30 = vadd.f32 %v1896_v24, %v1895_v15  ;;  %v2156_v31 = vadd.f32 %v2155_v23, %v2154_v14 }
 0x42a   : > { %v2410_v32 = vpop.xlane.xlu1 %2409  ;;  %v2377_v33 = vpop.xlane.xlu0 %2376  ;;  %v2029_v54 = vadd.f32 %v2028_v37, %v2027_v22  ;;  %v2125_v60 = vadd.f32 %v2124_v44, %v2123_v27 }
 0x42b   : > { %v2284_v39 = vrot.slane %v2283_v28, 2  ;;  %v2251_v40 = vrot.slane %v2250_v29, 2  ;;  %v2411_v41 = vrot.slane %v2410_v32, 4  ;;  %v2378_v42 = vrot.slane %v2377_v33, 4 }
 0x42c   : > { %v1898_v43 = vrot.slane %v1897_v30, 1  ;;  %v2157_v45 = vrot.slane %v2156_v31, 1 }
 0x42d   : > { %v2412_v46 = vadd.f32 %v2411_v41, %v2410_v32  ;;  %v2379_v47 = vadd.f32 %v2378_v42, %v2377_v33  ;;  %v2252_v48 = vadd.f32 %v2251_v40, %v2250_v29  ;;  %v2285_v49 = vadd.f32 %v2284_v39, %v2283_v28 }
 0x42e   : > { %v2539_v50 = vpop.xlane.xlu1 %2538  ;;  %v2506_v51 = vpop.xlane.xlu0 %2505  ;;  %v1899_v52 = vadd.f32 %v1898_v43, %v1897_v30  ;;  %v2158_v62 = vadd.f32 %v2157_v45, %v2156_v31 }
 0x42f   : > { %v2413_v55 = vrot.slane %v2412_v46, 2  ;;  %v2380_v56 = vrot.slane %v2379_v47, 2  ;;  %v2540_v58 = vrot.slane %v2539_v50, 4  ;;  %v2507_v59 = vrot.slane %v2506_v51, 4 }
 0x430   : > { %4803 = vpush %v1899_v52  ;;  %v2253_v63 = vrot.slane %v2252_v48, 1  ;;  %v2286_v0 = vrot.slane %v2285_v49, 1 }
 0x431   : > { %v2541_v1 = vadd.f32 %v2540_v58, %v2539_v50  ;;  %v2508_v2 = vadd.f32 %v2507_v59, %v2506_v51  ;;  %4805 = vpush %v1996_v53  ;;  %v2381_v3 = vadd.f32 %v2380_v56, %v2379_v47  ;;  %v2414_v4 = vadd.f32 %v2413_v55, %v2412_v46 }
 0x432   : > { %4807 = vpush %v2029_v54  ;;  %v2668_v5 = vpop.xlane.xlu1 %2667  ;;  %v2635_v6 = vpop.xlane.xlu0 %2634  ;;  %v2254_v8 = vadd.f32 %v2253_v63, %v2252_v48  ;;  %v2287_v9 = vadd.f32 %v2286_v0, %v2285_v49 }
 0x433   : > { %v2542_v10 = vrot.slane %v2541_v1, 2  ;;  %v2509_v11 = vrot.slane %v2508_v2, 2  ;;  %4809 = vpush %v2125_v60  ;;  %v2669_v12 = vrot.slane %v2668_v5, 4  ;;  %v2636_v13 = vrot.slane %v2635_v6, 4 }
 0x434   : > { %4811 = vpush %v2158_v62  ;;  %v2382_v14 = vrot.slane %v2381_v3, 1  ;;  %v2415_v15 = vrot.slane %v2414_v4, 1 }
 0x435   : > { %v2670_v17 = vadd.f32 %v2669_v12, %v2668_v5  ;;  %v2637_v18 = vadd.f32 %v2636_v13, %v2635_v6  ;;  %4813 = vpush %v2254_v8  ;;  %v2510_v19 = vadd.f32 %v2509_v11, %v2508_v2  ;;  %v2543_v20 = vadd.f32 %v2542_v10, %v2541_v1 }
 0x436   : > { %4815 = vpush %v2287_v9  ;;  %v2797_v22 = vpop.xlane.xlu1 %2796  ;;  %v2764_v23 = vpop.xlane.xlu0 %2763  ;;  %v2383_v24 = vadd.f32 %v2382_v14, %v2381_v3  ;;  %v2416_v25 = vadd.f32 %v2415_v15, %v2414_v4 }
 0x437   : > { %v2671_v26 = vrot.slane %v2670_v17, 2  ;;  %v2638_v27 = vrot.slane %v2637_v18, 2  ;;  %v2798_v28 = vrot.slane %v2797_v22, 4  ;;  %v2765_v29 = vrot.slane %v2764_v23, 4 }
 0x438   : > { %4817 = vpush %v2383_v24  ;;  %v2511_v30 = vrot.slane %v2510_v19, 1  ;;  %v2544_v31 = vrot.slane %v2543_v20, 1 }
 0x439   : > { %v2799_v32 = vadd.f32 %v2798_v28, %v2797_v22  ;;  %v2766_v33 = vadd.f32 %v2765_v29, %v2764_v23  ;;  %4819 = vpush %v2416_v25  ;;  %v2639_v36 = vadd.f32 %v2638_v27, %v2637_v18  ;;  %v2672_v37 = vadd.f32 %v2671_v26, %v2670_v17 }
 0x43a   : > { %v2926_v39 = vpop.xlane.xlu1 %2925  ;;  %v2893_v40 = vpop.xlane.xlu0 %2892  ;;  %v2512_v41 = vadd.f32 %v2511_v30, %v2510_v19  ;;  %v2545_v42 = vadd.f32 %v2544_v31, %v2543_v20 }
 0x43b   : > { %v2800_v43 = vrot.slane %v2799_v32, 2  ;;  %v2767_v44 = vrot.slane %v2766_v33, 2  ;;  %v2927_v45 = vrot.slane %v2926_v39, 4  ;;  %v2894_v46 = vrot.slane %v2893_v40, 4 }
 0x43c   : > { %4821 = vpush %v2512_v41  ;;  %v2640_v47 = vrot.slane %v2639_v36, 1  ;;  %v2673_v48 = vrot.slane %v2672_v37, 1 }
 0x43d   : > { %v2928_v49 = vadd.f32 %v2927_v45, %v2926_v39  ;;  %v2895_v50 = vadd.f32 %v2894_v46, %v2893_v40  ;;  %4823 = vpush %v2545_v42  ;;  %v2768_v51 = vadd.f32 %v2767_v44, %v2766_v33  ;;  %v2801_v52 = vadd.f32 %v2800_v43, %v2799_v32 }
 0x43e   : > { %v3055_v53 = vpop.xlane.xlu1 %3054  ;;  %v3022_v54 = vpop.xlane.xlu0 %3021  ;;  %v2641_v55 = vadd.f32 %v2640_v47, %v2639_v36  ;;  %v2674_v56 = vadd.f32 %v2673_v48, %v2672_v37 }
 0x43f   : > { %v2929_v58 = vrot.slane %v2928_v49, 2  ;;  %v2896_v59 = vrot.slane %v2895_v50, 2  ;;  %v3056_v60 = vrot.slane %v3055_v53, 4  ;;  %v3023_v62 = vrot.slane %v3022_v54, 4 }
 0x440   : > { %4825 = vpush %v2641_v55  ;;  %v2769_v63 = vrot.slane %v2768_v51, 1  ;;  %v2802_v0 = vrot.slane %v2801_v52, 1 }
 0x441   : > { %v3057_v1 = vadd.f32 %v3056_v60, %v3055_v53  ;;  %v3024_v2 = vadd.f32 %v3023_v62, %v3022_v54  ;;  %4827 = vpush %v2674_v56  ;;  %v2897_v3 = vadd.f32 %v2896_v59, %v2895_v50  ;;  %v2930_v4 = vadd.f32 %v2929_v58, %v2928_v49 }
 0x442   : > { %v3184_v5 = vpop.xlane.xlu1 %3183  ;;  %v3151_v6 = vpop.xlane.xlu0 %3150  ;;  %v2770_v8 = vadd.f32 %v2769_v63, %v2768_v51  ;;  %v2803_v9 = vadd.f32 %v2802_v0, %v2801_v52 }
 0x443   : > { %v3058_v10 = vrot.slane %v3057_v1, 2  ;;  %v3025_v11 = vrot.slane %v3024_v2, 2  ;;  %v3185_v12 = vrot.slane %v3184_v5, 4  ;;  %v3152_v13 = vrot.slane %v3151_v6, 4 }
 0x444   : > { %4829 = vpush %v2770_v8  ;;  %v2898_v14 = vrot.slane %v2897_v3, 1  ;;  %v2931_v15 = vrot.slane %v2930_v4, 1 }
 0x445   : > { %v3186_v17 = vadd.f32 %v3185_v12, %v3184_v5  ;;  %v3153_v18 = vadd.f32 %v3152_v13, %v3151_v6  ;;  %4831 = vpush %v2803_v9  ;;  %v3026_v19 = vadd.f32 %v3025_v11, %v3024_v2  ;;  %v3059_v20 = vadd.f32 %v3058_v10, %v3057_v1 }
 0x446   : > { %v3313_v22 = vpop.xlane.xlu1 %3312  ;;  %v3280_v23 = vpop.xlane.xlu0 %3279  ;;  %v2899_v24 = vadd.f32 %v2898_v14, %v2897_v3  ;;  %v2932_v25 = vadd.f32 %v2931_v15, %v2930_v4 }
 0x447   : > { %v3187_v26 = vrot.slane %v3186_v17, 2  ;;  %v3154_v27 = vrot.slane %v3153_v18, 2  ;;  %v3314_v28 = vrot.slane %v3313_v22, 4  ;;  %v3281_v29 = vrot.slane %v3280_v23, 4 }
 0x448   : > { %4833 = vpush %v2899_v24  ;;  %v3027_v30 = vrot.slane %v3026_v19, 1  ;;  %v3060_v31 = vrot.slane %v3059_v20, 1 }
 0x449   : > { %v3315_v32 = vadd.f32 %v3314_v28, %v3313_v22  ;;  %v3282_v33 = vadd.f32 %v3281_v29, %v3280_v23  ;;  %4835 = vpush %v2932_v25  ;;  %v3155_v36 = vadd.f32 %v3154_v27, %v3153_v18  ;;  %v3188_v37 = vadd.f32 %v3187_v26, %v3186_v17 }
 0x44a   : > { %v3442_v39 = vpop.xlane.xlu1 %3441  ;;  %v3409_v40 = vpop.xlane.xlu0 %3408  ;;  %v3028_v41 = vadd.f32 %v3027_v30, %v3026_v19  ;;  %v3061_v42 = vadd.f32 %v3060_v31, %v3059_v20 }
 0x44b   : > { %v3316_v43 = vrot.slane %v3315_v32, 2  ;;  %v3283_v44 = vrot.slane %v3282_v33, 2  ;;  %v3443_v45 = vrot.slane %v3442_v39, 4  ;;  %v3410_v46 = vrot.slane %v3409_v40, 4 }
 0x44c   : > { %4837 = vpush %v3028_v41  ;;  %v3156_v47 = vrot.slane %v3155_v36, 1  ;;  %v3189_v48 = vrot.slane %v3188_v37, 1 }
 0x44d   : > { %v3444_v49 = vadd.f32 %v3443_v45, %v3442_v39  ;;  %v3411_v50 = vadd.f32 %v3410_v46, %v3409_v40  ;;  %4839 = vpush %v3061_v42  ;;  %v3284_v51 = vadd.f32 %v3283_v44, %v3282_v33  ;;  %v3317_v52 = vadd.f32 %v3316_v43, %v3315_v32 }
 0x44e   : > { %v3571_v53 = vpop.xlane.xlu1 %3570  ;;  %v3538_v54 = vpop.xlane.xlu0 %3537  ;;  %v3157_v55 = vadd.f32 %v3156_v47, %v3155_v36  ;;  %v3190_v56 = vadd.f32 %v3189_v48, %v3188_v37 }
 0x44f   : > { %v3445_v58 = vrot.slane %v3444_v49, 2  ;;  %v3412_v59 = vrot.slane %v3411_v50, 2  ;;  %v3572_v60 = vrot.slane %v3571_v53, 4  ;;  %v3539_v62 = vrot.slane %v3538_v54, 4 }
 0x450   : > { %4841 = vpush %v3157_v55  ;;  %v3285_v63 = vrot.slane %v3284_v51, 1  ;;  %v3318_v0 = vrot.slane %v3317_v52, 1 }
 0x451   : > { %v3573_v1 = vadd.f32 %v3572_v60, %v3571_v53  ;;  %v3540_v2 = vadd.f32 %v3539_v62, %v3538_v54  ;;  %4843 = vpush %v3190_v56  ;;  %v3413_v3 = vadd.f32 %v3412_v59, %v3411_v50  ;;  %v3446_v4 = vadd.f32 %v3445_v58, %v3444_v49 }
 0x452   : > { %v3700_v5 = vpop.xlane.xlu1 %3699  ;;  %v3667_v6 = vpop.xlane.xlu0 %3666  ;;  %v3286_v8 = vadd.f32 %v3285_v63, %v3284_v51  ;;  %v3319_v9 = vadd.f32 %v3318_v0, %v3317_v52 }
 0x453   : > { %v3574_v10 = vrot.slane %v3573_v1, 2  ;;  %v3541_v11 = vrot.slane %v3540_v2, 2  ;;  %v3701_v12 = vrot.slane %v3700_v5, 4  ;;  %v3668_v13 = vrot.slane %v3667_v6, 4 }
 0x454   : > { %4845 = vpush %v3286_v8  ;;  %v3414_v14 = vrot.slane %v3413_v3, 1  ;;  %v3447_v15 = vrot.slane %v3446_v4, 1 }
 0x455   : > { %v3702_v17 = vadd.f32 %v3701_v12, %v3700_v5  ;;  %v3669_v18 = vadd.f32 %v3668_v13, %v3667_v6  ;;  %4847 = vpush %v3319_v9  ;;  %v3542_v19 = vadd.f32 %v3541_v11, %v3540_v2  ;;  %v3575_v20 = vadd.f32 %v3574_v10, %v3573_v1 }
 0x456   : > { %v3829_v22 = vpop.xlane.xlu1 %3828  ;;  %v3796_v23 = vpop.xlane.xlu0 %3795  ;;  %v3415_v24 = vadd.f32 %v3414_v14, %v3413_v3  ;;  %v3448_v25 = vadd.f32 %v3447_v15, %v3446_v4 }
 0x457   : > { %v3703_v26 = vrot.slane %v3702_v17, 2  ;;  %v3670_v27 = vrot.slane %v3669_v18, 2  ;;  %v3830_v28 = vrot.slane %v3829_v22, 4  ;;  %v3797_v29 = vrot.slane %v3796_v23, 4 }
 0x458   : > { %4849 = vpush %v3415_v24  ;;  %v3543_v30 = vrot.slane %v3542_v19, 1  ;;  %v3576_v31 = vrot.slane %v3575_v20, 1 }
 0x459   : > { %v3831_v32 = vadd.f32 %v3830_v28, %v3829_v22  ;;  %v3798_v33 = vadd.f32 %v3797_v29, %v3796_v23  ;;  %4851 = vpush %v3448_v25  ;;  %s4802_s2 = spop %4801  ;;  %v3671_v36 = vadd.f32 %v3670_v27, %v3669_v18  ;;  %v3704_v37 = vadd.f32 %v3703_v26, %v3702_v17 }
 0x45a   : > { %v3544_v39 = vadd.f32 %v3543_v30, %v3542_v19  ;;  %v3577_v40 = vadd.f32 %v3576_v31, %v3575_v20  ;;  %v1868_v44 = vstv %s4802_s2 }
 0x45b   : > { %v3832_v41 = vrot.slane %v3831_v32, 2  ;;  %v3799_v42 = vrot.slane %v3798_v33, 2  ;;  %v3672_v43 = vrot.slane %v3671_v36, 1  ;;  %v3705_v45 = vrot.slane %v3704_v37, 1 }
 0x45c   : > { %4853 = vpush %v3544_v39  ;;  %v6208_v50 = vmul.f32 0.0009765625, %v1868_v44 }
 0x45d   : > { %v3833_v46 = vadd.f32 %v3832_v41, %v3831_v32  ;;  %v3800_v47 = vadd.f32 %v3799_v42, %v3798_v33  ;;  %4855 = vpush %v3577_v40  ;;  %v3673_v48 = vadd.f32 %v3672_v43, %v3671_v36  ;;  %v3706_v49 = vadd.f32 %v3705_v45, %v3704_v37 }
 0x45e   : > { %v1905_v56 = vmul.f32 %v6208_v50, %v6208_v50 }
 0x45f   : > { %v3801_v51 = vrot.slane %v3800_v47, 1  ;;  %v3834_v52 = vrot.slane %v3833_v46, 1  ;;  %4857 = vpush %v3673_v48 }
 0x460   : > { %4859 = vpush %v3706_v49 }
 0x461   : > { %s4804_s11 = spop %4803  ;;  %v3802_v53 = vadd.f32 %v3801_v51, %v3800_v47  ;;  %v3835_v54 = vadd.f32 %v3834_v52, %v3833_v46  ;;  %v1910_v51 = vsel %vm1819_vm4, %v6208_v50, 0.0 }
 0x462   : > { %v1901_v55 = vstv %s4804_s11  ;;  %s4806_s26 = spop %4805 }
 0x463   : > { %v1904_v58 = vmul.f32 0.0009765625, %v1901_v55  ;;  %v1998_v59 = vstv %s4806_s26  ;;  %s4808_s28 = spop %4807  ;;  %4861 = vpush %v3802_v53 }
 0x464   : > { %v2032_v60 = vmul.f32 0.0009765625, %v1998_v59  ;;  %v2031_v62 = vstv %s4808_s28  ;;  %s4810_s13 = spop %4809  ;;  %4863 = vpush %v3835_v54 }
 0x465   : > { %v1906_v63 = vsub.f32 %v1904_v58, %v1905_v56  ;;  %v2127_v0 = vstv %s4810_s13  ;;  %s4812_s23 = spop %4811  ;;  %v2033_v2 = vmul.f32 0.0009765625, %v2031_v62 }
 0x466   : > { %v2034_v1 = vmul.f32 %v2032_v60, %v2032_v60  ;;  %v6212_v3 = vmul.f32 0.0009765625, %v2127_v0  ;;  %v2160_v4 = vstv %s4812_s23  ;;  %s4814_s0 = spop %4813  ;;  %v2039_v44 = vsel %vm1942_vm3, %v2032_v60, 0.0  ;;  %v3877_v0 = vld [vmem:[#allocation13] sm:$0xff] }
 0x467   : > { %v1907_v5 = vmax.f32 %v1906_v63, 0.0  ;;  %v2256_v6 = vstv %s4814_s0  ;;  %s4816_s4 = spop %4815  ;;  %v2162_v10 = vmul.f32 0.0009765625, %v2160_v4  ;;  %v2047_v54 = vadd.f32 %v2039_v44, %v1910_v51 }
 0x468   : > { %v2035_v8 = vsub.f32 %v2033_v2, %v2034_v1  ;;  %v2163_v9 = vmul.f32 %v6212_v3, %v6212_v3  ;;  %v2290_v11 = vmul.f32 0.0009765625, %v2256_v6  ;;  %v2289_v13 = vstv %s4816_s4 }
 0x469   : > { %v1908_v12 = vadd.f32 1e-05, %v1907_v5  ;;  %s4818_s27 = spop %4817  ;;  %v2291_v18 = vmul.f32 0.0009765625, %v2289_v13 }
 0x46a   : > { %v2036_v14 = vmax.f32 %v2035_v8, 0.0  ;;  %v2164_v15 = vsub.f32 %v2162_v10, %v2163_v9  ;;  %v2292_v17 = vmul.f32 %v2290_v11, %v2290_v11  ;;  %s4820_s19 = spop %4819  ;;  %v2385_v19 = vstv %s4818_s27 }
 0x46b   : > { %5103 = vrsqrt.f32 %v1908_v12  ;;  %v6216_v23 = vmul.f32 0.0009765625, %v2385_v19  ;;  %v2418_v24 = vstv %s4820_s19  ;;  %v2298_v62 = vsel %vm2201_vm6, %v2290_v11, 0.0  ;;  %v5135_v12 = vld [vmem:[#allocation12] sm:$0xff] }
 0x46c   : > { %v2037_v20 = vadd.f32 1e-05, %v2036_v14  ;;  %v2165_v22 = vmax.f32 %v2164_v15, 0.0  ;;  %v2293_v25 = vsub.f32 %v2291_v18, %v2292_v17  ;;  %v2420_v28 = vmul.f32 0.0009765625, %v2418_v24  ;;  %v3901_v19 = vld [vmem:[#allocation15] sm:$0xff] }
 0x46d   : > { %s4822_s18 = spop %4821  ;;  %v2421_v27 = vmul.f32 %v6216_v23, %v6216_v23  ;;  %v2169_v9 = vsel %vm2080_vm5, %v6212_v3, 0.0  ;;  %v3909_v13 = vsub.f32 %v5135_v12, %v2047_v54  ;;  %v3903_v12 = vld [vmem:[#allocation15 + $0x10] sm:$0xff] }
 0x46e   : > { %5105 = vrsqrt.f32 %v2037_v20  ;;  %v2166_v26 = vadd.f32 1e-05, %v2165_v22  ;;  %s4824_s3 = spop %4823  ;;  %v2294_v29 = vmax.f32 %v2293_v25, 0.0  ;;  %v2514_v30 = vstv %s4822_s18 }
 0x46f   : > { %v2547_v31 = vstv %s4824_s3  ;;  %v2422_v32 = vsub.f32 %v2420_v28, %v2421_v27  ;;  %v6220_v33 = vmul.f32 0.0009765625, %v2514_v30  ;;  %v2306_v15 = vadd.f32 %v2298_v62, %v2169_v9 }
 0x470   : > { %5107 = vrsqrt.f32 %v2166_v26  ;;  %v2295_v36 = vadd.f32 1e-05, %v2294_v29  ;;  %v2549_v40 = vmul.f32 0.0009765625, %v2547_v31  ;;  %v3878_v26 = vld [vmem:[#allocation13 + $0x8] sm:$0xff] }
 0x471   : > { %s4826_s2 = spop %4825  ;;  %v2423_v37 = vmax.f32 %v2422_v32, 0.0  ;;  %v2550_v39 = vmul.f32 %v6220_v33, %v6220_v33 }
 0x472   : > { %v2643_v41 = vstv %s4826_s2  ;;  %s4828_s11 = spop %4827  ;;  %5109 = vrsqrt.f32 %v2295_v36 }
 0x473   : > { %v6224_v42 = vmul.f32 0.0009765625, %v2643_v41  ;;  %v2676_v43 = vstv %s4828_s11  ;;  %v2424_v45 = vadd.f32 1e-05, %v2423_v37  ;;  %v2551_v46 = vsub.f32 %v2549_v40, %v2550_v39  ;;  %v5136_v37 = vld [vmem:[#allocation12 + $0x8] sm:$0xff] }
 0x474   : > { %v2678_v49 = vmul.f32 0.0009765625, %v2676_v43  ;;  %v3910_v39 = vsub.f32 %v5136_v37, %v2306_v15  ;;  %v2557_v40 = vsel %vm2460_vm8, %v6220_v33, 0.0  ;;  %v2428_v33 = vsel %vm2339_vm7, %v6216_v23, 0.0 }
 0x475   : > { %v5104_v47 = vpop.eup %5103  ;;  %v2679_v48 = vmul.f32 %v6224_v42, %v6224_v42  ;;  %s4830_s26 = spop %4829  ;;  %v2552_v52 = vmax.f32 %v2551_v46, 0.0  ;;  %5111 = vrsqrt.f32 %v2424_v45  ;;  %v3902_v46 = vld [vmem:[#allocation15 + $0x8] sm:$0xff]  ;;  %v2565_v54 = vadd.f32 %v2557_v40, %v2428_v33  ;;  %v5138_v40 = vld [vmem:[#allocation12 + $0x18] sm:$0xff] }
 0x476   : > { %v2772_v53 = vstv %s4830_s26  ;;  %s4832_s28 = spop %4831  ;;  %v1926_v60 = vsel %vm1819_vm4, %v5104_v47, 0.0 }
 0x477   : > { %v2680_v55 = vsub.f32 %v2678_v49, %v2679_v48  ;;  %v6233_v56 = vmul.f32 0.0009765625, %v2772_v53  ;;  %v2805_v58 = vstv %s4832_s28  ;;  %v2553_v63 = vadd.f32 1e-05, %v2552_v52 }
 0x478   : > { %v5106_v59 = vpop.eup %5105  ;;  %v2807_v4 = vmul.f32 0.0009765625, %v2805_v58 }
 0x479   : > { %v2055_v50 = vsel %vm1942_vm3, %v5106_v59, 0.0  ;;  %v2681_v1 = vmax.f32 %v2680_v55, 0.0  ;;  %v2808_v2 = vmul.f32 %v6233_v56, %v6233_v56  ;;  %s4834_s13 = spop %4833  ;;  %5113 = vrsqrt.f32 %v2553_v63  ;;  %v3879_v63 = vld [vmem:[#allocation13 + $0x10] sm:$0xff] }
 0x47a   : > { %v5108_v5 = vpop.eup %5107  ;;  %v2063_v6 = vadd.f32 %v2055_v50, %v1926_v60  ;;  %v2901_v8 = vstv %s4834_s13  ;;  %s4836_s23 = spop %4835  ;;  %vm6558_vm3 = vcmp.lt.s32.totalorder %v6161_v7, 52 }
 0x47b   : > { %v2682_v10 = vadd.f32 1e-05, %v2681_v1  ;;  %v2809_v11 = vsub.f32 %v2807_v4, %v2808_v2  ;;  %v6246_v21 = vmul.f32 0.0009765625, %v2901_v8  ;;  %v2934_v17 = vstv %s4836_s23  ;;  %v5137_v8 = vld [vmem:[#allocation12 + $0x10] sm:$0xff]  ;;  %vm6559_vm4 = vmmov %vm6558_vm3 }
 0x47c   : > { %v3885_v14 = vmul.f32 %v3877_v0, %v2063_v6  ;;  %v5110_v18 = vpop.eup %5109  ;;  %v2185_v20 = vsel %vm2080_vm5, %v5108_v5, 0.0  ;;  %v2936_v27 = vmul.f32 0.0009765625, %v2934_v17  ;;  %v3911_v9 = vsub.f32 %v5137_v8, %v2565_v54  ;;  %v5139_v8 = vld [vmem:[#allocation12 + $0x20] sm:$0xff] }
 0x47d   : > { %5115 = vrsqrt.f32 %v2682_v10  ;;  %v2810_v22 = vmax.f32 %v2809_v11, 0.0  ;;  %v2937_v24 = vmul.f32 %v6246_v21, %v6246_v21  ;;  %s4838_s0 = spop %4837  ;;  %v2314_v25 = vsel %vm2201_vm6, %v5110_v18, 0.0 }
 0x47e   : > { %3893 = vst.msk [vmem:[#allocation5] sm:$0xff] %vm1843_vm2, %v3885_v14  ;;  %v3917_v3 = vmul.f32 %v3909_v13, %v3885_v14  ;;  %v3030_v28 = vstv %s4838_s0  ;;  %s4840_s4 = spop %4839  ;;  %v2322_v29 = vadd.f32 %v2314_v25, %v2185_v20  ;;  %v2816_v10 = vsel %vm2719_vm10, %v6233_v56, 0.0 }
 0x47f   : > { %v2811_v30 = vadd.f32 1e-05, %v2810_v22  ;;  %v6255_v31 = vmul.f32 0.0009765625, %v3030_v28  ;;  %v3063_v32 = vstv %s4840_s4  ;;  %v2938_v41 = vsub.f32 %v2936_v27, %v2937_v24  ;;  %v5112_v45 = vpop.eup %5111  ;;  %v3880_v27 = vld [vmem:[#allocation13 + $0x18] sm:$0xff] }
 0x480   : > { %v3925_v36 = vadd.f32 %v3917_v3, %v3901_v19  ;;  %v3886_v43 = vmul.f32 %v3878_v26, %v2322_v29  ;;  %v3065_v44 = vmul.f32 0.0009765625, %v3063_v32  ;;  %v2444_v60 = vsel %vm2339_vm7, %v5112_v45, 0.0  ;;  %v3904_v45 = vld [vmem:[#allocation15 + $0x18] sm:$0xff] }
 0x481   : > { %5117 = vrsqrt.f32 %v2811_v30  ;;  %v3066_v38 = vmul.f32 %v6255_v31, %v6255_v31  ;;  %s4842_s27 = spop %4841  ;;  %v2939_v47 = vmax.f32 %v2938_v41, 0.0  ;;  %v2687_v13 = vsel %vm2598_vm9, %v6224_v42, 0.0 }
 0x482   : > { %3933 = vst.msk [vmem:[#allocation6] sm:$0xff] %vm1843_vm2, %v3925_v36  ;;  %v3159_v48 = vstv %s4842_s27  ;;  %s4844_s19 = spop %4843  ;;  %3894 = vst.msk [vmem:[#allocation5 + $0x8] sm:$0xff] %vm1843_vm2, %v3886_v43  ;;  %v3918_v49 = vmul.f32 %v3910_v39, %v3886_v43  ;;  %v2824_v20 = vadd.f32 %v2816_v10, %v2687_v13 }
 0x483   : > { %v3067_v51 = vsub.f32 %v3065_v44, %v3066_v38  ;;  %v6267_v52 = vmul.f32 0.0009765625, %v3159_v48  ;;  %v5114_v53 = vpop.eup %5113  ;;  %v2940_v55 = vadd.f32 1e-05, %v2939_v47  ;;  %v3192_v58 = vstv %s4844_s19 }
 0x484   : > { %v3926_v59 = vadd.f32 %v3918_v49, %v3902_v46  ;;  %v2573_v62 = vsel %vm2460_vm8, %v5114_v53, 0.0  ;;  %v3194_v4 = vmul.f32 0.0009765625, %v3192_v58  ;;  %v3912_v41 = vsub.f32 %v5138_v40, %v2824_v20  ;;  %v3906_v40 = vld [vmem:[#allocation15 + $0x28] sm:$0xff] }
 0x485   : > { %v3068_v50 = vmax.f32 %v3067_v51, 0.0  ;;  %s4846_s18 = spop %4845  ;;  %v2581_v0 = vadd.f32 %v2573_v62, %v2444_v60  ;;  %5119 = vrsqrt.f32 %v2940_v55  ;;  %v3195_v23 = vmul.f32 %v6267_v52, %v6267_v52 }
 0x486   : > { %s4848_s3 = spop %4847  ;;  %3934 = vst.msk [vmem:[#allocation6 + $0x8] sm:$0xff] %vm1843_vm2, %v3926_v59  ;;  %v3288_v5 = vstv %s4846_s18  ;;  %v3075_v46 = vsel %vm2978_vm12, %v6255_v31, 0.0  ;;  %v2946_v53 = vsel %vm2857_vm11, %v6246_v21, 0.0 }
 0x487   : > { %v5116_v1 = vpop.eup %5115  ;;  %v3069_v2 = vadd.f32 1e-05, %v3068_v50  ;;  %v3321_v6 = vstv %s4848_s3  ;;  %v3887_v61 = vmul.f32 %v3879_v63, %v2581_v0  ;;  %v6279_v11 = vmul.f32 0.0009765625, %v3288_v5  ;;  %v3881_v50 = vld [vmem:[#allocation13 + $0x20] sm:$0xff] }
 0x488   : > { %v3196_v14 = vsub.f32 %v3194_v4, %v3195_v23  ;;  %v3323_v18 = vmul.f32 0.0009765625, %v3321_v6  ;;  %v2703_v42 = vsel %vm2598_vm9, %v5116_v1, 0.0  ;;  %v3083_v60 = vadd.f32 %v3075_v46, %v2946_v53 }
 0x489   : > { %5121 = vrsqrt.f32 %v3069_v2  ;;  %s4850_s2 = spop %4849  ;;  %3895 = vst.msk [vmem:[#allocation5 + $0x10] sm:$0xff] %vm1843_vm2, %v3887_v61  ;;  %v3919_v15 = vmul.f32 %v3911_v9, %v3887_v61  ;;  %v3324_v17 = vmul.f32 %v6279_v11, %v6279_v11 }
 0x48a   : > { %v3417_v19 = vstv %s4850_s2  ;;  %s4852_s11 = spop %4851  ;;  %v3197_v22 = vmax.f32 %v3196_v14, 0.0  ;;  %v3913_v9 = vsub.f32 %v5139_v8, %v3083_v60 }
 0x48b   : > { %v5118_v56 = vpop.eup %5117  ;;  %v6287_v24 = vmul.f32 0.0009765625, %v3417_v19  ;;  %v3450_v3 = vstv %s4852_s11  ;;  %v3927_v25 = vadd.f32 %v3919_v15, %v3903_v12  ;;  %v3325_v28 = vsub.f32 %v3323_v18, %v3324_v17  ;;  %v3905_v12 = vld [vmem:[#allocation15 + $0x20] sm:$0xff] }
 0x48c   : > { %v2832_v26 = vsel %vm2719_vm10, %v5118_v56, 0.0  ;;  %v3198_v30 = vadd.f32 1e-05, %v3197_v22  ;;  %v3452_v36 = vmul.f32 0.0009765625, %v3450_v3  ;;  %v3334_v17 = vsel %vm3237_vm14, %v6279_v11, 0.0 }
 0x48d   : > { %v2840_v29 = vadd.f32 %v2832_v26, %v2703_v42  ;;  %v3453_v32 = vmul.f32 %v6287_v24, %v6287_v24  ;;  %s4854_s26 = spop %4853  ;;  %3935 = vst.msk [vmem:[#allocation6 + $0x10] sm:$0xff] %vm1843_vm2, %v3927_v25  ;;  %v3326_v37 = vmax.f32 %v3325_v28, 0.0  ;;  %v3205_v3 = vsel %vm3116_vm13, %v6267_v52, 0.0 }
 0x48e   : > { %v3546_v39 = vstv %s4854_s26  ;;  %s4856_s28 = spop %4855  ;;  %5123 = vrsqrt.f32 %v3198_v30  ;;  %v3342_v26 = vadd.f32 %v3334_v17, %v3205_v3  ;;  %v3464_v57 = vsel %vm6558_vm3, %v6287_v24, 0.0 }
 0x48f   : > { %v3888_v43 = vmul.f32 %v3880_v27, %v2840_v29  ;;  %v3454_v38 = vsub.f32 %v3452_v36, %v3453_v32  ;;  %v6296_v16 = vmul.f32 0.0009765625, %v3546_v39  ;;  %v5120_v44 = vpop.eup %5119  ;;  %v3327_v47 = vadd.f32 1e-05, %v3326_v37  ;;  %v3882_v29 = vld [vmem:[#allocation13 + $0x28] sm:$0xff] }
 0x490   : > { %v3579_v48 = vstv %s4856_s28  ;;  %s4858_s13 = spop %4857  ;;  %v2962_v59 = vsel %vm2857_vm11, %v5120_v44, 0.0  ;;  %v5140_v37 = vld [vmem:[#allocation12 + $0x28] sm:$0xff] }
 0x491   : > { %3896 = vst.msk [vmem:[#allocation5 + $0x18] sm:$0xff] %vm1843_vm2, %v3888_v43  ;;  %v3920_v49 = vmul.f32 %v3912_v41, %v3888_v43  ;;  %v3455_v33 = vmax.f32 %v3454_v38, 0.0  ;;  %v3582_v51 = vmul.f32 %v6296_v16, %v6296_v16  ;;  %5125 = vrsqrt.f32 %v3327_v47  ;;  %s4860_s23 = spop %4859 }
 0x492   : > { %v3581_v54 = vmul.f32 0.0009765625, %v3579_v48  ;;  %v3675_v55 = vstv %s4858_s13  ;;  %v3708_v1 = vstv %s4860_s23  ;;  %v3914_v39 = vsub.f32 %v5140_v37, %v3342_v26 }
 0x493   : > { %v5122_v31 = vpop.eup %5121  ;;  %v3928_v58 = vadd.f32 %v3920_v49, %v3904_v45  ;;  %v6309_v62 = vmul.f32 0.0009765625, %v3675_v55  ;;  %v3456_v0 = vadd.f32 1e-05, %v3455_v33  ;;  %v3710_v5 = vmul.f32 0.0009765625, %v3708_v1  ;;  %v3883_v49 = vld [vmem:[#allocation13 + $0x30] sm:$0xff]  ;;  %v5142_v1 = vld [vmem:[#allocation12 + $0x38] sm:$0xff] }
 0x494   : > { %v3091_v63 = vsel %vm2978_vm12, %v5122_v31, 0.0  ;;  %v3583_v23 = vsub.f32 %v3581_v54, %v3582_v51  ;;  %s4862_s0 = spop %4861  ;;  %v3593_v41 = vsel %vm3496_vm0, %v6296_v16, 0.0  ;;  %v5141_v33 = vld [vmem:[#allocation12 + $0x30] sm:$0xff] }
 0x495   : > { %3936 = vst.msk [vmem:[#allocation6 + $0x18] sm:$0xff] %vm1843_vm2, %v3928_v58  ;;  %v3099_v21 = vadd.f32 %v3091_v63, %v2962_v59  ;;  %v3711_v2 = vmul.f32 %v6309_v62, %v6309_v62  ;;  %s4864_s4 = spop %4863  ;;  %v3804_v6 = vstv %s4862_s0  ;;  %5127 = vrsqrt.f32 %v3456_v0  ;;  %v3907_v55 = vld [vmem:[#allocation15 + $0x30] sm:$0xff]  ;;  %v3884_v0 = vld [vmem:[#allocation13 + $0x38] sm:$0xff] }
 0x496   : > { %v3584_v4 = vmax.f32 %v3583_v23, 0.0  ;;  %v3838_v35 = vmul.f32 0.0009765625, %v3804_v6  ;;  %v3837_v10 = vstv %s4864_s4  ;;  %v3601_v46 = vadd.f32 %v3593_v41, %v3464_v57 }
 0x497   : > { %v3889_v61 = vmul.f32 %v3881_v50, %v3099_v21  ;;  %v3712_v14 = vsub.f32 %v3710_v5, %v3711_v2  ;;  %v3839_v19 = vmul.f32 0.0009765625, %v3837_v10  ;;  %v3723_v7 = vsel %vm3634_vm1, %v6309_v62, 0.0 }
 0x498   : > { %v3585_v13 = vadd.f32 1e-05, %v3584_v4  ;;  %v3840_v18 = vmul.f32 %v3838_v35, %v3838_v35  ;;  %v5124_v56 = vpop.eup %5123  ;;  %v3915_v51 = vsub.f32 %v5141_v33, %v3601_v46  ;;  %v3852_v54 = vsel %vm3755_vm15, %v3838_v35, 0.0  ;;  %v3908_v4 = vld [vmem:[#allocation15 + $0x38] sm:$0xff] }
 0x499   : > { %3897 = vst.msk [vmem:[#allocation5 + $0x20] sm:$0xff] %vm1843_vm2, %v3889_v61  ;;  %v3921_v15 = vmul.f32 %v3913_v9, %v3889_v61  ;;  %v3713_v20 = vmax.f32 %v3712_v14, 0.0  ;;  %v3221_v28 = vsel %vm3116_vm13, %v5124_v56, 0.0  ;;  %v3860_v59 = vadd.f32 %v3852_v54, %v3723_v7 }
 0x49a   : > { %5129 = vrsqrt.f32 %v3585_v13  ;;  %v3841_v25 = vsub.f32 %v3839_v19, %v3840_v18 }
 0x49b   : > { %v3929_v22 = vadd.f32 %v3921_v15, %v3905_v12  ;;  %v5126_v42 = vpop.eup %5125  ;;  %v3714_v27 = vadd.f32 1e-05, %v3713_v20  ;;  %v3916_v21 = vsub.f32 %v5142_v1, %v3860_v59 }
 0x49c   : > { %v3350_v11 = vsel %vm3237_vm14, %v5126_v42, 0.0  ;;  %v3842_v30 = vmax.f32 %v3841_v25, 0.0 }
 0x49d   : > { %3937 = vst.msk [vmem:[#allocation6 + $0x20] sm:$0xff] %vm1843_vm2, %v3929_v22  ;;  %v3358_v32 = vadd.f32 %v3350_v11, %v3221_v28  ;;  %5131 = vrsqrt.f32 %v3714_v27 }
 0x49e   : > { %v3843_v36 = vadd.f32 1e-05, %v3842_v30 }
 0x49f   : > { %v3890_v52 = vmul.f32 %v3882_v29, %v3358_v32  ;;  %v5128_v43 = vpop.eup %5127 }
 0x4a0   : > { %5133 = vrsqrt.f32 %v3843_v36  ;;  %v3480_v47 = vsel %vm6559_vm4, %v5128_v43, 0.0 }
 0x4a1   : > { %3898 = vst.msk [vmem:[#allocation5 + $0x28] sm:$0xff] %vm1843_vm2, %v3890_v52  ;;  %v3922_v38 = vmul.f32 %v3914_v39, %v3890_v52 }
 0x4a3   : > { %v3930_v45 = vadd.f32 %v3922_v38, %v3906_v40 }
 0x4a4   : > { %v5130_v44 = vpop.eup %5129 }
 0x4a5   : > { %v3609_v48 = vsel %vm3496_vm0, %v5130_v44, 0.0  ;;  %3938 = vst.msk [vmem:[#allocation6 + $0x28] sm:$0xff] %vm1843_vm2, %v3930_v45 }
 0x4a6   : > { %v3617_v16 = vadd.f32 %v3609_v48, %v3480_v47 }
 0x4a7   : > { %v5132_v24 = vpop.eup %5131 }
 0x4a8   : > { %v3891_v53 = vmul.f32 %v3883_v49, %v3617_v16  ;;  %v3739_v63 = vsel %vm3634_vm1, %v5132_v24, 0.0 }
 0x4aa   : > { %3899 = vst.msk [vmem:[#allocation5 + $0x30] sm:$0xff] %vm1843_vm2, %v3891_v53  ;;  %v3923_v31 = vmul.f32 %v3915_v51, %v3891_v53  ;;  %v5134_v58 = vpop.eup %5133 }
 0x4ab   : > { %v3868_v50 = vsel %vm3755_vm15, %v5134_v58, 0.0 }
 0x4ac   : > { %v3931_v60 = vadd.f32 %v3923_v31, %v3907_v55  ;;  %v3876_v23 = vadd.f32 %v3868_v50, %v3739_v63 }
 0x4ae   : > { %3939 = vst.msk [vmem:[#allocation6 + $0x30] sm:$0xff] %vm1843_vm2, %v3931_v60  ;;  %v3892_v2 = vmul.f32 %v3884_v0, %v3876_v23 }
 0x4b0   : > { %3900 = vst.msk [vmem:[#allocation5 + $0x38] sm:$0xff] %vm1843_vm2, %v3892_v2  ;;  %v3924_v62 = vmul.f32 %v3916_v21, %v3892_v2 }
 0x4b2   : > { %v3932_v5 = vadd.f32 %v3924_v62, %v3908_v4 }
 0x4b4   : > { %3940 = vst.msk [vmem:[#allocation6 + $0x38] sm:$0xff] %vm1843_vm2, %v3932_v5 }
 0x4b5 PF: > { %v4007_v6 = vld [vmem:[#allocation6] sm:$0xff]  ;;  %v5558_v9 = vmov 0   ;;  %v4008_v34 = vld [vmem:[#allocation6 + $0x8] sm:$0xff]  ;;  %v3954_v35 = vld [vmem:[#allocation5 + $0x18] sm:$0xff]  ;;  %s6560_s27 = sld [smem:[#allocation31_spill]]  ;;  %vm4085_vm2 = vcmask 523264  }
 0x4b6   : > { %v3951_v8 = vld [vmem:[#allocation5] sm:$0xff]  ;;  %5144 = vset.pattern.permute.xlu1 %v5558_v9  ;;  %5143 = vset.pattern.permute.xlu0 %v5558_v9  ;;  %v3952_v61 = vld [vmem:[#allocation5 + $0x8] sm:$0xff]  ;;  %v3953_v10 = vld [vmem:[#allocation5 + $0x10] sm:$0xff]  ;;  %vm4204_vm5 = vcmask 1044480  }
 0x4b7   : > { %4017 = vperm.xlu1 %5144, %v4007_v6   ;;  %3961 = vperm.xlu0 %5143, %v3951_v8   ;;  %v4010_v12 = vld [vmem:[#allocation6 + $0x18] sm:$0xff]  ;;  %v4009_v13 = vld [vmem:[#allocation6 + $0x10] sm:$0xff]  ;;  %v3956_v14 = vld [vmem:[#allocation5 + $0x28] sm:$0xff] }
 0x4b8   : > { %v3955_v15 = vld [vmem:[#allocation5 + $0x20] sm:$0xff]  ;;  %v4012_v17 = vld [vmem:[#allocation6 + $0x28] sm:$0xff]  ;;  %v3958_v19 = vld [vmem:[#allocation5 + $0x38] sm:$0xff] }
 0x4b9   : > { %v4011_v18 = vld [vmem:[#allocation6 + $0x20] sm:$0xff]  ;;  %v3957_v56 = vld [vmem:[#allocation5 + $0x30] sm:$0xff]  ;;  %v4074_v3 = vld [vmem:[#allocation18 + $0x8] sm:$0x7] }
 0x4ba   : > { %v4013_v22 = vld [vmem:[#allocation6 + $0x30] sm:$0xff]  ;;  %v4071_v42 = vld [vmem:[#allocation16] sm:$0xff] }
 0x4bb   : > { %4022 = vperm.xlu1 %5144, %v4008_v34   ;;  %3966 = vperm.xlu0 %5143, %v3952_v61   ;;  %v4014_v20 = vld [vmem:[#allocation6 + $0x38] sm:$0xff]  ;;  %v4073_v25 = vld [vmem:[#allocation18] sm:$0xff]  ;;  %s4556_s19 = sshll.u32 %s6560_s27, 6 }
 0x4bc   : > { %4732 = vmatprep.mubr.msk.f32.mxu0 %vm4085_vm2, %v4071_v42  ;;  %s6355_s18 = scalar_lea.vmem [#allocation2], %s4556_s19 }
 0x4bd   : > { %v3943_v26 = vld [vmem:[%s6355_s18] sm:$0xff]  ;;  %v3944_v29 = vld [vmem:[%s6355_s18 + $0x8] sm:$0xff]  ;;  %v3946_v40 = vld [vmem:[%s6355_s18 + $0x18] sm:$0xff] }
 0x4be   : > { %v3945_v43 = vld [vmem:[%s6355_s18 + $0x10] sm:$0xff]  ;;  %v3948_v54 = vld [vmem:[%s6355_s18 + $0x28] sm:$0xff]  ;;  %v3947_v55 = vld [vmem:[%s6355_s18 + $0x20] sm:$0xff] }
 0x4bf   : > { %3976 = vperm.xlu1 %5144, %v3954_v35   ;;  %3971 = vperm.xlu0 %5143, %v3953_v10   ;;  %v3950_v21 = vld [vmem:[%s6355_s18 + $0x38] sm:$0xff]  ;;  %v3949_v4 = vld [vmem:[%s6355_s18 + $0x30] sm:$0xff] }
 0x4c3   : > { %4032 = vperm.xlu1 %5144, %v4010_v12   ;;  %4027 = vperm.xlu0 %5143, %v4009_v13   ;;  %v4072_v13 = vld [vmem:[#allocation16 + $0x8] sm:$0x7] }
 0x4c7   : > { %3986 = vperm.xlu1 %5144, %v3956_v14   ;;  %3981 = vperm.xlu0 %5143, %v3955_v15  }
 0x4cb   : > { %4042 = vperm.xlu1 %5144, %v4012_v17   ;;  %4037 = vperm.xlu0 %5143, %v4011_v18  }
 0x4cf   : > { %3996 = vperm.xlu1 %5144, %v3958_v19   ;;  %3991 = vperm.xlu0 %5143, %v3957_v56  }
 0x4d3   : > { %4052 = vperm.xlu1 %5144, %v4014_v20   ;;  %4047 = vperm.xlu0 %5143, %v4013_v22  }
 0x4d7   : > { %4082 = vperm.xlu1 %5144, %v4074_v3   ;;  %4077 = vperm.xlu0 %5143, %v4073_v25  }
 0x536   : > { %v4018_v27 = vpop.permute.xlu1 %4017  ;;  %v3962_v28 = vpop.permute.xlu0 %3961 }
 0x537   : > { %v3999_v11 = vmul.f32 %v3962_v28, %v3943_v26 }
 0x539   : > { %v4055_v36 = vadd.f32 %v4018_v27, %v3999_v11 }
 0x53a   : > { %v4023_v30 = vpop.permute.xlu1 %4022  ;;  %v3967_v32 = vpop.permute.xlu0 %3966 }
 0x53b   : > { %v4000_v37 = vmul.f32 %v3967_v32, %v3944_v29  ;;  %v4063_v38 = vmax.f32 %v4055_v36, 0.0  ;;  %v4175_v29 = vlaneseq }
 0x53d   : > { %v4056_v39 = vadd.f32 %v4023_v30, %v4000_v37  ;;  %v4176_v30 = vshrl.u32 %v4175_v29, 7 }
 0x53e   : > { %v3977_v52 = vpop.permute.xlu1 %3976  ;;  %v3972_v41 = vpop.permute.xlu0 %3971 }
 0x53f   : > { %v4064_v57 = vmax.f32 %v4056_v39, 0.0  ;;  %v4002_v44 = vmul.f32 %v3977_v52, %v3946_v40  ;;  %v4001_v45 = vmul.f32 %v3972_v41, %v3945_v43  ;;  %v4198_v52 = vsub.s32 1, %v4176_v30 }
 0x540   : > { %vm4195_vm6 = vcmp.ge.s32.totalorder %v4176_v30, 6  ;;  %vm4184_vm7 = vcmp.ge.s32.totalorder %v4176_v30, 3  ;;  %vm4185_vm8 = vcmp.lt.s32.totalorder %v4176_v30, 6 }
 0x541   : > { %v4735_v46 = vpack.c.bf16 %v4064_v57, %v4063_v38  ;;  %vm4186_vm9 = vmand %vm4184_vm7, %vm4185_vm8 }
 0x542   : > { %v4033_v47 = vpop.permute.xlu1 %4032  ;;  %v4028_v48 = vpop.permute.xlu0 %4027 }
 0x543   : > { %v4058_v49 = vadd.f32 %v4033_v47, %v4002_v44  ;;  %v4057_v16 = vadd.f32 %v4028_v48, %v4001_v45  ;;  %4736 = vmatprep.subr.bf16.mxu0 %v4735_v46 }
 0x544   : > { %4738 = vmatpush3.bf16.msra.mxu0 %v4735_v46 }
 0x545   : > { %v4066_v33 = vmax.f32 %v4058_v49, 0.0  ;;  %v4065_v51 = vmax.f32 %v4057_v16, 0.0 }
 0x546   : > { %v3987_v53 = vpop.permute.xlu1 %3986  ;;  %v3982_v24 = vpop.permute.xlu0 %3981 }
 0x547   : > { %v4739_v31 = vpack.c.bf16 %v4066_v33, %v4065_v51  ;;  %v4004_v7 = vmul.f32 %v3987_v53, %v3948_v54  ;;  %v4003_v58 = vmul.f32 %v3982_v24, %v3947_v55 }
 0x549   : > { %4740 = vmatprep.subr.bf16.mxu0 %v4739_v31 }
 0x54a   : > { %v4043_v59 = vpop.permute.xlu1 %4042  ;;  %v4038_v60 = vpop.permute.xlu0 %4037  ;;  %4742 = vmatpush3.bf16.msra.mxu0 %v4739_v31 }
 0x54b   : > { %v4060_v63 = vadd.f32 %v4043_v59, %v4004_v7  ;;  %v4059_v50 = vadd.f32 %v4038_v60, %v4003_v58 }
 0x54d   : > { %v4068_v0 = vmax.f32 %v4060_v63, 0.0  ;;  %v4067_v23 = vmax.f32 %v4059_v50, 0.0 }
 0x54e   : > { %v3997_v1 = vpop.permute.xlu1 %3996  ;;  %v3992_v2 = vpop.permute.xlu0 %3991 }
 0x54f   : > { %v4743_v62 = vpack.c.bf16 %v4068_v0, %v4067_v23  ;;  %v4006_v5 = vmul.f32 %v3997_v1, %v3950_v21  ;;  %v4005_v6 = vmul.f32 %v3992_v2, %v3949_v4 }
 0x551   : > { %4744 = vmatprep.subr.bf16.mxu0 %v4743_v62 }
 0x552   : > { %v4053_v8 = vpop.permute.xlu1 %4052  ;;  %v4048_v9 = vpop.permute.xlu0 %4047  ;;  %4746 = vmatpush3.bf16.msra.mxu0 %v4743_v62 }
 0x553   : > { %v4062_v34 = vadd.f32 %v4053_v8, %v4006_v5  ;;  %v4061_v61 = vadd.f32 %v4048_v9, %v4005_v6 }
 0x555   : > { %v4070_v35 = vmax.f32 %v4062_v34, 0.0  ;;  %v4069_v10 = vmax.f32 %v4061_v61, 0.0 }
 0x556   : > { %v4083_v14 = vpop.permute.xlu1 %4082  ;;  %v4078_v17 = vpop.permute.xlu0 %4077 }
 0x557   : > { %v4747_v12 = vpack.c.bf16 %v4070_v35, %v4069_v10 }
 0x559   : > { %4748 = vmatprep.subr.bf16.mxu0 %v4747_v12 }
 0x55a   : > { %4750 = vmatpush3.bf16.msra.mxu0 %v4747_v12 }
 0x55d   : > { %4733 = vmatmul.mubr.msk.f32.vlgmr.msra.gmra.mrb[0].mxu0 %vm4085_vm2, %v4072_v13 }
 0x630   : > { %v4734_v15 = vpop.f32.mrb[0].mxu0 }
 0x631   : > { %v4164_v18 = vadd.f32 %v4734_v15, %v4083_v14  ;;  %v4158_v19 = vpop.f32.mrb[1].mxu0 }
 0x632   : > { %v4159_v56 = vadd.f32 %v4158_v19, %v4078_v17 }
 0x633   : > { %v4177_v20 = vmul.f32 %v4164_v18, %v4164_v18  ;;  %v4560_v22 = vmul.f32 -1.442695, %v4164_v18  ;;  %v4212_v3 = vrot.slane %v4164_v18, 3 }
 0x634   : > { %v4559_v25 = vmul.f32 -1.442695, %v4159_v56  ;;  %v4211_v42 = vrot.slane %v4159_v56, 3 }
 0x635   : > { %v4179_v26 = vrot.slane %v4177_v20, 1  ;;  %5145 = vpow2.f32 %v4560_v22 }
 0x636   : > { %5147 = vpow2.f32 %v4559_v25  ;;  %v4213_v27 = vsel %vm4204_vm5, %v4211_v42, %v4212_v3 }
 0x637   : > { %v4181_v28 = vadd.f32 %v4179_v26, %v4177_v20 }
 0x639   : > { %v4182_v11 = vmax.f32 %v4181_v28, 1e-24 }
 0x63b   : > { %5149 = vrsqrt.f32 %v4182_v11 }
 0x63f   : > { %v5146_v32 = vpop.eup %5145 }
 0x640   : > { %v5148_v36 = vpop.eup %5147  ;;  %v4190_v37 = vadd.f32 1.0, %v5146_v32 }
 0x641   : > { %v4170_v39 = vadd.f32 1.0, %v5148_v36 }
 0x642   : > { %5151 = vrcp.f32 %v4190_v37 }
 0x643   : > { %5153 = vrcp.f32 %v4170_v39 }
 0x645   : > { %v5150_v40 = vpop.eup %5149 }
 0x646   : > { %v4199_v41 = vrot.slane %v5150_v40, %v4198_v52 }
 0x648   : > { %v4200_v43 = vmul.f32 %v4199_v41, %v4159_v56  ;;  %v4201_v38 = vmul.f32 %v4199_v41, %v4164_v18 }
 0x64a   : > { %v4205_v57 = vrot.slane %v4200_v43, 3  ;;  %v4206_v44 = vrot.slane %v4201_v38, 3 }
 0x64c   : > { %v5152_v45 = vpop.eup %5151  ;;  %v4207_v46 = vsel %vm4204_vm5, %v4205_v57, %v4206_v44 }
 0x64d   : > { %v5154_v47 = vpop.eup %5153  ;;  %v4562_v48 = vadd.f32 -0.5, %v5152_v45  ;;  %v4215_v49 = vsel %vm4195_vm6, %v4207_v46, %v4213_v27 }
 0x64e   : > { %v4173_v16 = vmax.f32 %v5154_v47, 0.0001  ;;  %v4561_v33 = vadd.f32 -0.5, %v5154_v47 }
 0x64f   : > { %v4219_v51 = vrot.slane %v4562_v48, 3 }
 0x650   : > { %v4174_v53 = vmin.f32 %v4173_v16, 0.9999  ;;  %v4218_v54 = vrot.slane %v4561_v33, 3 }
 0x652   : > { %v4220_v24 = vsel %vm4204_vm5, %v4218_v54, %v4219_v51  ;;  %4223 = vst [vmem:[%s5962_s1] sm:$0x7] %v4174_v53 }
 0x653   : > { %v4222_v55 = vsel %vm4186_vm9, %v4220_v24, %v4215_v49 }
 0x654   : > { %4224 = vst [vmem:[%s5964_s30] sm:$0xff] %v4222_v55 }
 0x655 PF: > { %s6561_s3 = sld [smem:[#allocation32_spill]]  ;;  %s6562_s2 = sld [smem:[#allocation31_spill]] }
 0x656   : > { %s6563_s11 = sld [smem:[#allocation33_spill]]  ;;  %s4247_s13 = sshll.u32 %s5962_s1, 4  ;;  %s6377_s13 = int_to_ptr.vmem [resolvable:$true] %s4247_s13 }
 0x657   : > { %s6564_s19 = sld [smem:[#allocation42_spill]]  ;;  %s4226_s6 = scalar_lea.sflag [#allocation9], %s5958_s25 }
 0x658   : > { %p6565_p5 = scmp.ne.s32.totalorder %s6542_s29, 0  ;;  %s5559_s1 = smov [#allocation19]  }
 0x65b   : > { %s4238_s26 = smul.u32 %s6562_s2, %s6561_s3  ;;  %s5353_s3 = scalar_lea.vmem %s6377_s13, 64 }
 0x65c   : > { %s4565_s28 = sshll.u32 %s6563_s11, 1  ;;  %p5354_p4 = scmp.ne.s32.totalorder %s6377_s13, %s5353_s3 }
 0x65d   : > { %s6375_s23 = sadd.s32 %s4565_s28, %s4238_s26  ;;  %s5357_s2 = sshll.u32 %s5559_s1, 4  ;;  %s5358_s2 = int_to_ptr.vmem [resolvable:$false] %s5357_s2 }
 0x65e   : > { %s4566_s0 = sshll.u32 %s6375_s23, 6  ;;  %s4568_s5 = sshll.u32 %s6375_s23, 7 }
 0x65f   : > { %s6383_s18 = scalar_lea.hbm %s6564_s19, %s4566_s0  ;;  %p5355_p3 = pnand %p5354_p4, %p6565_p5 }
 0x660   : > { %s5359_s11 = scalar_lea.vmem %s5358_s2, 128  ;;  %p5360_p12 = scmp.lt.s32.totalorder %s6377_s13, %s5358_s2 }
 0x661   : > { %p5356_p9 = pneg %p5355_p3  ;;  %p5361_p6 = scmp.lt.s32.totalorder %s5359_s11, %s5353_s3 }
 0x663   : > { %p5362_p0 = por %p5361_p6, %p5360_p12 }
 0x665   : > { %p5363_p2 = pnand %p5362_p0, %p5356_p9 }
 0x667   : > { %5366 = shalt.err (!%p5363_p2)
}
 0x668   : > { %s5367_s26 = scalar_lea.hbm %s6383_s18, 64  ;;  %s5371_s4 = scalar_lea.hbm %s6564_s19, 256 }
 0x669   : > { %p5368_p10 = scmp.ne.s32.totalorder %s6383_s18, %s5367_s26  ;;  %p5372_p1 = scmp.lt.u32.totalorder %s6383_s18, %s6564_s19 }
 0x66a   : > { %p5373_p8 = scmp.lt.u32.totalorder %s5371_s4, %s5367_s26  ;;  %p5375_p4 = scmp.lt.u32.totalorder %s5367_s26, %s6383_s18 }
 0x66b   : > { %p5369_p7 = pnand %p5368_p10, %p6565_p5 }
 0x66c   : > { %p5374_p13 = por %p5373_p8, %p5372_p1 }
 0x66d   : > { %p5370_p11 = pneg %p5369_p7 }
 0x66e   : > { %p5376_p3 = por %p5375_p4, %p5374_p13 }
 0x670   : > { %p5377_p9 = pnand %p5376_p3, %p5370_p11 }
 0x672   : > { %5380 = shalt.err (!%p5377_p9)
}
 0x673   : > { %4891 = dma.vmem_to_hbm [thread:$0]  (%p6565_p5), %s6377_s13, 64, %s6383_s18, %s4226_s6  }
 0x674   : > { %s6566_s11 = sld [smem:[#allocation43_spill]]  ;;  %s4263_s4 = sshll.u32 %s5964_s30, 4  ;;  %s4264_s4 = int_to_ptr.vmem [resolvable:$true] %s4263_s4 }
 0x675   : > { %s4231_s26 = scalar_lea.sflag [#allocation21], %s5958_s25  ;;  %s5381_s27 = scalar_lea.vmem %s4264_s4, 128 }
 0x676   : > { %p5382_p12 = scmp.ne.s32.totalorder %s4264_s4, %s5381_s27  ;;  %s5560_s1 = smov [#allocation20]  }
 0x677   : > { %s5385_s19 = sshll.u32 %s5560_s1, 4  ;;  %s5386_s19 = int_to_ptr.vmem [resolvable:$false] %s5385_s19 }
 0x678   : > { %p5383_p6 = pnand %p5382_p12, %p6565_p5  ;;  %s5387_s20 = scalar_lea.vmem %s5386_s19, 256 }
 0x679   : > { %p5388_p2 = scmp.lt.s32.totalorder %s4264_s4, %s5386_s19  ;;  %p5389_p10 = scmp.lt.s32.totalorder %s5387_s20, %s5381_s27 }
 0x67a   : > { %s6567_s0 = smov %s6566_s11  ;;  %s6413_s28 = scalar_lea.hbm %s6566_s11, %s4568_s5 }
 0x67b   : > { %p5384_p0 = pneg %p5383_p6  ;;  %p5390_p7 = por %p5389_p10, %p5388_p2 }
 0x67d   : > { %p5391_p11 = pnand %p5390_p7, %p5384_p0 }
 0x67f   : > { %5394 = shalt.err (!%p5391_p11)
}
 0x680   : > { %s5395_s5 = scalar_lea.hbm %s6413_s28, 128  ;;  %s5399_s30 = scalar_lea.hbm %s6567_s0, 512 }
 0x681   : > { %p5396_p1 = scmp.ne.s32.totalorder %s6413_s28, %s5395_s5  ;;  %p5400_p4 = scmp.lt.u32.totalorder %s6413_s28, %s6567_s0 }
 0x682   : > { %p5401_p3 = scmp.lt.u32.totalorder %s5399_s30, %s5395_s5  ;;  %p5403_p12 = scmp.lt.u32.totalorder %s5395_s5, %s6413_s28 }
 0x683   : > { %p5397_p8 = pnand %p5396_p1, %p6565_p5 }
 0x684   : > { %p5402_p9 = por %p5401_p3, %p5400_p4 }
 0x685   : > { %p5398_p13 = pneg %p5397_p8 }
 0x686   : > { %p5404_p6 = por %p5403_p12, %p5402_p9 }
 0x688   : > { %p5405_p0 = pnand %p5404_p6, %p5398_p13 }
 0x68a   : > { %5408 = shalt.err (!%p5405_p0)
}
 0x68b   : > { %4892 = dma.vmem_to_hbm [thread:$0]  (%p6565_p5), %s4264_s4, 128, %s6413_s28, %s4231_s26  }
 0x68c PF: > { %s6568_s20 = sld [smem:[#allocation28_spill]]  ;;  %p4938_p2 = scmp.ge.s32.totalorder %s5535_s17, 2 }
 0x68d   : > { %p6569_p10 = scmp.ne.s32.totalorder %s6544_s12, 0 }
 0x68f   : > { %p4919_p7 = pnand %p4938_p2, %p6569_p10 }
 0x692   : > { %s4275_s19 = sand.u32 1, %s6568_s20  }
 0x693   : > { %s4276_s18 = scalar_lea.sflag [#allocation9], %s4275_s19 }
 0x694   : > { %5478 = dma.done.wait (!%p4919_p7), %s4276_s18, 64  }
 0x695   : > { %5480 = vsyncadd (!%p4919_p7), %s4276_s18, 4294967232  ;;  %s4285_s3 = scalar_lea.sflag [#allocation21], %s4275_s19 }
 0x696   : > { %5482 = dma.done.wait (!%p4919_p7), %s4285_s3, 128  }
 0x697   : > { %5484 = vsyncadd (!%p4919_p7), %s4285_s3, 4294967168  ;;  %s31_s17 = sadd.s32 1, %s5535_s17   ;;  %s6571_s27 = sld [smem:[#allocation29_spill]] }
 0x698   : > { %p6439_p11 = scmp.ge.s32.totalorder %s31_s17, 10   ;;  %s6572_s28 = sld [smem:[#allocation30_spill]] }
 0x699   : > { %s6574_s29 = smov %s6595_s8  ;;  %s6575_s30 = smov %s5503_s9 }
 0x69a   : > { %s6576_s9 = smov %s5507_s10  ;;  %s6577_s10 = smov %s5868_s7 }
 0x69b   : > { %s6578_s11 = smov %s5523_s14  ;;  %s6579_s12 = smov %s5527_s15 }
 0x69c   : > { %s6580_s13 = smov %s5531_s16  ;;  %s6581_s14 = smov %s6585_s21 }
 0x69d   : > { %s6582_s15 = smov %s6589_s24  ;;  %s6583_s16 = smov %s6593_s22 }
 0x69e   :  { %30 = sbr.rel (!%p6439_p11) target bundleno = 25 (0x19), region = 160 }
 0x6a5   :  { %4290 = vsyncpa [#allocation8], 1 }
 0x6a6   :  { %4292 = vsyncpa [#allocation8 + $0x1], 1 }
 0x6a7   :  { %4293 = vsyncpa [#allocation11], 1 }
 0x6a8   :  { %4294 = vsyncpa [#allocation14], 1 }
 0x6a9   :  { %4295 = vsyncpa [#allocation17], 1 }
 0x6aa   :  { %4296 = vsyncpa [#allocation9], 1 }
 0x6ab   :  { %4298 = vsyncpa [#allocation9 + $0x1], 1 }
 0x6ac   :  { %4299 = vsyncpa [#allocation21], 1 }
 0x6ad   :  { %4301 = vsyncpa [#allocation21 + $0x1], 1 }

</bundles_post_ra>
